<compile_context>
chip_gen: v7x
topology: tpu7x:2x2x1
jax: 0.10.0
libtpu: 0.0.40
codegen_flags: <defaults>
</compile_context>

<pallas_src>
import functools

import jax
import jax.numpy as jnp
from jax.experimental import pallas as pl
from jax.experimental.pallas import tpu as pltpu


# ----------------------------------------------------------------------------
# Small helpers
# ----------------------------------------------------------------------------
def _divmod_const(v, d):
    """Integer divmod of an int32 array by a positive Python-int constant.

    Uses shift/and when the divisor is a power of two (always true for the
    shapes exercised here); falls back to // and % otherwise."""
    if d & (d - 1) == 0:
        s = d.bit_length() - 1
        return v >> s, v & (d - 1)
    return v // d, v % d


# ----------------------------------------------------------------------------
# Fused Pallas kernel
# ----------------------------------------------------------------------------
def _repghost_kernel(x_ref, pk_ref, o_ref, *, n, h, w, ho, wo,
                     cin, cmid, cout, layout):
    f32 = jnp.float32
    hw_hi, hw_lo = h * w, ho * wo
    l_hi, l_lo = n * hw_hi, n * hw_lo
    relu = lambda v: jnp.maximum(v, 0.0)

    def getp(name):
        """Static slice of the packed parameter block (zero runtime cost)."""
        nrow, off, ncol = layout[name]
        return pk_ref[0:nrow, off:off + ncol]

    # ---- lane coordinates, generated in-kernel (replaces constant DMAs) -----
    lane_hi = jax.lax.broadcasted_iota(jnp.int32, (1, l_hi), 1)
    _, pos_hi = _divmod_const(lane_hi, hw_hi)
    r_hi, c_hi = _divmod_const(pos_hi, w)

    lane_lo = jax.lax.broadcasted_iota(jnp.int32, (1, l_lo), 1)
    img_lo, pos_lo = _divmod_const(lane_lo, hw_lo)
    r_lo, c_lo = _divmod_const(pos_lo, wo)

    def tap_masks(r, c, hh, ww):
        """(1, L) validity mask per 3x3 tap (padding=1); None = always valid."""
        row_ok = (r >= 1, None, r <= hh - 2)
        col_ok = (c >= 1, None, c <= ww - 2)
        out = []
        for dh in range(3):
            for dwd in range(3):
                conds = [m for m in (row_ok[dh], col_ok[dwd]) if m is not None]
                if not conds:
                    out.append(None)
                elif len(conds) == 1:
                    out.append(conds[0].astype(f32))
                else:
                    out.append(jnp.logical_and(conds[0], conds[1]).astype(f32))
        return out

    masks_hi = tap_masks(r_hi, c_hi, h, w)
    masks_lo = tap_masks(r_lo, c_lo, ho, wo)

    # ---- building blocks -----------------------------------------------------
    def pw_conv(xv, wv, bv):
        """1x1 conv (BN scale folded) as VPU broadcast-FMAs, 4 parallel chains."""
        cin_ = wv.shape[1]
        nacc = min(4, cin_)
        accs = [None] * nacc
        for ci in range(cin_):
            t = wv[:, ci:ci + 1] * xv[ci:ci + 1, :]
            a = ci % nacc
            accs[a] = t if accs[a] is None else accs[a] + t
        while len(accs) > 1:                               # pairwise tree combine
            accs = [accs[i] + accs[i + 1] if i + 1 < len(accs) else accs[i]
                    for i in range(0, len(accs), 2)]
        return accs[0] + bv

    def dw_conv(xv, wv, bv, masks, img_w, length):
        """3x3 depthwise conv (pad=1, stride 1) on the flattened slab.

        Taps are lane rolls of the whole slab; boundary/inter-image bleed is
        zeroed by the per-tap masks (skipped where the tap is always valid).
        Three parallel accumulator chains."""
        accs = [None, None, None]
        for k in range(9):
            dh, dwd = k // 3, k % 3
            off = (dh - 1) * img_w + (dwd - 1)
            xs = xv if off == 0 else pltpu.roll(xv, shift=(-off) % length, axis=1)
            if masks[k] is not None:
                xs = xs * masks[k]
            t = xs * wv[:, k:k + 1]
            a = k % 3
            accs[a] = t if accs[a] is None else accs[a] + t
        return (accs[0] + accs[1]) + accs[2] + bv

    x = x_ref[...]                                                  # (cin, l_hi)

    # ---- ghost1 (relu=True): 1x1+BN+ReLU, 3x3 dw+BN, + fusion-BN(x1), ReLU ---
    x1a = relu(pw_conv(x, getp("g1_pw_w"), getp("g1_pw_b")))        # (cmid, l_hi)
    g1c = dw_conv(x1a, getp("g1_dw_w"), getp("g1_dw_b"), masks_hi, w, l_hi)
    x1 = relu(g1c + x1a * getp("g1_fs") + getp("g1_fb"))

    # ---- stride-2 dw convs (main path + shortcut) at full res, then ONE fused
    # selection matmul against an in-kernel generated 0/1 matrix (K-chunked) ---
    mid_full = dw_conv(x1, getp("dw_w"), getp("dw_b"), masks_hi, w, l_hi)
    sc_full = dw_conv(x, getp("sc_dw_w"), getp("sc_dw_b"), masks_hi, w, l_hi)
    both = jnp.concatenate([mid_full, sc_full], axis=0)             # (cmid+cin, l_hi)

    src_lo = img_lo * hw_hi + (2 * r_lo) * w + 2 * c_lo             # (1, l_lo)
    sel = None
    for k0 in range(0, l_hi, 128):
        kc = min(128, l_hi - k0)
        p_iota = jax.lax.broadcasted_iota(jnp.int32, (kc, 1), 0) + k0
        dsel = (p_iota == src_lo).astype(f32)                       # (kc, l_lo)
        part = jnp.dot(both[:, k0:k0 + kc], dsel,
                       preferred_element_type=f32)
        sel = part if sel is None else sel + part                   # exact: disjoint chunks
    xm = sel[0:cmid, :]                                             # (cmid, l_lo)
    s_dw = sel[cmid:cmid + cin, :]                                  # (cin, l_lo)

    # ---- squeeze-excite: one pooling matmul for all images -------------------
    row_lo = jax.lax.broadcasted_iota(jnp.int32, (l_lo, 1), 0)
    row_img, _ = _divmod_const(row_lo, hw_lo)                       # (l_lo, 1)
    img_ids = jax.lax.broadcasted_iota(jnp.int32, (1, n), 1)        # (1, n)
    pool = (row_img == img_ids).astype(f32) * (1.0 / hw_lo)         # (l_lo, n)
    pooled = jnp.dot(xm, pool, preferred_element_type=f32)          # (cmid, n)
    hid = relu(pw_conv(pooled, getp("se_w1"), getp("se_b1")))       # (cr, n)
    exc = pw_conv(hid, getp("se_w2"), getp("se_b2"))                # (cmid, n)
    gate = jnp.clip(exc + 3.0, 0.0, 6.0) * (1.0 / 6.0)              # (cmid, n)
    gate_l = gate[:, n - 1:n]                                       # exact per-image select
    for i in range(n - 2, -1, -1):
        gate_l = jnp.where(img_lo == i, gate[:, i:i + 1], gate_l)
    xm = xm * gate_l

    # ---- ghost2 (relu=False) --------------------------------------------------
    y1 = pw_conv(xm, getp("g2_pw_w"), getp("g2_pw_b"))              # (cout, l_lo)
    y = dw_conv(y1, getp("g2_dw_w"), getp("g2_dw_b"), masks_lo, wo, l_lo)
    y = y + y1 * getp("g2_fs") + getp("g2_fb")

    # ---- shortcut 1x1 + BN, fused residual add --------------------------------
    s = pw_conv(s_dw, getp("sc_pw_w"), getp("sc_pw_b"))             # (cout, l_lo)
    o_ref[...] = (y + s).astype(o_ref.dtype)


# ----------------------------------------------------------------------------
# Host-side parameter packing (one DMA instead of ~22)
# ----------------------------------------------------------------------------
def _pack_params(entries):
    """Concatenate small (rows<=16, cols) params into one (16, total_cols) f32
    array; returns the packed array plus a static layout dict name->(rows, off, cols)."""
    n_rows = max(a.shape[0] for _, a in entries)
    layout, parts, off = {}, [], 0
    for name, arr in entries:
        arr = arr.astype(jnp.float32)
        r, c = arr.shape
        if r < n_rows:
            arr = jnp.concatenate([arr, jnp.zeros((n_rows - r, c), jnp.float32)], axis=0)
        parts.append(arr)
        layout[name] = (r, off, c)
        off += c
    return jnp.concatenate(parts, axis=1), layout


# ----------------------------------------------------------------------------
# Wrapper: BN folding, layout glue, single pallas_call
# ----------------------------------------------------------------------------
def repghost_bottleneck(x, params):
    n, cin, h, w = x.shape
    ho, wo = (h - 1) // 2 + 1, (w - 1) // 2 + 1
    cmid = params["ghost1"]["pw_w"].shape[0]
    cout = params["ghost2"]["pw_w"].shape[0]
    l_lo = n * ho * wo

    # Host-side layout glue (channel-major lanes). Negligible at 16 KiB; for
    # realistic shapes feed NCHW directly via BlockSpecs to avoid the round trip.
    x_cl = jnp.transpose(x, (1, 0, 2, 3)).reshape(cin, n * h * w)

    def fold(wmat, scale, bias):
        return wmat * scale[:, None], bias.reshape(-1, 1)

    g1, g2 = params["ghost1"], params["ghost2"]
    g1_pw_w, g1_pw_b = fold(g1["pw_w"], g1["pw_scale"], g1["pw_bias"])
    g1_dw_w, g1_dw_b = fold(g1["dw_w"], g1["dw_scale"], g1["dw_bias"])
    g2_pw_w, g2_pw_b = fold(g2["pw_w"], g2["pw_scale"], g2["pw_bias"])
    g2_dw_w, g2_dw_b = fold(g2["dw_w"], g2["dw_scale"], g2["dw_bias"])
    dw_w, dw_b = fold(params["dw_w"], params["dw_scale"], params["dw_bias"])
    sc_dw_w, sc_dw_b = fold(params["sc_dw_w"], params["sc_dw_scale"], params["sc_dw_bias"])
    sc_pw_w, sc_pw_b = fold(params["sc_pw_w"], params["sc_pw_scale"], params["sc_pw_bias"])

    entries = [
        ("g1_pw_w", g1_pw_w), ("g1_pw_b", g1_pw_b),
        ("g1_dw_w", g1_dw_w), ("g1_dw_b", g1_dw_b),
        ("g1_fs", g1["fuse_scale"].reshape(-1, 1)),
        ("g1_fb", g1["fuse_bias"].reshape(-1, 1)),
        ("dw_w", dw_w), ("dw_b", dw_b),
        ("se_w1", params["se_w1"]), ("se_b1", params["se_b1"].reshape(-1, 1)),
        ("se_w2", params["se_w2"]), ("se_b2", params["se_b2"].reshape(-1, 1)),
        ("g2_pw_w", g2_pw_w), ("g2_pw_b", g2_pw_b),
        ("g2_dw_w", g2_dw_w), ("g2_dw_b", g2_dw_b),
        ("g2_fs", g2["fuse_scale"].reshape(-1, 1)),
        ("g2_fb", g2["fuse_bias"].reshape(-1, 1)),
        ("sc_dw_w", sc_dw_w), ("sc_dw_b", sc_dw_b),
        ("sc_pw_w", sc_pw_w), ("sc_pw_b", sc_pw_b),
    ]
    packed, layout = _pack_params(entries)

    # No grid: the whole bottleneck is one program, both operands resident in
    # VMEM (~22 KiB), output block (Cout, N*Ho*Wo) = (8, 128) is lane-dense.
    out_flat = pl.pallas_call(
        functools.partial(_repghost_kernel, n=n, h=h, w=w, ho=ho, wo=wo,
                          cin=cin, cmid=cmid, cout=cout, layout=layout),
        out_shape=jax.ShapeDtypeStruct((cout, l_lo), jnp.float32),
    )(x_cl, packed)
    return jnp.transpose(out_flat.reshape(cout, n, ho, wo), (1, 0, 2, 3))


# ----------------------------------------------------------------------------
# Pure-JAX reference (for correctness verification only)
# ----------------------------------------------------------------------------
_HI = jax.lax.Precision.HIGHEST


def _reference_bottleneck(x, p):
    def bn(y, scale, bias):
        return y * scale[None, :, None, None] + bias[None, :, None, None]

    def pw(v, wmat, scale, bias, relu):
        y = jnp.einsum("oc,nchw->nohw", wmat, v, precision=_HI)
        y = bn(y, scale, bias)
        return jnp.maximum(y, 0.0) if relu else y

    def dw(v, w9, scale, bias, stride):
        c = v.shape[1]
        y = jax.lax.conv_general_dilated(
            v, w9.reshape(c, 1, 3, 3), (stride, stride), ((1, 1), (1, 1)),
            dimension_numbers=("NCHW", "OIHW", "NCHW"),
            feature_group_count=c, precision=_HI)
        return bn(y, scale, bias)

    def ghost(v, g, relu):
        x1 = pw(v, g["pw_w"], g["pw_scale"], g["pw_bias"], relu)
        x2 = dw(x1, g["dw_w"], g["dw_scale"], g["dw_bias"], 1)
        x2 = x2 + bn(x1, g["fuse_scale"], g["fuse_bias"])
        return jnp.maximum(x2, 0.0) if relu else x2

    def se(v, w1, b1, w2, b2):
        pooled = jnp.mean(v, axis=(2, 3), keepdims=True)
        hmid = jnp.maximum(
            jnp.einsum("rc,nchw->nrhw", w1, pooled, precision=_HI)
            + b1[None, :, None, None], 0.0)
        exc = jnp.einsum("cr,nrhw->nchw", w2, hmid, precision=_HI) + b2[None, :, None, None]
        return v * (jnp.clip(exc + 3.0, 0.0, 6.0) / 6.0)

    x1 = ghost(x, p["ghost1"], True)
    xm = dw(x1, p["dw_w"], p["dw_scale"], p["dw_bias"], 2)
    xm = se(xm, p["se_w1"], p["se_b1"], p["se_w2"], p["se_b2"])
    y = ghost(xm, p["ghost2"], False)
    s = dw(x, p["sc_dw_w"], p["sc_dw_scale"], p["sc_dw_bias"], 2)
    s = pw(s, p["sc_pw_w"], p["sc_pw_scale"], p["sc_pw_bias"], False)
    return y + s


# ----------------------------------------------------------------------------
# Deterministic parameter initialization (inference-mode BN folded to affine)
# ----------------------------------------------------------------------------
def _bn_fold(key, c, eps=1e-5):
    k1, k2, k3, k4 = jax.random.split(key, 4)
    gamma = jax.random.uniform(k1, (c,), jnp.float32, 0.5, 1.5)
    beta = 0.1 * jax.random.normal(k2, (c,), jnp.float32)
    mean = 0.1 * jax.random.normal(k3, (c,), jnp.float32)
    var = jax.random.uniform(k4, (c,), jnp.float32, 0.5, 1.5)
    scale = gamma / jnp.sqrt(var + eps)
    bias = beta - mean * scale
    return scale, bias


def init_params(key, in_chs, mid_chs, out_chs, se_reduced):
    keys = list(jax.random.split(key, 32))
    it = iter(keys)

    def conv_w(shape):
        return 0.1 * jax.random.normal(next(it), shape, jnp.float32)

    def ghost(inp, oup):
        pw_s, pw_b = _bn_fold(next(it), oup)
        dw_s, dw_b = _bn_fold(next(it), oup)
        fu_s, fu_b = _bn_fold(next(it), oup)
        return dict(
            pw_w=conv_w((oup, inp)), pw_scale=pw_s, pw_bias=pw_b,
            dw_w=conv_w((oup, 9)), dw_scale=dw_s, dw_bias=dw_b,
            fuse_scale=fu_s, fuse_bias=fu_b,
        )

    params = {"ghost1": ghost(in_chs, mid_chs), "ghost2": ghost(mid_chs, out_chs)}

    dw_s, dw_b = _bn_fold(next(it), mid_chs)
    params.update(dw_w=conv_w((mid_chs, 9)), dw_scale=dw_s, dw_bias=dw_b)

    params.update(
        se_w1=conv_w((se_reduced, mid_chs)),
        se_b1=0.1 * jax.random.normal(next(it), (se_reduced,), jnp.float32),
        se_w2=conv_w((mid_chs, se_reduced)),
        se_b2=0.1 * jax.random.normal(next(it), (mid_chs,), jnp.float32),
    )

    sc_dw_s, sc_dw_b = _bn_fold(next(it), in_chs)
    sc_pw_s, sc_pw_b = _bn_fold(next(it), out_chs)
    params.update(
        sc_dw_w=conv_w((in_chs, 9)), sc_dw_scale=sc_dw_s, sc_dw_bias=sc_dw_b,
        sc_pw_w=conv_w((out_chs, in_chs)), sc_pw_scale=sc_pw_s, sc_pw_bias=sc_pw_b,
    )
    return params


if __name__ == "__main__":
    in_chs, mid_chs, out_chs = 8, 16, 8
    se_reduced = 4   # _make_divisible(16 * 0.25, 4) == 4
    n, h, w = 2, 16, 16

    root = jax.random.PRNGKey(0)
    params = init_params(root, in_chs, mid_chs, out_chs, se_reduced)
    x = jax.random.normal(jax.random.fold_in(root, 999), (n, in_chs, h, w), jnp.float32)

    fwd = jax.jit(lambda inp: repghost_bottleneck(inp, params))
    out = fwd(x)
    jax.block_until_ready(out)

    assert out.shape == (n, out_chs, h // 2, w // 2), out.shape
    assert bool(jnp.all(jnp.isfinite(out)))

    ref = _reference_bottleneck(x, params)
    max_err = float(jnp.max(jnp.abs(out - ref)))
    # Tolerance kept conservative to be robust to MXU f32-emulation precision on
    # the selection / SE-pooling dots; observed error is far smaller in practice.
    assert bool(jnp.allclose(out, ref, atol=2e-2, rtol=2e-2)), f"max abs err {max_err}"
    print("KERNEL_OK")
</pallas_src>

<mosaic_0001>
module attributes {stable_mosaic.version = 11 : i64} {
  func.func @_repghost_kernel(%arg0: memref<8x512xf32, #tpu.memory_space<vmem>>, %arg1: memref<16x101xf32, #tpu.memory_space<vmem>>, %arg2: memref<8x128xf32, #tpu.memory_space<vmem>>) attributes {dimension_semantics = [], scalar_prefetch = 0 : i64, scratch_operands = 0 : i64, tpu.core_type = #tpu.core_type<tc>} {
    %0 = tpu.iota {dimensions = array<i32: 1>} : vector<1x512xi32>
    %c255_i32 = arith.constant 255 : i32
    %1 = vector.broadcast %c255_i32 : i32 to vector<1x512xi32>
    %2 = arith.andi %0, %1 : vector<1x512xi32>
    %c4_i32 = arith.constant 4 : i32
    %3 = vector.broadcast %c4_i32 : i32 to vector<1x512xi32>
    %4 = arith.shrsi %2, %3 : vector<1x512xi32>
    %c15_i32 = arith.constant 15 : i32
    %5 = vector.broadcast %c15_i32 : i32 to vector<1x512xi32>
    %6 = arith.andi %2, %5 : vector<1x512xi32>
    %7 = tpu.iota {dimensions = array<i32: 1>} : vector<1x128xi32>
    %c6_i32 = arith.constant 6 : i32
    %8 = vector.broadcast %c6_i32 : i32 to vector<1x128xi32>
    %9 = arith.shrsi %7, %8 : vector<1x128xi32>
    %c63_i32 = arith.constant 63 : i32
    %10 = vector.broadcast %c63_i32 : i32 to vector<1x128xi32>
    %11 = arith.andi %7, %10 : vector<1x128xi32>
    %c3_i32 = arith.constant 3 : i32
    %12 = vector.broadcast %c3_i32 : i32 to vector<1x128xi32>
    %13 = arith.shrsi %11, %12 : vector<1x128xi32>
    %c7_i32 = arith.constant 7 : i32
    %14 = vector.broadcast %c7_i32 : i32 to vector<1x128xi32>
    %15 = arith.andi %11, %14 : vector<1x128xi32>
    %c1_i32 = arith.constant 1 : i32
    %16 = vector.broadcast %c1_i32 : i32 to vector<1x512xi32>
    %17 = arith.cmpi sge, %4, %16 : vector<1x512xi32>
    %c14_i32 = arith.constant 14 : i32
    %18 = vector.broadcast %c14_i32 : i32 to vector<1x512xi32>
    %19 = arith.cmpi sle, %4, %18 : vector<1x512xi32>
    %c1_i32_0 = arith.constant 1 : i32
    %20 = vector.broadcast %c1_i32_0 : i32 to vector<1x512xi32>
    %21 = arith.cmpi sge, %6, %20 : vector<1x512xi32>
    %c14_i32_1 = arith.constant 14 : i32
    %22 = vector.broadcast %c14_i32_1 : i32 to vector<1x512xi32>
    %23 = arith.cmpi sle, %6, %22 : vector<1x512xi32>
    %24 = arith.andi %17, %21 : vector<1x512xi1>
    %25 = arith.extui %24 : vector<1x512xi1> to vector<1x512xi32>
    %26 = arith.sitofp %25 : vector<1x512xi32> to vector<1x512xf32>
    %27 = arith.extui %17 : vector<1x512xi1> to vector<1x512xi32>
    %28 = arith.sitofp %27 : vector<1x512xi32> to vector<1x512xf32>
    %29 = arith.andi %17, %23 : vector<1x512xi1>
    %30 = arith.extui %29 : vector<1x512xi1> to vector<1x512xi32>
    %31 = arith.sitofp %30 : vector<1x512xi32> to vector<1x512xf32>
    %32 = arith.extui %21 : vector<1x512xi1> to vector<1x512xi32>
    %33 = arith.sitofp %32 : vector<1x512xi32> to vector<1x512xf32>
    %34 = arith.extui %23 : vector<1x512xi1> to vector<1x512xi32>
    %35 = arith.sitofp %34 : vector<1x512xi32> to vector<1x512xf32>
    %36 = arith.andi %19, %21 : vector<1x512xi1>
    %37 = arith.extui %36 : vector<1x512xi1> to vector<1x512xi32>
    %38 = arith.sitofp %37 : vector<1x512xi32> to vector<1x512xf32>
    %39 = arith.extui %19 : vector<1x512xi1> to vector<1x512xi32>
    %40 = arith.sitofp %39 : vector<1x512xi32> to vector<1x512xf32>
    %41 = arith.andi %19, %23 : vector<1x512xi1>
    %42 = arith.extui %41 : vector<1x512xi1> to vector<1x512xi32>
    %43 = arith.sitofp %42 : vector<1x512xi32> to vector<1x512xf32>
    %c1_i32_2 = arith.constant 1 : i32
    %44 = vector.broadcast %c1_i32_2 : i32 to vector<1x128xi32>
    %45 = arith.cmpi sge, %13, %44 : vector<1x128xi32>
    %c6_i32_3 = arith.constant 6 : i32
    %46 = vector.broadcast %c6_i32_3 : i32 to vector<1x128xi32>
    %47 = arith.cmpi sle, %13, %46 : vector<1x128xi32>
    %c1_i32_4 = arith.constant 1 : i32
    %48 = vector.broadcast %c1_i32_4 : i32 to vector<1x128xi32>
    %49 = arith.cmpi sge, %15, %48 : vector<1x128xi32>
    %c6_i32_5 = arith.constant 6 : i32
    %50 = vector.broadcast %c6_i32_5 : i32 to vector<1x128xi32>
    %51 = arith.cmpi sle, %15, %50 : vector<1x128xi32>
    %52 = arith.andi %45, %49 : vector<1x128xi1>
    %53 = arith.extui %52 : vector<1x128xi1> to vector<1x128xi32>
    %54 = arith.sitofp %53 : vector<1x128xi32> to vector<1x128xf32>
    %55 = arith.extui %45 : vector<1x128xi1> to vector<1x128xi32>
    %56 = arith.sitofp %55 : vector<1x128xi32> to vector<1x128xf32>
    %57 = arith.andi %45, %51 : vector<1x128xi1>
    %58 = arith.extui %57 : vector<1x128xi1> to vector<1x128xi32>
    %59 = arith.sitofp %58 : vector<1x128xi32> to vector<1x128xf32>
    %60 = arith.extui %49 : vector<1x128xi1> to vector<1x128xi32>
    %61 = arith.sitofp %60 : vector<1x128xi32> to vector<1x128xf32>
    %62 = arith.extui %51 : vector<1x128xi1> to vector<1x128xi32>
    %63 = arith.sitofp %62 : vector<1x128xi32> to vector<1x128xf32>
    %64 = arith.andi %47, %49 : vector<1x128xi1>
    %65 = arith.extui %64 : vector<1x128xi1> to vector<1x128xi32>
    %66 = arith.sitofp %65 : vector<1x128xi32> to vector<1x128xf32>
    %67 = arith.extui %47 : vector<1x128xi1> to vector<1x128xi32>
    %68 = arith.sitofp %67 : vector<1x128xi32> to vector<1x128xf32>
    %69 = arith.andi %47, %51 : vector<1x128xi1>
    %70 = arith.extui %69 : vector<1x128xi1> to vector<1x128xi32>
    %71 = arith.sitofp %70 : vector<1x128xi32> to vector<1x128xf32>
    %c0 = arith.constant 0 : index
    %c0_6 = arith.constant 0 : index
    %72 = vector.load %arg0[%c0, %c0_6] : memref<8x512xf32, #tpu.memory_space<vmem>>, vector<8x512xf32>
    %c0_7 = arith.constant 0 : index
    %c0_8 = arith.constant 0 : index
    %73 = vector.load %arg1[%c0_7, %c0_8] : memref<16x101xf32, #tpu.memory_space<vmem>>, vector<16x8xf32>
    %c0_9 = arith.constant 0 : index
    %c8 = arith.constant 8 : index
    %74 = vector.load %arg1[%c0_9, %c8] : memref<16x101xf32, #tpu.memory_space<vmem>>, vector<16x1xf32>
    %75 = vector.extract_strided_slice %73 {offsets = [0, 0], sizes = [16, 1], strides = [1, 1]} : vector<16x8xf32> to vector<16x1xf32>
    %76 = vector.extract_strided_slice %72 {offsets = [0, 0], sizes = [1, 512], strides = [1, 1]} : vector<8x512xf32> to vector<1x512xf32>
    %77 = vector.broadcast %75 : vector<16x1xf32> to vector<16x512xf32>
    %78 = vector.broadcast %76 : vector<1x512xf32> to vector<16x512xf32>
    %79 = arith.mulf %77, %78 : vector<16x512xf32>
    %80 = vector.extract_strided_slice %73 {offsets = [0, 1], sizes = [16, 1], strides = [1, 1]} : vector<16x8xf32> to vector<16x1xf32>
    %81 = vector.extract_strided_slice %72 {offsets = [1, 0], sizes = [1, 512], strides = [1, 1]} : vector<8x512xf32> to vector<1x512xf32>
    %82 = vector.broadcast %80 : vector<16x1xf32> to vector<16x512xf32>
    %83 = vector.broadcast %81 : vector<1x512xf32> to vector<16x512xf32>
    %84 = arith.mulf %82, %83 : vector<16x512xf32>
    %85 = vector.extract_strided_slice %73 {offsets = [0, 2], sizes = [16, 1], strides = [1, 1]} : vector<16x8xf32> to vector<16x1xf32>
    %86 = vector.extract_strided_slice %72 {offsets = [2, 0], sizes = [1, 512], strides = [1, 1]} : vector<8x512xf32> to vector<1x512xf32>
    %87 = vector.broadcast %85 : vector<16x1xf32> to vector<16x512xf32>
    %88 = vector.broadcast %86 : vector<1x512xf32> to vector<16x512xf32>
    %89 = arith.mulf %87, %88 : vector<16x512xf32>
    %90 = vector.extract_strided_slice %73 {offsets = [0, 3], sizes = [16, 1], strides = [1, 1]} : vector<16x8xf32> to vector<16x1xf32>
    %91 = vector.extract_strided_slice %72 {offsets = [3, 0], sizes = [1, 512], strides = [1, 1]} : vector<8x512xf32> to vector<1x512xf32>
    %92 = vector.broadcast %90 : vector<16x1xf32> to vector<16x512xf32>
    %93 = vector.broadcast %91 : vector<1x512xf32> to vector<16x512xf32>
    %94 = arith.mulf %92, %93 : vector<16x512xf32>
    %95 = vector.extract_strided_slice %73 {offsets = [0, 4], sizes = [16, 1], strides = [1, 1]} : vector<16x8xf32> to vector<16x1xf32>
    %96 = vector.extract_strided_slice %72 {offsets = [4, 0], sizes = [1, 512], strides = [1, 1]} : vector<8x512xf32> to vector<1x512xf32>
    %97 = vector.broadcast %95 : vector<16x1xf32> to vector<16x512xf32>
    %98 = vector.broadcast %96 : vector<1x512xf32> to vector<16x512xf32>
    %99 = arith.mulf %97, %98 : vector<16x512xf32>
    %100 = arith.addf %79, %99 : vector<16x512xf32>
    %101 = vector.extract_strided_slice %73 {offsets = [0, 5], sizes = [16, 1], strides = [1, 1]} : vector<16x8xf32> to vector<16x1xf32>
    %102 = vector.extract_strided_slice %72 {offsets = [5, 0], sizes = [1, 512], strides = [1, 1]} : vector<8x512xf32> to vector<1x512xf32>
    %103 = vector.broadcast %101 : vector<16x1xf32> to vector<16x512xf32>
    %104 = vector.broadcast %102 : vector<1x512xf32> to vector<16x512xf32>
    %105 = arith.mulf %103, %104 : vector<16x512xf32>
    %106 = arith.addf %84, %105 : vector<16x512xf32>
    %107 = vector.extract_strided_slice %73 {offsets = [0, 6], sizes = [16, 1], strides = [1, 1]} : vector<16x8xf32> to vector<16x1xf32>
    %108 = vector.extract_strided_slice %72 {offsets = [6, 0], sizes = [1, 512], strides = [1, 1]} : vector<8x512xf32> to vector<1x512xf32>
    %109 = vector.broadcast %107 : vector<16x1xf32> to vector<16x512xf32>
    %110 = vector.broadcast %108 : vector<1x512xf32> to vector<16x512xf32>
    %111 = arith.mulf %109, %110 : vector<16x512xf32>
    %112 = arith.addf %89, %111 : vector<16x512xf32>
    %113 = vector.extract_strided_slice %73 {offsets = [0, 7], sizes = [16, 1], strides = [1, 1]} : vector<16x8xf32> to vector<16x1xf32>
    %114 = vector.extract_strided_slice %72 {offsets = [7, 0], sizes = [1, 512], strides = [1, 1]} : vector<8x512xf32> to vector<1x512xf32>
    %115 = vector.broadcast %113 : vector<16x1xf32> to vector<16x512xf32>
    %116 = vector.broadcast %114 : vector<1x512xf32> to vector<16x512xf32>
    %117 = arith.mulf %115, %116 : vector<16x512xf32>
    %118 = arith.addf %94, %117 : vector<16x512xf32>
    %119 = arith.addf %100, %106 : vector<16x512xf32>
    %120 = arith.addf %112, %118 : vector<16x512xf32>
    %121 = arith.addf %119, %120 : vector<16x512xf32>
    %122 = vector.broadcast %74 : vector<16x1xf32> to vector<16x512xf32>
    %123 = arith.addf %121, %122 : vector<16x512xf32>
    %cst = arith.constant 0.000000e+00 : f32
    %124 = vector.broadcast %cst : f32 to vector<16x512xf32>
    %125 = arith.maximumf %123, %124 : vector<16x512xf32>
    %c0_10 = arith.constant 0 : index
    %c9 = arith.constant 9 : index
    %126 = vector.load %arg1[%c0_10, %c9] : memref<16x101xf32, #tpu.memory_space<vmem>>, vector<16x9xf32>
    %c0_11 = arith.constant 0 : index
    %c18 = arith.constant 18 : index
    %127 = vector.load %arg1[%c0_11, %c18] : memref<16x101xf32, #tpu.memory_space<vmem>>, vector<16x1xf32>
    %c17_i32 = arith.constant 17 : i32
    %128 = tpu.dynamic_rotate %125 by %c17_i32 dim 1 : vector<16x512xf32>, i32 -> vector<16x512xf32>
    %129 = vector.broadcast %26 : vector<1x512xf32> to vector<16x512xf32>
    %130 = arith.mulf %128, %129 : vector<16x512xf32>
    %131 = vector.extract_strided_slice %126 {offsets = [0, 0], sizes = [16, 1], strides = [1, 1]} : vector<16x9xf32> to vector<16x1xf32>
    %132 = vector.broadcast %131 : vector<16x1xf32> to vector<16x512xf32>
    %133 = arith.mulf %130, %132 : vector<16x512xf32>
    %c16_i32 = arith.constant 16 : i32
    %134 = tpu.dynamic_rotate %125 by %c16_i32 dim 1 : vector<16x512xf32>, i32 -> vector<16x512xf32>
    %135 = vector.broadcast %28 : vector<1x512xf32> to vector<16x512xf32>
    %136 = arith.mulf %134, %135 : vector<16x512xf32>
    %137 = vector.extract_strided_slice %126 {offsets = [0, 1], sizes = [16, 1], strides = [1, 1]} : vector<16x9xf32> to vector<16x1xf32>
    %138 = vector.broadcast %137 : vector<16x1xf32> to vector<16x512xf32>
    %139 = arith.mulf %136, %138 : vector<16x512xf32>
    %c15_i32_12 = arith.constant 15 : i32
    %140 = tpu.dynamic_rotate %125 by %c15_i32_12 dim 1 : vector<16x512xf32>, i32 -> vector<16x512xf32>
    %141 = vector.broadcast %31 : vector<1x512xf32> to vector<16x512xf32>
    %142 = arith.mulf %140, %141 : vector<16x512xf32>
    %143 = vector.extract_strided_slice %126 {offsets = [0, 2], sizes = [16, 1], strides = [1, 1]} : vector<16x9xf32> to vector<16x1xf32>
    %144 = vector.broadcast %143 : vector<16x1xf32> to vector<16x512xf32>
    %145 = arith.mulf %142, %144 : vector<16x512xf32>
    %c1_i32_13 = arith.constant 1 : i32
    %146 = tpu.dynamic_rotate %125 by %c1_i32_13 dim 1 : vector<16x512xf32>, i32 -> vector<16x512xf32>
    %147 = vector.broadcast %33 : vector<1x512xf32> to vector<16x512xf32>
    %148 = arith.mulf %146, %147 : vector<16x512xf32>
    %149 = vector.extract_strided_slice %126 {offsets = [0, 3], sizes = [16, 1], strides = [1, 1]} : vector<16x9xf32> to vector<16x1xf32>
    %150 = vector.broadcast %149 : vector<16x1xf32> to vector<16x512xf32>
    %151 = arith.mulf %148, %150 : vector<16x512xf32>
    %152 = arith.addf %133, %151 : vector<16x512xf32>
    %153 = vector.extract_strided_slice %126 {offsets = [0, 4], sizes = [16, 1], strides = [1, 1]} : vector<16x9xf32> to vector<16x1xf32>
    %154 = vector.broadcast %153 : vector<16x1xf32> to vector<16x512xf32>
    %155 = arith.mulf %125, %154 : vector<16x512xf32>
    %156 = arith.addf %139, %155 : vector<16x512xf32>
    %c511_i32 = arith.constant 511 : i32
    %157 = tpu.dynamic_rotate %125 by %c511_i32 dim 1 : vector<16x512xf32>, i32 -> vector<16x512xf32>
    %158 = vector.broadcast %35 : vector<1x512xf32> to vector<16x512xf32>
    %159 = arith.mulf %157, %158 : vector<16x512xf32>
    %160 = vector.extract_strided_slice %126 {offsets = [0, 5], sizes = [16, 1], strides = [1, 1]} : vector<16x9xf32> to vector<16x1xf32>
    %161 = vector.broadcast %160 : vector<16x1xf32> to vector<16x512xf32>
    %162 = arith.mulf %159, %161 : vector<16x512xf32>
    %163 = arith.addf %145, %162 : vector<16x512xf32>
    %c497_i32 = arith.constant 497 : i32
    %164 = tpu.dynamic_rotate %125 by %c497_i32 dim 1 : vector<16x512xf32>, i32 -> vector<16x512xf32>
    %165 = vector.broadcast %38 : vector<1x512xf32> to vector<16x512xf32>
    %166 = arith.mulf %164, %165 : vector<16x512xf32>
    %167 = vector.extract_strided_slice %126 {offsets = [0, 6], sizes = [16, 1], strides = [1, 1]} : vector<16x9xf32> to vector<16x1xf32>
    %168 = vector.broadcast %167 : vector<16x1xf32> to vector<16x512xf32>
    %169 = arith.mulf %166, %168 : vector<16x512xf32>
    %170 = arith.addf %152, %169 : vector<16x512xf32>
    %c496_i32 = arith.constant 496 : i32
    %171 = tpu.dynamic_rotate %125 by %c496_i32 dim 1 : vector<16x512xf32>, i32 -> vector<16x512xf32>
    %172 = vector.broadcast %40 : vector<1x512xf32> to vector<16x512xf32>
    %173 = arith.mulf %171, %172 : vector<16x512xf32>
    %174 = vector.extract_strided_slice %126 {offsets = [0, 7], sizes = [16, 1], strides = [1, 1]} : vector<16x9xf32> to vector<16x1xf32>
    %175 = vector.broadcast %174 : vector<16x1xf32> to vector<16x512xf32>
    %176 = arith.mulf %173, %175 : vector<16x512xf32>
    %177 = arith.addf %156, %176 : vector<16x512xf32>
    %c495_i32 = arith.constant 495 : i32
    %178 = tpu.dynamic_rotate %125 by %c495_i32 dim 1 : vector<16x512xf32>, i32 -> vector<16x512xf32>
    %179 = vector.broadcast %43 : vector<1x512xf32> to vector<16x512xf32>
    %180 = arith.mulf %178, %179 : vector<16x512xf32>
    %181 = vector.extract_strided_slice %126 {offsets = [0, 8], sizes = [16, 1], strides = [1, 1]} : vector<16x9xf32> to vector<16x1xf32>
    %182 = vector.broadcast %181 : vector<16x1xf32> to vector<16x512xf32>
    %183 = arith.mulf %180, %182 : vector<16x512xf32>
    %184 = arith.addf %163, %183 : vector<16x512xf32>
    %185 = arith.addf %170, %177 : vector<16x512xf32>
    %186 = arith.addf %185, %184 : vector<16x512xf32>
    %187 = vector.broadcast %127 : vector<16x1xf32> to vector<16x512xf32>
    %188 = arith.addf %186, %187 : vector<16x512xf32>
    %c0_14 = arith.constant 0 : index
    %c19 = arith.constant 19 : index
    %189 = vector.load %arg1[%c0_14, %c19] : memref<16x101xf32, #tpu.memory_space<vmem>>, vector<16x1xf32>
    %190 = vector.broadcast %189 : vector<16x1xf32> to vector<16x512xf32>
    %191 = arith.mulf %125, %190 : vector<16x512xf32>
    %192 = arith.addf %188, %191 : vector<16x512xf32>
    %c0_15 = arith.constant 0 : index
    %c20 = arith.constant 20 : index
    %193 = vector.load %arg1[%c0_15, %c20] : memref<16x101xf32, #tpu.memory_space<vmem>>, vector<16x1xf32>
    %194 = vector.broadcast %193 : vector<16x1xf32> to vector<16x512xf32>
    %195 = arith.addf %192, %194 : vector<16x512xf32>
    %cst_16 = arith.constant 0.000000e+00 : f32
    %196 = vector.broadcast %cst_16 : f32 to vector<16x512xf32>
    %197 = arith.maximumf %195, %196 : vector<16x512xf32>
    %c0_17 = arith.constant 0 : index
    %c21 = arith.constant 21 : index
    %198 = vector.load %arg1[%c0_17, %c21] : memref<16x101xf32, #tpu.memory_space<vmem>>, vector<16x9xf32>
    %c0_18 = arith.constant 0 : index
    %c30 = arith.constant 30 : index
    %199 = vector.load %arg1[%c0_18, %c30] : memref<16x101xf32, #tpu.memory_space<vmem>>, vector<16x1xf32>
    %c17_i32_19 = arith.constant 17 : i32
    %200 = tpu.dynamic_rotate %197 by %c17_i32_19 dim 1 : vector<16x512xf32>, i32 -> vector<16x512xf32>
    %201 = vector.broadcast %26 : vector<1x512xf32> to vector<16x512xf32>
    %202 = arith.mulf %200, %201 : vector<16x512xf32>
    %203 = vector.extract_strided_slice %198 {offsets = [0, 0], sizes = [16, 1], strides = [1, 1]} : vector<16x9xf32> to vector<16x1xf32>
    %204 = vector.broadcast %203 : vector<16x1xf32> to vector<16x512xf32>
    %205 = arith.mulf %202, %204 : vector<16x512xf32>
    %c16_i32_20 = arith.constant 16 : i32
    %206 = tpu.dynamic_rotate %197 by %c16_i32_20 dim 1 : vector<16x512xf32>, i32 -> vector<16x512xf32>
    %207 = vector.broadcast %28 : vector<1x512xf32> to vector<16x512xf32>
    %208 = arith.mulf %206, %207 : vector<16x512xf32>
    %209 = vector.extract_strided_slice %198 {offsets = [0, 1], sizes = [16, 1], strides = [1, 1]} : vector<16x9xf32> to vector<16x1xf32>
    %210 = vector.broadcast %209 : vector<16x1xf32> to vector<16x512xf32>
    %211 = arith.mulf %208, %210 : vector<16x512xf32>
    %c15_i32_21 = arith.constant 15 : i32
    %212 = tpu.dynamic_rotate %197 by %c15_i32_21 dim 1 : vector<16x512xf32>, i32 -> vector<16x512xf32>
    %213 = vector.broadcast %31 : vector<1x512xf32> to vector<16x512xf32>
    %214 = arith.mulf %212, %213 : vector<16x512xf32>
    %215 = vector.extract_strided_slice %198 {offsets = [0, 2], sizes = [16, 1], strides = [1, 1]} : vector<16x9xf32> to vector<16x1xf32>
    %216 = vector.broadcast %215 : vector<16x1xf32> to vector<16x512xf32>
    %217 = arith.mulf %214, %216 : vector<16x512xf32>
    %c1_i32_22 = arith.constant 1 : i32
    %218 = tpu.dynamic_rotate %197 by %c1_i32_22 dim 1 : vector<16x512xf32>, i32 -> vector<16x512xf32>
    %219 = vector.broadcast %33 : vector<1x512xf32> to vector<16x512xf32>
    %220 = arith.mulf %218, %219 : vector<16x512xf32>
    %221 = vector.extract_strided_slice %198 {offsets = [0, 3], sizes = [16, 1], strides = [1, 1]} : vector<16x9xf32> to vector<16x1xf32>
    %222 = vector.broadcast %221 : vector<16x1xf32> to vector<16x512xf32>
    %223 = arith.mulf %220, %222 : vector<16x512xf32>
    %224 = arith.addf %205, %223 : vector<16x512xf32>
    %225 = vector.extract_strided_slice %198 {offsets = [0, 4], sizes = [16, 1], strides = [1, 1]} : vector<16x9xf32> to vector<16x1xf32>
    %226 = vector.broadcast %225 : vector<16x1xf32> to vector<16x512xf32>
    %227 = arith.mulf %197, %226 : vector<16x512xf32>
    %228 = arith.addf %211, %227 : vector<16x512xf32>
    %c511_i32_23 = arith.constant 511 : i32
    %229 = tpu.dynamic_rotate %197 by %c511_i32_23 dim 1 : vector<16x512xf32>, i32 -> vector<16x512xf32>
    %230 = vector.broadcast %35 : vector<1x512xf32> to vector<16x512xf32>
    %231 = arith.mulf %229, %230 : vector<16x512xf32>
    %232 = vector.extract_strided_slice %198 {offsets = [0, 5], sizes = [16, 1], strides = [1, 1]} : vector<16x9xf32> to vector<16x1xf32>
    %233 = vector.broadcast %232 : vector<16x1xf32> to vector<16x512xf32>
    %234 = arith.mulf %231, %233 : vector<16x512xf32>
    %235 = arith.addf %217, %234 : vector<16x512xf32>
    %c497_i32_24 = arith.constant 497 : i32
    %236 = tpu.dynamic_rotate %197 by %c497_i32_24 dim 1 : vector<16x512xf32>, i32 -> vector<16x512xf32>
    %237 = vector.broadcast %38 : vector<1x512xf32> to vector<16x512xf32>
    %238 = arith.mulf %236, %237 : vector<16x512xf32>
    %239 = vector.extract_strided_slice %198 {offsets = [0, 6], sizes = [16, 1], strides = [1, 1]} : vector<16x9xf32> to vector<16x1xf32>
    %240 = vector.broadcast %239 : vector<16x1xf32> to vector<16x512xf32>
    %241 = arith.mulf %238, %240 : vector<16x512xf32>
    %242 = arith.addf %224, %241 : vector<16x512xf32>
    %c496_i32_25 = arith.constant 496 : i32
    %243 = tpu.dynamic_rotate %197 by %c496_i32_25 dim 1 : vector<16x512xf32>, i32 -> vector<16x512xf32>
    %244 = vector.broadcast %40 : vector<1x512xf32> to vector<16x512xf32>
    %245 = arith.mulf %243, %244 : vector<16x512xf32>
    %246 = vector.extract_strided_slice %198 {offsets = [0, 7], sizes = [16, 1], strides = [1, 1]} : vector<16x9xf32> to vector<16x1xf32>
    %247 = vector.broadcast %246 : vector<16x1xf32> to vector<16x512xf32>
    %248 = arith.mulf %245, %247 : vector<16x512xf32>
    %249 = arith.addf %228, %248 : vector<16x512xf32>
    %c495_i32_26 = arith.constant 495 : i32
    %250 = tpu.dynamic_rotate %197 by %c495_i32_26 dim 1 : vector<16x512xf32>, i32 -> vector<16x512xf32>
    %251 = vector.broadcast %43 : vector<1x512xf32> to vector<16x512xf32>
    %252 = arith.mulf %250, %251 : vector<16x512xf32>
    %253 = vector.extract_strided_slice %198 {offsets = [0, 8], sizes = [16, 1], strides = [1, 1]} : vector<16x9xf32> to vector<16x1xf32>
    %254 = vector.broadcast %253 : vector<16x1xf32> to vector<16x512xf32>
    %255 = arith.mulf %252, %254 : vector<16x512xf32>
    %256 = arith.addf %235, %255 : vector<16x512xf32>
    %257 = arith.addf %242, %249 : vector<16x512xf32>
    %258 = arith.addf %257, %256 : vector<16x512xf32>
    %259 = vector.broadcast %199 : vector<16x1xf32> to vector<16x512xf32>
    %260 = arith.addf %258, %259 : vector<16x512xf32>
    %c0_27 = arith.constant 0 : index
    %c82 = arith.constant 82 : index
    %261 = vector.load %arg1[%c0_27, %c82] : memref<16x101xf32, #tpu.memory_space<vmem>>, vector<8x9xf32>
    %c0_28 = arith.constant 0 : index
    %c91 = arith.constant 91 : index
    %262 = vector.load %arg1[%c0_28, %c91] : memref<16x101xf32, #tpu.memory_space<vmem>>, vector<8x1xf32>
    %c17_i32_29 = arith.constant 17 : i32
    %263 = tpu.dynamic_rotate %72 by %c17_i32_29 dim 1 : vector<8x512xf32>, i32 -> vector<8x512xf32>
    %264 = vector.broadcast %26 : vector<1x512xf32> to vector<8x512xf32>
    %265 = arith.mulf %263, %264 : vector<8x512xf32>
    %266 = vector.extract_strided_slice %261 {offsets = [0, 0], sizes = [8, 1], strides = [1, 1]} : vector<8x9xf32> to vector<8x1xf32>
    %267 = vector.broadcast %266 : vector<8x1xf32> to vector<8x512xf32>
    %268 = arith.mulf %265, %267 : vector<8x512xf32>
    %c16_i32_30 = arith.constant 16 : i32
    %269 = tpu.dynamic_rotate %72 by %c16_i32_30 dim 1 : vector<8x512xf32>, i32 -> vector<8x512xf32>
    %270 = vector.broadcast %28 : vector<1x512xf32> to vector<8x512xf32>
    %271 = arith.mulf %269, %270 : vector<8x512xf32>
    %272 = vector.extract_strided_slice %261 {offsets = [0, 1], sizes = [8, 1], strides = [1, 1]} : vector<8x9xf32> to vector<8x1xf32>
    %273 = vector.broadcast %272 : vector<8x1xf32> to vector<8x512xf32>
    %274 = arith.mulf %271, %273 : vector<8x512xf32>
    %c15_i32_31 = arith.constant 15 : i32
    %275 = tpu.dynamic_rotate %72 by %c15_i32_31 dim 1 : vector<8x512xf32>, i32 -> vector<8x512xf32>
    %276 = vector.broadcast %31 : vector<1x512xf32> to vector<8x512xf32>
    %277 = arith.mulf %275, %276 : vector<8x512xf32>
    %278 = vector.extract_strided_slice %261 {offsets = [0, 2], sizes = [8, 1], strides = [1, 1]} : vector<8x9xf32> to vector<8x1xf32>
    %279 = vector.broadcast %278 : vector<8x1xf32> to vector<8x512xf32>
    %280 = arith.mulf %277, %279 : vector<8x512xf32>
    %c1_i32_32 = arith.constant 1 : i32
    %281 = tpu.dynamic_rotate %72 by %c1_i32_32 dim 1 : vector<8x512xf32>, i32 -> vector<8x512xf32>
    %282 = vector.broadcast %33 : vector<1x512xf32> to vector<8x512xf32>
    %283 = arith.mulf %281, %282 : vector<8x512xf32>
    %284 = vector.extract_strided_slice %261 {offsets = [0, 3], sizes = [8, 1], strides = [1, 1]} : vector<8x9xf32> to vector<8x1xf32>
    %285 = vector.broadcast %284 : vector<8x1xf32> to vector<8x512xf32>
    %286 = arith.mulf %283, %285 : vector<8x512xf32>
    %287 = arith.addf %268, %286 : vector<8x512xf32>
    %288 = vector.extract_strided_slice %261 {offsets = [0, 4], sizes = [8, 1], strides = [1, 1]} : vector<8x9xf32> to vector<8x1xf32>
    %289 = vector.broadcast %288 : vector<8x1xf32> to vector<8x512xf32>
    %290 = arith.mulf %72, %289 : vector<8x512xf32>
    %291 = arith.addf %274, %290 : vector<8x512xf32>
    %c511_i32_33 = arith.constant 511 : i32
    %292 = tpu.dynamic_rotate %72 by %c511_i32_33 dim 1 : vector<8x512xf32>, i32 -> vector<8x512xf32>
    %293 = vector.broadcast %35 : vector<1x512xf32> to vector<8x512xf32>
    %294 = arith.mulf %292, %293 : vector<8x512xf32>
    %295 = vector.extract_strided_slice %261 {offsets = [0, 5], sizes = [8, 1], strides = [1, 1]} : vector<8x9xf32> to vector<8x1xf32>
    %296 = vector.broadcast %295 : vector<8x1xf32> to vector<8x512xf32>
    %297 = arith.mulf %294, %296 : vector<8x512xf32>
    %298 = arith.addf %280, %297 : vector<8x512xf32>
    %c497_i32_34 = arith.constant 497 : i32
    %299 = tpu.dynamic_rotate %72 by %c497_i32_34 dim 1 : vector<8x512xf32>, i32 -> vector<8x512xf32>
    %300 = vector.broadcast %38 : vector<1x512xf32> to vector<8x512xf32>
    %301 = arith.mulf %299, %300 : vector<8x512xf32>
    %302 = vector.extract_strided_slice %261 {offsets = [0, 6], sizes = [8, 1], strides = [1, 1]} : vector<8x9xf32> to vector<8x1xf32>
    %303 = vector.broadcast %302 : vector<8x1xf32> to vector<8x512xf32>
    %304 = arith.mulf %301, %303 : vector<8x512xf32>
    %305 = arith.addf %287, %304 : vector<8x512xf32>
    %c496_i32_35 = arith.constant 496 : i32
    %306 = tpu.dynamic_rotate %72 by %c496_i32_35 dim 1 : vector<8x512xf32>, i32 -> vector<8x512xf32>
    %307 = vector.broadcast %40 : vector<1x512xf32> to vector<8x512xf32>
    %308 = arith.mulf %306, %307 : vector<8x512xf32>
    %309 = vector.extract_strided_slice %261 {offsets = [0, 7], sizes = [8, 1], strides = [1, 1]} : vector<8x9xf32> to vector<8x1xf32>
    %310 = vector.broadcast %309 : vector<8x1xf32> to vector<8x512xf32>
    %311 = arith.mulf %308, %310 : vector<8x512xf32>
    %312 = arith.addf %291, %311 : vector<8x512xf32>
    %c495_i32_36 = arith.constant 495 : i32
    %313 = tpu.dynamic_rotate %72 by %c495_i32_36 dim 1 : vector<8x512xf32>, i32 -> vector<8x512xf32>
    %314 = vector.broadcast %43 : vector<1x512xf32> to vector<8x512xf32>
    %315 = arith.mulf %313, %314 : vector<8x512xf32>
    %316 = vector.extract_strided_slice %261 {offsets = [0, 8], sizes = [8, 1], strides = [1, 1]} : vector<8x9xf32> to vector<8x1xf32>
    %317 = vector.broadcast %316 : vector<8x1xf32> to vector<8x512xf32>
    %318 = arith.mulf %315, %317 : vector<8x512xf32>
    %319 = arith.addf %298, %318 : vector<8x512xf32>
    %320 = arith.addf %305, %312 : vector<8x512xf32>
    %321 = arith.addf %320, %319 : vector<8x512xf32>
    %322 = vector.broadcast %262 : vector<8x1xf32> to vector<8x512xf32>
    %323 = arith.addf %321, %322 : vector<8x512xf32>
    %324 = tpu.concatenate %260, %323 in 0 : vector<16x512xf32>, vector<8x512xf32> -> vector<24x512xf32>
    %c256_i32 = arith.constant 256 : i32
    %325 = vector.broadcast %c256_i32 : i32 to vector<1x128xi32>
    %326 = arith.muli %9, %325 : vector<1x128xi32>
    %c2_i32 = arith.constant 2 : i32
    %327 = vector.broadcast %c2_i32 : i32 to vector<1x128xi32>
    %328 = arith.muli %327, %13 : vector<1x128xi32>
    %c16_i32_37 = arith.constant 16 : i32
    %329 = vector.broadcast %c16_i32_37 : i32 to vector<1x128xi32>
    %330 = arith.muli %328, %329 : vector<1x128xi32>
    %331 = arith.addi %326, %330 : vector<1x128xi32>
    %c2_i32_38 = arith.constant 2 : i32
    %332 = vector.broadcast %c2_i32_38 : i32 to vector<1x128xi32>
    %333 = arith.muli %332, %15 : vector<1x128xi32>
    %334 = arith.addi %331, %333 : vector<1x128xi32>
    %335 = tpu.iota {dimensions = array<i32: 0>} : vector<128x1xi32>
    %c0_i32 = arith.constant 0 : i32
    %336 = vector.broadcast %c0_i32 : i32 to vector<128x1xi32>
    %337 = arith.addi %335, %336 : vector<128x1xi32>
    %338 = vector.broadcast %337 : vector<128x1xi32> to vector<128x128xi32>
    %339 = vector.broadcast %334 : vector<1x128xi32> to vector<128x128xi32>
    %340 = arith.cmpi eq, %338, %339 : vector<128x128xi32>
    %341 = arith.extui %340 : vector<128x128xi1> to vector<128x128xi32>
    %342 = arith.sitofp %341 : vector<128x128xi32> to vector<128x128xf32>
    %343 = vector.extract_strided_slice %324 {offsets = [0, 0], sizes = [24, 128], strides = [1, 1]} : vector<24x512xf32> to vector<24x128xf32>
    %cst_39 = arith.constant dense<0.000000e+00> : vector<24x128xf32>
    %344 = tpu.matmul %343, %342, %cst_39 {dimension_numbers = #tpu.dot_dimension_numbers<[1], [0], [0], [1], [0, 0, 1, 1], [], []>} : vector<24x128xf32>, vector<128x128xf32>, vector<24x128xf32> -> vector<24x128xf32>
    %345 = tpu.iota {dimensions = array<i32: 0>} : vector<128x1xi32>
    %c128_i32 = arith.constant 128 : i32
    %346 = vector.broadcast %c128_i32 : i32 to vector<128x1xi32>
    %347 = arith.addi %345, %346 : vector<128x1xi32>
    %348 = vector.broadcast %347 : vector<128x1xi32> to vector<128x128xi32>
    %349 = vector.broadcast %334 : vector<1x128xi32> to vector<128x128xi32>
    %350 = arith.cmpi eq, %348, %349 : vector<128x128xi32>
    %351 = arith.extui %350 : vector<128x128xi1> to vector<128x128xi32>
    %352 = arith.sitofp %351 : vector<128x128xi32> to vector<128x128xf32>
    %353 = vector.extract_strided_slice %324 {offsets = [0, 128], sizes = [24, 128], strides = [1, 1]} : vector<24x512xf32> to vector<24x128xf32>
    %cst_40 = arith.constant dense<0.000000e+00> : vector<24x128xf32>
    %354 = tpu.matmul %353, %352, %cst_40 {dimension_numbers = #tpu.dot_dimension_numbers<[1], [0], [0], [1], [0, 0, 1, 1], [], []>} : vector<24x128xf32>, vector<128x128xf32>, vector<24x128xf32> -> vector<24x128xf32>
    %355 = arith.addf %344, %354 : vector<24x128xf32>
    %356 = tpu.iota {dimensions = array<i32: 0>} : vector<128x1xi32>
    %c256_i32_41 = arith.constant 256 : i32
    %357 = vector.broadcast %c256_i32_41 : i32 to vector<128x1xi32>
    %358 = arith.addi %356, %357 : vector<128x1xi32>
    %359 = vector.broadcast %358 : vector<128x1xi32> to vector<128x128xi32>
    %360 = vector.broadcast %334 : vector<1x128xi32> to vector<128x128xi32>
    %361 = arith.cmpi eq, %359, %360 : vector<128x128xi32>
    %362 = arith.extui %361 : vector<128x128xi1> to vector<128x128xi32>
    %363 = arith.sitofp %362 : vector<128x128xi32> to vector<128x128xf32>
    %364 = vector.extract_strided_slice %324 {offsets = [0, 256], sizes = [24, 128], strides = [1, 1]} : vector<24x512xf32> to vector<24x128xf32>
    %cst_42 = arith.constant dense<0.000000e+00> : vector<24x128xf32>
    %365 = tpu.matmul %364, %363, %cst_42 {dimension_numbers = #tpu.dot_dimension_numbers<[1], [0], [0], [1], [0, 0, 1, 1], [], []>} : vector<24x128xf32>, vector<128x128xf32>, vector<24x128xf32> -> vector<24x128xf32>
    %366 = arith.addf %355, %365 : vector<24x128xf32>
    %367 = tpu.iota {dimensions = array<i32: 0>} : vector<128x1xi32>
    %c384_i32 = arith.constant 384 : i32
    %368 = vector.broadcast %c384_i32 : i32 to vector<128x1xi32>
    %369 = arith.addi %367, %368 : vector<128x1xi32>
    %370 = vector.broadcast %369 : vector<128x1xi32> to vector<128x128xi32>
    %371 = vector.broadcast %334 : vector<1x128xi32> to vector<128x128xi32>
    %372 = arith.cmpi eq, %370, %371 : vector<128x128xi32>
    %373 = arith.extui %372 : vector<128x128xi1> to vector<128x128xi32>
    %374 = arith.sitofp %373 : vector<128x128xi32> to vector<128x128xf32>
    %375 = vector.extract_strided_slice %324 {offsets = [0, 384], sizes = [24, 128], strides = [1, 1]} : vector<24x512xf32> to vector<24x128xf32>
    %cst_43 = arith.constant dense<0.000000e+00> : vector<24x128xf32>
    %376 = tpu.matmul %375, %374, %cst_43 {dimension_numbers = #tpu.dot_dimension_numbers<[1], [0], [0], [1], [0, 0, 1, 1], [], []>} : vector<24x128xf32>, vector<128x128xf32>, vector<24x128xf32> -> vector<24x128xf32>
    %377 = arith.addf %366, %376 : vector<24x128xf32>
    %378 = vector.extract_strided_slice %377 {offsets = [0, 0], sizes = [16, 128], strides = [1, 1]} : vector<24x128xf32> to vector<16x128xf32>
    %379 = vector.extract_strided_slice %377 {offsets = [16, 0], sizes = [8, 128], strides = [1, 1]} : vector<24x128xf32> to vector<8x128xf32>
    %380 = tpu.iota {dimensions = array<i32: 0>} : vector<128x1xi32>
    %c6_i32_44 = arith.constant 6 : i32
    %381 = vector.broadcast %c6_i32_44 : i32 to vector<128x1xi32>
    %382 = arith.shrsi %380, %381 : vector<128x1xi32>
    %383 = tpu.iota {dimensions = array<i32: 1>} : vector<1x2xi32>
    %384 = vector.broadcast %382 : vector<128x1xi32> to vector<128x2xi32>
    %385 = vector.broadcast %383 : vector<1x2xi32> to vector<128x2xi32>
    %386 = arith.cmpi eq, %384, %385 : vector<128x2xi32>
    %387 = arith.extui %386 : vector<128x2xi1> to vector<128x2xi32>
    %388 = arith.sitofp %387 : vector<128x2xi32> to vector<128x2xf32>
    %cst_45 = arith.constant 1.562500e-02 : f32
    %389 = vector.broadcast %cst_45 : f32 to vector<128x2xf32>
    %390 = arith.mulf %388, %389 : vector<128x2xf32>
    %cst_46 = arith.constant dense<0.000000e+00> : vector<16x2xf32>
    %391 = tpu.matmul %378, %390, %cst_46 {dimension_numbers = #tpu.dot_dimension_numbers<[1], [0], [0], [1], [0, 0, 1, 1], [], []>} : vector<16x128xf32>, vector<128x2xf32>, vector<16x2xf32> -> vector<16x2xf32>
    %c0_47 = arith.constant 0 : index
    %c31 = arith.constant 31 : index
    %392 = vector.load %arg1[%c0_47, %c31] : memref<16x101xf32, #tpu.memory_space<vmem>>, vector<4x16xf32>
    %c0_48 = arith.constant 0 : index
    %c47 = arith.constant 47 : index
    %393 = vector.load %arg1[%c0_48, %c47] : memref<16x101xf32, #tpu.memory_space<vmem>>, vector<4x1xf32>
    %394 = vector.extract_strided_slice %392 {offsets = [0, 0], sizes = [4, 1], strides = [1, 1]} : vector<4x16xf32> to vector<4x1xf32>
    %395 = vector.extract_strided_slice %391 {offsets = [0, 0], sizes = [1, 2], strides = [1, 1]} : vector<16x2xf32> to vector<1x2xf32>
    %396 = vector.broadcast %394 : vector<4x1xf32> to vector<4x2xf32>
    %397 = vector.broadcast %395 : vector<1x2xf32> to vector<4x2xf32>
    %398 = arith.mulf %396, %397 : vector<4x2xf32>
    %399 = vector.extract_strided_slice %392 {offsets = [0, 1], sizes = [4, 1], strides = [1, 1]} : vector<4x16xf32> to vector<4x1xf32>
    %400 = vector.extract_strided_slice %391 {offsets = [1, 0], sizes = [1, 2], strides = [1, 1]} : vector<16x2xf32> to vector<1x2xf32>
    %401 = vector.broadcast %399 : vector<4x1xf32> to vector<4x2xf32>
    %402 = vector.broadcast %400 : vector<1x2xf32> to vector<4x2xf32>
    %403 = arith.mulf %401, %402 : vector<4x2xf32>
    %404 = vector.extract_strided_slice %392 {offsets = [0, 2], sizes = [4, 1], strides = [1, 1]} : vector<4x16xf32> to vector<4x1xf32>
    %405 = vector.extract_strided_slice %391 {offsets = [2, 0], sizes = [1, 2], strides = [1, 1]} : vector<16x2xf32> to vector<1x2xf32>
    %406 = vector.broadcast %404 : vector<4x1xf32> to vector<4x2xf32>
    %407 = vector.broadcast %405 : vector<1x2xf32> to vector<4x2xf32>
    %408 = arith.mulf %406, %407 : vector<4x2xf32>
    %409 = vector.extract_strided_slice %392 {offsets = [0, 3], sizes = [4, 1], strides = [1, 1]} : vector<4x16xf32> to vector<4x1xf32>
    %410 = vector.extract_strided_slice %391 {offsets = [3, 0], sizes = [1, 2], strides = [1, 1]} : vector<16x2xf32> to vector<1x2xf32>
    %411 = vector.broadcast %409 : vector<4x1xf32> to vector<4x2xf32>
    %412 = vector.broadcast %410 : vector<1x2xf32> to vector<4x2xf32>
    %413 = arith.mulf %411, %412 : vector<4x2xf32>
    %414 = vector.extract_strided_slice %392 {offsets = [0, 4], sizes = [4, 1], strides = [1, 1]} : vector<4x16xf32> to vector<4x1xf32>
    %415 = vector.extract_strided_slice %391 {offsets = [4, 0], sizes = [1, 2], strides = [1, 1]} : vector<16x2xf32> to vector<1x2xf32>
    %416 = vector.broadcast %414 : vector<4x1xf32> to vector<4x2xf32>
    %417 = vector.broadcast %415 : vector<1x2xf32> to vector<4x2xf32>
    %418 = arith.mulf %416, %417 : vector<4x2xf32>
    %419 = arith.addf %398, %418 : vector<4x2xf32>
    %420 = vector.extract_strided_slice %392 {offsets = [0, 5], sizes = [4, 1], strides = [1, 1]} : vector<4x16xf32> to vector<4x1xf32>
    %421 = vector.extract_strided_slice %391 {offsets = [5, 0], sizes = [1, 2], strides = [1, 1]} : vector<16x2xf32> to vector<1x2xf32>
    %422 = vector.broadcast %420 : vector<4x1xf32> to vector<4x2xf32>
    %423 = vector.broadcast %421 : vector<1x2xf32> to vector<4x2xf32>
    %424 = arith.mulf %422, %423 : vector<4x2xf32>
    %425 = arith.addf %403, %424 : vector<4x2xf32>
    %426 = vector.extract_strided_slice %392 {offsets = [0, 6], sizes = [4, 1], strides = [1, 1]} : vector<4x16xf32> to vector<4x1xf32>
    %427 = vector.extract_strided_slice %391 {offsets = [6, 0], sizes = [1, 2], strides = [1, 1]} : vector<16x2xf32> to vector<1x2xf32>
    %428 = vector.broadcast %426 : vector<4x1xf32> to vector<4x2xf32>
    %429 = vector.broadcast %427 : vector<1x2xf32> to vector<4x2xf32>
    %430 = arith.mulf %428, %429 : vector<4x2xf32>
    %431 = arith.addf %408, %430 : vector<4x2xf32>
    %432 = vector.extract_strided_slice %392 {offsets = [0, 7], sizes = [4, 1], strides = [1, 1]} : vector<4x16xf32> to vector<4x1xf32>
    %433 = vector.extract_strided_slice %391 {offsets = [7, 0], sizes = [1, 2], strides = [1, 1]} : vector<16x2xf32> to vector<1x2xf32>
    %434 = vector.broadcast %432 : vector<4x1xf32> to vector<4x2xf32>
    %435 = vector.broadcast %433 : vector<1x2xf32> to vector<4x2xf32>
    %436 = arith.mulf %434, %435 : vector<4x2xf32>
    %437 = arith.addf %413, %436 : vector<4x2xf32>
    %438 = vector.extract_strided_slice %392 {offsets = [0, 8], sizes = [4, 1], strides = [1, 1]} : vector<4x16xf32> to vector<4x1xf32>
    %439 = vector.extract_strided_slice %391 {offsets = [8, 0], sizes = [1, 2], strides = [1, 1]} : vector<16x2xf32> to vector<1x2xf32>
    %440 = vector.broadcast %438 : vector<4x1xf32> to vector<4x2xf32>
    %441 = vector.broadcast %439 : vector<1x2xf32> to vector<4x2xf32>
    %442 = arith.mulf %440, %441 : vector<4x2xf32>
    %443 = arith.addf %419, %442 : vector<4x2xf32>
    %444 = vector.extract_strided_slice %392 {offsets = [0, 9], sizes = [4, 1], strides = [1, 1]} : vector<4x16xf32> to vector<4x1xf32>
    %445 = vector.extract_strided_slice %391 {offsets = [9, 0], sizes = [1, 2], strides = [1, 1]} : vector<16x2xf32> to vector<1x2xf32>
    %446 = vector.broadcast %444 : vector<4x1xf32> to vector<4x2xf32>
    %447 = vector.broadcast %445 : vector<1x2xf32> to vector<4x2xf32>
    %448 = arith.mulf %446, %447 : vector<4x2xf32>
    %449 = arith.addf %425, %448 : vector<4x2xf32>
    %450 = vector.extract_strided_slice %392 {offsets = [0, 10], sizes = [4, 1], strides = [1, 1]} : vector<4x16xf32> to vector<4x1xf32>
    %451 = vector.extract_strided_slice %391 {offsets = [10, 0], sizes = [1, 2], strides = [1, 1]} : vector<16x2xf32> to vector<1x2xf32>
    %452 = vector.broadcast %450 : vector<4x1xf32> to vector<4x2xf32>
    %453 = vector.broadcast %451 : vector<1x2xf32> to vector<4x2xf32>
    %454 = arith.mulf %452, %453 : vector<4x2xf32>
    %455 = arith.addf %431, %454 : vector<4x2xf32>
    %456 = vector.extract_strided_slice %392 {offsets = [0, 11], sizes = [4, 1], strides = [1, 1]} : vector<4x16xf32> to vector<4x1xf32>
    %457 = vector.extract_strided_slice %391 {offsets = [11, 0], sizes = [1, 2], strides = [1, 1]} : vector<16x2xf32> to vector<1x2xf32>
    %458 = vector.broadcast %456 : vector<4x1xf32> to vector<4x2xf32>
    %459 = vector.broadcast %457 : vector<1x2xf32> to vector<4x2xf32>
    %460 = arith.mulf %458, %459 : vector<4x2xf32>
    %461 = arith.addf %437, %460 : vector<4x2xf32>
    %462 = vector.extract_strided_slice %392 {offsets = [0, 12], sizes = [4, 1], strides = [1, 1]} : vector<4x16xf32> to vector<4x1xf32>
    %463 = vector.extract_strided_slice %391 {offsets = [12, 0], sizes = [1, 2], strides = [1, 1]} : vector<16x2xf32> to vector<1x2xf32>
    %464 = vector.broadcast %462 : vector<4x1xf32> to vector<4x2xf32>
    %465 = vector.broadcast %463 : vector<1x2xf32> to vector<4x2xf32>
    %466 = arith.mulf %464, %465 : vector<4x2xf32>
    %467 = arith.addf %443, %466 : vector<4x2xf32>
    %468 = vector.extract_strided_slice %392 {offsets = [0, 13], sizes = [4, 1], strides = [1, 1]} : vector<4x16xf32> to vector<4x1xf32>
    %469 = vector.extract_strided_slice %391 {offsets = [13, 0], sizes = [1, 2], strides = [1, 1]} : vector<16x2xf32> to vector<1x2xf32>
    %470 = vector.broadcast %468 : vector<4x1xf32> to vector<4x2xf32>
    %471 = vector.broadcast %469 : vector<1x2xf32> to vector<4x2xf32>
    %472 = arith.mulf %470, %471 : vector<4x2xf32>
    %473 = arith.addf %449, %472 : vector<4x2xf32>
    %474 = vector.extract_strided_slice %392 {offsets = [0, 14], sizes = [4, 1], strides = [1, 1]} : vector<4x16xf32> to vector<4x1xf32>
    %475 = vector.extract_strided_slice %391 {offsets = [14, 0], sizes = [1, 2], strides = [1, 1]} : vector<16x2xf32> to vector<1x2xf32>
    %476 = vector.broadcast %474 : vector<4x1xf32> to vector<4x2xf32>
    %477 = vector.broadcast %475 : vector<1x2xf32> to vector<4x2xf32>
    %478 = arith.mulf %476, %477 : vector<4x2xf32>
    %479 = arith.addf %455, %478 : vector<4x2xf32>
    %480 = vector.extract_strided_slice %392 {offsets = [0, 15], sizes = [4, 1], strides = [1, 1]} : vector<4x16xf32> to vector<4x1xf32>
    %481 = vector.extract_strided_slice %391 {offsets = [15, 0], sizes = [1, 2], strides = [1, 1]} : vector<16x2xf32> to vector<1x2xf32>
    %482 = vector.broadcast %480 : vector<4x1xf32> to vector<4x2xf32>
    %483 = vector.broadcast %481 : vector<1x2xf32> to vector<4x2xf32>
    %484 = arith.mulf %482, %483 : vector<4x2xf32>
    %485 = arith.addf %461, %484 : vector<4x2xf32>
    %486 = arith.addf %467, %473 : vector<4x2xf32>
    %487 = arith.addf %479, %485 : vector<4x2xf32>
    %488 = arith.addf %486, %487 : vector<4x2xf32>
    %489 = vector.broadcast %393 : vector<4x1xf32> to vector<4x2xf32>
    %490 = arith.addf %488, %489 : vector<4x2xf32>
    %cst_49 = arith.constant 0.000000e+00 : f32
    %491 = vector.broadcast %cst_49 : f32 to vector<4x2xf32>
    %492 = arith.maximumf %490, %491 : vector<4x2xf32>
    %c0_50 = arith.constant 0 : index
    %c48 = arith.constant 48 : index
    %493 = vector.load %arg1[%c0_50, %c48] : memref<16x101xf32, #tpu.memory_space<vmem>>, vector<16x4xf32>
    %c0_51 = arith.constant 0 : index
    %c52 = arith.constant 52 : index
    %494 = vector.load %arg1[%c0_51, %c52] : memref<16x101xf32, #tpu.memory_space<vmem>>, vector<16x1xf32>
    %495 = vector.extract_strided_slice %493 {offsets = [0, 0], sizes = [16, 1], strides = [1, 1]} : vector<16x4xf32> to vector<16x1xf32>
    %496 = vector.extract_strided_slice %492 {offsets = [0, 0], sizes = [1, 2], strides = [1, 1]} : vector<4x2xf32> to vector<1x2xf32>
    %497 = vector.broadcast %495 : vector<16x1xf32> to vector<16x2xf32>
    %498 = vector.broadcast %496 : vector<1x2xf32> to vector<16x2xf32>
    %499 = arith.mulf %497, %498 : vector<16x2xf32>
    %500 = vector.extract_strided_slice %493 {offsets = [0, 1], sizes = [16, 1], strides = [1, 1]} : vector<16x4xf32> to vector<16x1xf32>
    %501 = vector.extract_strided_slice %492 {offsets = [1, 0], sizes = [1, 2], strides = [1, 1]} : vector<4x2xf32> to vector<1x2xf32>
    %502 = vector.broadcast %500 : vector<16x1xf32> to vector<16x2xf32>
    %503 = vector.broadcast %501 : vector<1x2xf32> to vector<16x2xf32>
    %504 = arith.mulf %502, %503 : vector<16x2xf32>
    %505 = vector.extract_strided_slice %493 {offsets = [0, 2], sizes = [16, 1], strides = [1, 1]} : vector<16x4xf32> to vector<16x1xf32>
    %506 = vector.extract_strided_slice %492 {offsets = [2, 0], sizes = [1, 2], strides = [1, 1]} : vector<4x2xf32> to vector<1x2xf32>
    %507 = vector.broadcast %505 : vector<16x1xf32> to vector<16x2xf32>
    %508 = vector.broadcast %506 : vector<1x2xf32> to vector<16x2xf32>
    %509 = arith.mulf %507, %508 : vector<16x2xf32>
    %510 = vector.extract_strided_slice %493 {offsets = [0, 3], sizes = [16, 1], strides = [1, 1]} : vector<16x4xf32> to vector<16x1xf32>
    %511 = vector.extract_strided_slice %492 {offsets = [3, 0], sizes = [1, 2], strides = [1, 1]} : vector<4x2xf32> to vector<1x2xf32>
    %512 = vector.broadcast %510 : vector<16x1xf32> to vector<16x2xf32>
    %513 = vector.broadcast %511 : vector<1x2xf32> to vector<16x2xf32>
    %514 = arith.mulf %512, %513 : vector<16x2xf32>
    %515 = arith.addf %499, %504 : vector<16x2xf32>
    %516 = arith.addf %509, %514 : vector<16x2xf32>
    %517 = arith.addf %515, %516 : vector<16x2xf32>
    %518 = vector.broadcast %494 : vector<16x1xf32> to vector<16x2xf32>
    %519 = arith.addf %517, %518 : vector<16x2xf32>
    %cst_52 = arith.constant 3.000000e+00 : f32
    %520 = vector.broadcast %cst_52 : f32 to vector<16x2xf32>
    %521 = arith.addf %519, %520 : vector<16x2xf32>
    %cst_53 = arith.constant 0.000000e+00 : f32
    %cst_54 = arith.constant 6.000000e+00 : f32
    %522 = vector.broadcast %cst_53 : f32 to vector<16x2xf32>
    %523 = arith.maximumf %522, %521 : vector<16x2xf32>
    %524 = vector.broadcast %cst_54 : f32 to vector<16x2xf32>
    %525 = arith.minimumf %524, %523 : vector<16x2xf32>
    %cst_55 = arith.constant 0.166666672 : f32
    %526 = vector.broadcast %cst_55 : f32 to vector<16x2xf32>
    %527 = arith.mulf %525, %526 : vector<16x2xf32>
    %528 = vector.extract_strided_slice %527 {offsets = [0, 1], sizes = [16, 1], strides = [1, 1]} : vector<16x2xf32> to vector<16x1xf32>
    %c0_i32_56 = arith.constant 0 : i32
    %529 = vector.broadcast %c0_i32_56 : i32 to vector<1x128xi32>
    %530 = arith.cmpi eq, %9, %529 : vector<1x128xi32>
    %531 = vector.extract_strided_slice %527 {offsets = [0, 0], sizes = [16, 1], strides = [1, 1]} : vector<16x2xf32> to vector<16x1xf32>
    %532 = vector.shape_cast %530 : vector<1x128xi1> to vector<1x128xi1>
    %533 = vector.broadcast %532 : vector<1x128xi1> to vector<16x128xi1>
    %534 = vector.shape_cast %531 : vector<16x1xf32> to vector<16x1xf32>
    %535 = vector.broadcast %534 : vector<16x1xf32> to vector<16x128xf32>
    %536 = vector.shape_cast %528 : vector<16x1xf32> to vector<16x1xf32>
    %537 = vector.broadcast %536 : vector<16x1xf32> to vector<16x128xf32>
    %538 = arith.select %533, %535, %537 : vector<16x128xi1>, vector<16x128xf32>
    %539 = arith.mulf %378, %538 : vector<16x128xf32>
    %c0_57 = arith.constant 0 : index
    %c53 = arith.constant 53 : index
    %540 = vector.load %arg1[%c0_57, %c53] : memref<16x101xf32, #tpu.memory_space<vmem>>, vector<8x16xf32>
    %c0_58 = arith.constant 0 : index
    %c69 = arith.constant 69 : index
    %541 = vector.load %arg1[%c0_58, %c69] : memref<16x101xf32, #tpu.memory_space<vmem>>, vector<8x1xf32>
    %542 = vector.extract_strided_slice %540 {offsets = [0, 0], sizes = [8, 1], strides = [1, 1]} : vector<8x16xf32> to vector<8x1xf32>
    %543 = vector.extract_strided_slice %539 {offsets = [0, 0], sizes = [1, 128], strides = [1, 1]} : vector<16x128xf32> to vector<1x128xf32>
    %544 = vector.broadcast %542 : vector<8x1xf32> to vector<8x128xf32>
    %545 = vector.broadcast %543 : vector<1x128xf32> to vector<8x128xf32>
    %546 = arith.mulf %544, %545 : vector<8x128xf32>
    %547 = vector.extract_strided_slice %540 {offsets = [0, 1], sizes = [8, 1], strides = [1, 1]} : vector<8x16xf32> to vector<8x1xf32>
    %548 = vector.extract_strided_slice %539 {offsets = [1, 0], sizes = [1, 128], strides = [1, 1]} : vector<16x128xf32> to vector<1x128xf32>
    %549 = vector.broadcast %547 : vector<8x1xf32> to vector<8x128xf32>
    %550 = vector.broadcast %548 : vector<1x128xf32> to vector<8x128xf32>
    %551 = arith.mulf %549, %550 : vector<8x128xf32>
    %552 = vector.extract_strided_slice %540 {offsets = [0, 2], sizes = [8, 1], strides = [1, 1]} : vector<8x16xf32> to vector<8x1xf32>
    %553 = vector.extract_strided_slice %539 {offsets = [2, 0], sizes = [1, 128], strides = [1, 1]} : vector<16x128xf32> to vector<1x128xf32>
    %554 = vector.broadcast %552 : vector<8x1xf32> to vector<8x128xf32>
    %555 = vector.broadcast %553 : vector<1x128xf32> to vector<8x128xf32>
    %556 = arith.mulf %554, %555 : vector<8x128xf32>
    %557 = vector.extract_strided_slice %540 {offsets = [0, 3], sizes = [8, 1], strides = [1, 1]} : vector<8x16xf32> to vector<8x1xf32>
    %558 = vector.extract_strided_slice %539 {offsets = [3, 0], sizes = [1, 128], strides = [1, 1]} : vector<16x128xf32> to vector<1x128xf32>
    %559 = vector.broadcast %557 : vector<8x1xf32> to vector<8x128xf32>
    %560 = vector.broadcast %558 : vector<1x128xf32> to vector<8x128xf32>
    %561 = arith.mulf %559, %560 : vector<8x128xf32>
    %562 = vector.extract_strided_slice %540 {offsets = [0, 4], sizes = [8, 1], strides = [1, 1]} : vector<8x16xf32> to vector<8x1xf32>
    %563 = vector.extract_strided_slice %539 {offsets = [4, 0], sizes = [1, 128], strides = [1, 1]} : vector<16x128xf32> to vector<1x128xf32>
    %564 = vector.broadcast %562 : vector<8x1xf32> to vector<8x128xf32>
    %565 = vector.broadcast %563 : vector<1x128xf32> to vector<8x128xf32>
    %566 = arith.mulf %564, %565 : vector<8x128xf32>
    %567 = arith.addf %546, %566 : vector<8x128xf32>
    %568 = vector.extract_strided_slice %540 {offsets = [0, 5], sizes = [8, 1], strides = [1, 1]} : vector<8x16xf32> to vector<8x1xf32>
    %569 = vector.extract_strided_slice %539 {offsets = [5, 0], sizes = [1, 128], strides = [1, 1]} : vector<16x128xf32> to vector<1x128xf32>
    %570 = vector.broadcast %568 : vector<8x1xf32> to vector<8x128xf32>
    %571 = vector.broadcast %569 : vector<1x128xf32> to vector<8x128xf32>
    %572 = arith.mulf %570, %571 : vector<8x128xf32>
    %573 = arith.addf %551, %572 : vector<8x128xf32>
    %574 = vector.extract_strided_slice %540 {offsets = [0, 6], sizes = [8, 1], strides = [1, 1]} : vector<8x16xf32> to vector<8x1xf32>
    %575 = vector.extract_strided_slice %539 {offsets = [6, 0], sizes = [1, 128], strides = [1, 1]} : vector<16x128xf32> to vector<1x128xf32>
    %576 = vector.broadcast %574 : vector<8x1xf32> to vector<8x128xf32>
    %577 = vector.broadcast %575 : vector<1x128xf32> to vector<8x128xf32>
    %578 = arith.mulf %576, %577 : vector<8x128xf32>
    %579 = arith.addf %556, %578 : vector<8x128xf32>
    %580 = vector.extract_strided_slice %540 {offsets = [0, 7], sizes = [8, 1], strides = [1, 1]} : vector<8x16xf32> to vector<8x1xf32>
    %581 = vector.extract_strided_slice %539 {offsets = [7, 0], sizes = [1, 128], strides = [1, 1]} : vector<16x128xf32> to vector<1x128xf32>
    %582 = vector.broadcast %580 : vector<8x1xf32> to vector<8x128xf32>
    %583 = vector.broadcast %581 : vector<1x128xf32> to vector<8x128xf32>
    %584 = arith.mulf %582, %583 : vector<8x128xf32>
    %585 = arith.addf %561, %584 : vector<8x128xf32>
    %586 = vector.extract_strided_slice %540 {offsets = [0, 8], sizes = [8, 1], strides = [1, 1]} : vector<8x16xf32> to vector<8x1xf32>
    %587 = vector.extract_strided_slice %539 {offsets = [8, 0], sizes = [1, 128], strides = [1, 1]} : vector<16x128xf32> to vector<1x128xf32>
    %588 = vector.broadcast %586 : vector<8x1xf32> to vector<8x128xf32>
    %589 = vector.broadcast %587 : vector<1x128xf32> to vector<8x128xf32>
    %590 = arith.mulf %588, %589 : vector<8x128xf32>
    %591 = arith.addf %567, %590 : vector<8x128xf32>
    %592 = vector.extract_strided_slice %540 {offsets = [0, 9], sizes = [8, 1], strides = [1, 1]} : vector<8x16xf32> to vector<8x1xf32>
    %593 = vector.extract_strided_slice %539 {offsets = [9, 0], sizes = [1, 128], strides = [1, 1]} : vector<16x128xf32> to vector<1x128xf32>
    %594 = vector.broadcast %592 : vector<8x1xf32> to vector<8x128xf32>
    %595 = vector.broadcast %593 : vector<1x128xf32> to vector<8x128xf32>
    %596 = arith.mulf %594, %595 : vector<8x128xf32>
    %597 = arith.addf %573, %596 : vector<8x128xf32>
    %598 = vector.extract_strided_slice %540 {offsets = [0, 10], sizes = [8, 1], strides = [1, 1]} : vector<8x16xf32> to vector<8x1xf32>
    %599 = vector.extract_strided_slice %539 {offsets = [10, 0], sizes = [1, 128], strides = [1, 1]} : vector<16x128xf32> to vector<1x128xf32>
    %600 = vector.broadcast %598 : vector<8x1xf32> to vector<8x128xf32>
    %601 = vector.broadcast %599 : vector<1x128xf32> to vector<8x128xf32>
    %602 = arith.mulf %600, %601 : vector<8x128xf32>
    %603 = arith.addf %579, %602 : vector<8x128xf32>
    %604 = vector.extract_strided_slice %540 {offsets = [0, 11], sizes = [8, 1], strides = [1, 1]} : vector<8x16xf32> to vector<8x1xf32>
    %605 = vector.extract_strided_slice %539 {offsets = [11, 0], sizes = [1, 128], strides = [1, 1]} : vector<16x128xf32> to vector<1x128xf32>
    %606 = vector.broadcast %604 : vector<8x1xf32> to vector<8x128xf32>
    %607 = vector.broadcast %605 : vector<1x128xf32> to vector<8x128xf32>
    %608 = arith.mulf %606, %607 : vector<8x128xf32>
    %609 = arith.addf %585, %608 : vector<8x128xf32>
    %610 = vector.extract_strided_slice %540 {offsets = [0, 12], sizes = [8, 1], strides = [1, 1]} : vector<8x16xf32> to vector<8x1xf32>
    %611 = vector.extract_strided_slice %539 {offsets = [12, 0], sizes = [1, 128], strides = [1, 1]} : vector<16x128xf32> to vector<1x128xf32>
    %612 = vector.broadcast %610 : vector<8x1xf32> to vector<8x128xf32>
    %613 = vector.broadcast %611 : vector<1x128xf32> to vector<8x128xf32>
    %614 = arith.mulf %612, %613 : vector<8x128xf32>
    %615 = arith.addf %591, %614 : vector<8x128xf32>
    %616 = vector.extract_strided_slice %540 {offsets = [0, 13], sizes = [8, 1], strides = [1, 1]} : vector<8x16xf32> to vector<8x1xf32>
    %617 = vector.extract_strided_slice %539 {offsets = [13, 0], sizes = [1, 128], strides = [1, 1]} : vector<16x128xf32> to vector<1x128xf32>
    %618 = vector.broadcast %616 : vector<8x1xf32> to vector<8x128xf32>
    %619 = vector.broadcast %617 : vector<1x128xf32> to vector<8x128xf32>
    %620 = arith.mulf %618, %619 : vector<8x128xf32>
    %621 = arith.addf %597, %620 : vector<8x128xf32>
    %622 = vector.extract_strided_slice %540 {offsets = [0, 14], sizes = [8, 1], strides = [1, 1]} : vector<8x16xf32> to vector<8x1xf32>
    %623 = vector.extract_strided_slice %539 {offsets = [14, 0], sizes = [1, 128], strides = [1, 1]} : vector<16x128xf32> to vector<1x128xf32>
    %624 = vector.broadcast %622 : vector<8x1xf32> to vector<8x128xf32>
    %625 = vector.broadcast %623 : vector<1x128xf32> to vector<8x128xf32>
    %626 = arith.mulf %624, %625 : vector<8x128xf32>
    %627 = arith.addf %603, %626 : vector<8x128xf32>
    %628 = vector.extract_strided_slice %540 {offsets = [0, 15], sizes = [8, 1], strides = [1, 1]} : vector<8x16xf32> to vector<8x1xf32>
    %629 = vector.extract_strided_slice %539 {offsets = [15, 0], sizes = [1, 128], strides = [1, 1]} : vector<16x128xf32> to vector<1x128xf32>
    %630 = vector.broadcast %628 : vector<8x1xf32> to vector<8x128xf32>
    %631 = vector.broadcast %629 : vector<1x128xf32> to vector<8x128xf32>
    %632 = arith.mulf %630, %631 : vector<8x128xf32>
    %633 = arith.addf %609, %632 : vector<8x128xf32>
    %634 = arith.addf %615, %621 : vector<8x128xf32>
    %635 = arith.addf %627, %633 : vector<8x128xf32>
    %636 = arith.addf %634, %635 : vector<8x128xf32>
    %637 = vector.broadcast %541 : vector<8x1xf32> to vector<8x128xf32>
    %638 = arith.addf %636, %637 : vector<8x128xf32>
    %c0_59 = arith.constant 0 : index
    %c70 = arith.constant 70 : index
    %639 = vector.load %arg1[%c0_59, %c70] : memref<16x101xf32, #tpu.memory_space<vmem>>, vector<8x9xf32>
    %c0_60 = arith.constant 0 : index
    %c79 = arith.constant 79 : index
    %640 = vector.load %arg1[%c0_60, %c79] : memref<16x101xf32, #tpu.memory_space<vmem>>, vector<8x1xf32>
    %c9_i32 = arith.constant 9 : i32
    %641 = tpu.dynamic_rotate %638 by %c9_i32 dim 1 : vector<8x128xf32>, i32 -> vector<8x128xf32>
    %642 = vector.broadcast %54 : vector<1x128xf32> to vector<8x128xf32>
    %643 = arith.mulf %641, %642 : vector<8x128xf32>
    %644 = vector.extract_strided_slice %639 {offsets = [0, 0], sizes = [8, 1], strides = [1, 1]} : vector<8x9xf32> to vector<8x1xf32>
    %645 = vector.broadcast %644 : vector<8x1xf32> to vector<8x128xf32>
    %646 = arith.mulf %643, %645 : vector<8x128xf32>
    %c8_i32 = arith.constant 8 : i32
    %647 = tpu.dynamic_rotate %638 by %c8_i32 dim 1 : vector<8x128xf32>, i32 -> vector<8x128xf32>
    %648 = vector.broadcast %56 : vector<1x128xf32> to vector<8x128xf32>
    %649 = arith.mulf %647, %648 : vector<8x128xf32>
    %650 = vector.extract_strided_slice %639 {offsets = [0, 1], sizes = [8, 1], strides = [1, 1]} : vector<8x9xf32> to vector<8x1xf32>
    %651 = vector.broadcast %650 : vector<8x1xf32> to vector<8x128xf32>
    %652 = arith.mulf %649, %651 : vector<8x128xf32>
    %c7_i32_61 = arith.constant 7 : i32
    %653 = tpu.dynamic_rotate %638 by %c7_i32_61 dim 1 : vector<8x128xf32>, i32 -> vector<8x128xf32>
    %654 = vector.broadcast %59 : vector<1x128xf32> to vector<8x128xf32>
    %655 = arith.mulf %653, %654 : vector<8x128xf32>
    %656 = vector.extract_strided_slice %639 {offsets = [0, 2], sizes = [8, 1], strides = [1, 1]} : vector<8x9xf32> to vector<8x1xf32>
    %657 = vector.broadcast %656 : vector<8x1xf32> to vector<8x128xf32>
    %658 = arith.mulf %655, %657 : vector<8x128xf32>
    %c1_i32_62 = arith.constant 1 : i32
    %659 = tpu.dynamic_rotate %638 by %c1_i32_62 dim 1 : vector<8x128xf32>, i32 -> vector<8x128xf32>
    %660 = vector.broadcast %61 : vector<1x128xf32> to vector<8x128xf32>
    %661 = arith.mulf %659, %660 : vector<8x128xf32>
    %662 = vector.extract_strided_slice %639 {offsets = [0, 3], sizes = [8, 1], strides = [1, 1]} : vector<8x9xf32> to vector<8x1xf32>
    %663 = vector.broadcast %662 : vector<8x1xf32> to vector<8x128xf32>
    %664 = arith.mulf %661, %663 : vector<8x128xf32>
    %665 = arith.addf %646, %664 : vector<8x128xf32>
    %666 = vector.extract_strided_slice %639 {offsets = [0, 4], sizes = [8, 1], strides = [1, 1]} : vector<8x9xf32> to vector<8x1xf32>
    %667 = vector.broadcast %666 : vector<8x1xf32> to vector<8x128xf32>
    %668 = arith.mulf %638, %667 : vector<8x128xf32>
    %669 = arith.addf %652, %668 : vector<8x128xf32>
    %c127_i32 = arith.constant 127 : i32
    %670 = tpu.dynamic_rotate %638 by %c127_i32 dim 1 : vector<8x128xf32>, i32 -> vector<8x128xf32>
    %671 = vector.broadcast %63 : vector<1x128xf32> to vector<8x128xf32>
    %672 = arith.mulf %670, %671 : vector<8x128xf32>
    %673 = vector.extract_strided_slice %639 {offsets = [0, 5], sizes = [8, 1], strides = [1, 1]} : vector<8x9xf32> to vector<8x1xf32>
    %674 = vector.broadcast %673 : vector<8x1xf32> to vector<8x128xf32>
    %675 = arith.mulf %672, %674 : vector<8x128xf32>
    %676 = arith.addf %658, %675 : vector<8x128xf32>
    %c121_i32 = arith.constant 121 : i32
    %677 = tpu.dynamic_rotate %638 by %c121_i32 dim 1 : vector<8x128xf32>, i32 -> vector<8x128xf32>
    %678 = vector.broadcast %66 : vector<1x128xf32> to vector<8x128xf32>
    %679 = arith.mulf %677, %678 : vector<8x128xf32>
    %680 = vector.extract_strided_slice %639 {offsets = [0, 6], sizes = [8, 1], strides = [1, 1]} : vector<8x9xf32> to vector<8x1xf32>
    %681 = vector.broadcast %680 : vector<8x1xf32> to vector<8x128xf32>
    %682 = arith.mulf %679, %681 : vector<8x128xf32>
    %683 = arith.addf %665, %682 : vector<8x128xf32>
    %c120_i32 = arith.constant 120 : i32
    %684 = tpu.dynamic_rotate %638 by %c120_i32 dim 1 : vector<8x128xf32>, i32 -> vector<8x128xf32>
    %685 = vector.broadcast %68 : vector<1x128xf32> to vector<8x128xf32>
    %686 = arith.mulf %684, %685 : vector<8x128xf32>
    %687 = vector.extract_strided_slice %639 {offsets = [0, 7], sizes = [8, 1], strides = [1, 1]} : vector<8x9xf32> to vector<8x1xf32>
    %688 = vector.broadcast %687 : vector<8x1xf32> to vector<8x128xf32>
    %689 = arith.mulf %686, %688 : vector<8x128xf32>
    %690 = arith.addf %669, %689 : vector<8x128xf32>
    %c119_i32 = arith.constant 119 : i32
    %691 = tpu.dynamic_rotate %638 by %c119_i32 dim 1 : vector<8x128xf32>, i32 -> vector<8x128xf32>
    %692 = vector.broadcast %71 : vector<1x128xf32> to vector<8x128xf32>
    %693 = arith.mulf %691, %692 : vector<8x128xf32>
    %694 = vector.extract_strided_slice %639 {offsets = [0, 8], sizes = [8, 1], strides = [1, 1]} : vector<8x9xf32> to vector<8x1xf32>
    %695 = vector.broadcast %694 : vector<8x1xf32> to vector<8x128xf32>
    %696 = arith.mulf %693, %695 : vector<8x128xf32>
    %697 = arith.addf %676, %696 : vector<8x128xf32>
    %698 = arith.addf %683, %690 : vector<8x128xf32>
    %699 = arith.addf %698, %697 : vector<8x128xf32>
    %700 = vector.broadcast %640 : vector<8x1xf32> to vector<8x128xf32>
    %701 = arith.addf %699, %700 : vector<8x128xf32>
    %c0_63 = arith.constant 0 : index
    %c80 = arith.constant 80 : index
    %702 = vector.load %arg1[%c0_63, %c80] : memref<16x101xf32, #tpu.memory_space<vmem>>, vector<8x1xf32>
    %703 = vector.broadcast %702 : vector<8x1xf32> to vector<8x128xf32>
    %704 = arith.mulf %638, %703 : vector<8x128xf32>
    %705 = arith.addf %701, %704 : vector<8x128xf32>
    %c0_64 = arith.constant 0 : index
    %c81 = arith.constant 81 : index
    %706 = vector.load %arg1[%c0_64, %c81] : memref<16x101xf32, #tpu.memory_space<vmem>>, vector<8x1xf32>
    %707 = vector.broadcast %706 : vector<8x1xf32> to vector<8x128xf32>
    %708 = arith.addf %705, %707 : vector<8x128xf32>
    %c0_65 = arith.constant 0 : index
    %c92 = arith.constant 92 : index
    %709 = vector.load %arg1[%c0_65, %c92] : memref<16x101xf32, #tpu.memory_space<vmem>>, vector<8x8xf32>
    %c0_66 = arith.constant 0 : index
    %c100 = arith.constant 100 : index
    %710 = vector.load %arg1[%c0_66, %c100] : memref<16x101xf32, #tpu.memory_space<vmem>>, vector<8x1xf32>
    %711 = vector.extract_strided_slice %709 {offsets = [0, 0], sizes = [8, 1], strides = [1, 1]} : vector<8x8xf32> to vector<8x1xf32>
    %712 = vector.extract_strided_slice %379 {offsets = [0, 0], sizes = [1, 128], strides = [1, 1]} : vector<8x128xf32> to vector<1x128xf32>
    %713 = vector.broadcast %711 : vector<8x1xf32> to vector<8x128xf32>
    %714 = vector.broadcast %712 : vector<1x128xf32> to vector<8x128xf32>
    %715 = arith.mulf %713, %714 : vector<8x128xf32>
    %716 = vector.extract_strided_slice %709 {offsets = [0, 1], sizes = [8, 1], strides = [1, 1]} : vector<8x8xf32> to vector<8x1xf32>
    %717 = vector.extract_strided_slice %379 {offsets = [1, 0], sizes = [1, 128], strides = [1, 1]} : vector<8x128xf32> to vector<1x128xf32>
    %718 = vector.broadcast %716 : vector<8x1xf32> to vector<8x128xf32>
    %719 = vector.broadcast %717 : vector<1x128xf32> to vector<8x128xf32>
    %720 = arith.mulf %718, %719 : vector<8x128xf32>
    %721 = vector.extract_strided_slice %709 {offsets = [0, 2], sizes = [8, 1], strides = [1, 1]} : vector<8x8xf32> to vector<8x1xf32>
    %722 = vector.extract_strided_slice %379 {offsets = [2, 0], sizes = [1, 128], strides = [1, 1]} : vector<8x128xf32> to vector<1x128xf32>
    %723 = vector.broadcast %721 : vector<8x1xf32> to vector<8x128xf32>
    %724 = vector.broadcast %722 : vector<1x128xf32> to vector<8x128xf32>
    %725 = arith.mulf %723, %724 : vector<8x128xf32>
    %726 = vector.extract_strided_slice %709 {offsets = [0, 3], sizes = [8, 1], strides = [1, 1]} : vector<8x8xf32> to vector<8x1xf32>
    %727 = vector.extract_strided_slice %379 {offsets = [3, 0], sizes = [1, 128], strides = [1, 1]} : vector<8x128xf32> to vector<1x128xf32>
    %728 = vector.broadcast %726 : vector<8x1xf32> to vector<8x128xf32>
    %729 = vector.broadcast %727 : vector<1x128xf32> to vector<8x128xf32>
    %730 = arith.mulf %728, %729 : vector<8x128xf32>
    %731 = vector.extract_strided_slice %709 {offsets = [0, 4], sizes = [8, 1], strides = [1, 1]} : vector<8x8xf32> to vector<8x1xf32>
    %732 = vector.extract_strided_slice %379 {offsets = [4, 0], sizes = [1, 128], strides = [1, 1]} : vector<8x128xf32> to vector<1x128xf32>
    %733 = vector.broadcast %731 : vector<8x1xf32> to vector<8x128xf32>
    %734 = vector.broadcast %732 : vector<1x128xf32> to vector<8x128xf32>
    %735 = arith.mulf %733, %734 : vector<8x128xf32>
    %736 = arith.addf %715, %735 : vector<8x128xf32>
    %737 = vector.extract_strided_slice %709 {offsets = [0, 5], sizes = [8, 1], strides = [1, 1]} : vector<8x8xf32> to vector<8x1xf32>
    %738 = vector.extract_strided_slice %379 {offsets = [5, 0], sizes = [1, 128], strides = [1, 1]} : vector<8x128xf32> to vector<1x128xf32>
    %739 = vector.broadcast %737 : vector<8x1xf32> to vector<8x128xf32>
    %740 = vector.broadcast %738 : vector<1x128xf32> to vector<8x128xf32>
    %741 = arith.mulf %739, %740 : vector<8x128xf32>
    %742 = arith.addf %720, %741 : vector<8x128xf32>
    %743 = vector.extract_strided_slice %709 {offsets = [0, 6], sizes = [8, 1], strides = [1, 1]} : vector<8x8xf32> to vector<8x1xf32>
    %744 = vector.extract_strided_slice %379 {offsets = [6, 0], sizes = [1, 128], strides = [1, 1]} : vector<8x128xf32> to vector<1x128xf32>
    %745 = vector.broadcast %743 : vector<8x1xf32> to vector<8x128xf32>
    %746 = vector.broadcast %744 : vector<1x128xf32> to vector<8x128xf32>
    %747 = arith.mulf %745, %746 : vector<8x128xf32>
    %748 = arith.addf %725, %747 : vector<8x128xf32>
    %749 = vector.extract_strided_slice %709 {offsets = [0, 7], sizes = [8, 1], strides = [1, 1]} : vector<8x8xf32> to vector<8x1xf32>
    %750 = vector.extract_strided_slice %379 {offsets = [7, 0], sizes = [1, 128], strides = [1, 1]} : vector<8x128xf32> to vector<1x128xf32>
    %751 = vector.broadcast %749 : vector<8x1xf32> to vector<8x128xf32>
    %752 = vector.broadcast %750 : vector<1x128xf32> to vector<8x128xf32>
    %753 = arith.mulf %751, %752 : vector<8x128xf32>
    %754 = arith.addf %730, %753 : vector<8x128xf32>
    %755 = arith.addf %736, %742 : vector<8x128xf32>
    %756 = arith.addf %748, %754 : vector<8x128xf32>
    %757 = arith.addf %755, %756 : vector<8x128xf32>
    %758 = vector.broadcast %710 : vector<8x1xf32> to vector<8x128xf32>
    %759 = arith.addf %757, %758 : vector<8x128xf32>
    %760 = arith.addf %708, %759 : vector<8x128xf32>
    %c0_67 = arith.constant 0 : index
    %c0_68 = arith.constant 0 : index
    %761 = vector.load %arg2[%c0_67, %c0_68] : memref<8x128xf32, #tpu.memory_space<vmem>>, vector<8x128xf32>
    tpu.vector_store %arg2[%c0_67, %c0_68], %760 {strides = array<i32>} : memref<8x128xf32, #tpu.memory_space<vmem>>, vector<8x128xf32>,
    return
  }
}

</mosaic_0001>

<bundles_post_ra>
// kernel: _lambda_.1
= control target key start
LH: loop header
LB: loop body
LE: loop exit
PB: predicated region body
PF: predicated region fallthrough
CT: control target
= control target key end

     0   :  { %v7131_v0 = vmov 1   ;;  %v7132_v1 = vmov 0   ;;  %v4000_v4 = vmov 2   ;;  %v4001_v5 = vmov 3   ;;  %s4018_s21 = smov 17   ;;  %s4019_s22 = smov 16   ;;  %s7128_s1 = inlined_call_operand.vmem [shape: f32[16,101], index: 1, kind: input, shape index: {}]   ;;  %s7129_s0 = inlined_call_operand.vmem [shape: f32[8,512], index: 0, kind: input, shape index: {}]   ;;  %s7130_s2 = inlined_call_operand.vmem [shape: f32[8,128], index: 2, kind: output, shape index: {}]  }
   0x1   :  { %3857 = vset.pattern.permute.xlu1 %v7131_v0  ;;  %3856 = vset.pattern.permute.xlu0 %v7132_v1  ;;  %v4137_v2 = vld [vmem:[%s7128_s1] sm:$0xff]  ;;  %v4144_v3 = vld [vmem:[%s7128_s1 + $0x8] sm:$0xff]  ;;  %v4002_v6 = vmov 4   ;;  %v4003_v7 = vmov 6   ;;  %v4004_v8 = vmov 5   ;;  %v4005_v9 = vmov 7  }
   0x2   :  { %7461 = vst [vmem:[#allocation2_spill] sm:$0xff] %v4137_v2  ;;  %193 = vperm.xlu1 %3857, %v4137_v2   ;;  %160 = vperm.xlu0 %3856, %v4137_v2   ;;  %7462 = vst [vmem:[#allocation3_spill] sm:$0xff] %v4144_v3  ;;  %v4006_v10 = vmov 8   ;;  %v7144_v11 = vmov 10   ;;  %v7142_v12 = vmov 11   ;;  %v7140_v13 = vmov 16  }
   0x3   :  { %v4010_v14 = vmov 9   ;;  %v7143_v15 = vmov 12   ;;  %v7139_v16 = vmov 13   ;;  %v7141_v17 = vmov 14   ;;  %v152_v27 = vld [vmem:[%s7129_s0] sm:$0xff]  ;;  %v153_v28 = vld [vmem:[%s7129_s0 + $0x8] sm:$0xff] }
   0x4   :  { %v7138_v18 = vmov 15   ;;  %v7136_v19 = vmov 17   ;;  %v7137_v20 = vmov 19   ;;  %v7135_v21 = vmov 20   ;;  %v154_v29 = vld [vmem:[%s7129_s0 + $0x10] sm:$0xff]  ;;  %v155_v31 = vld [vmem:[%s7129_s0 + $0x18] sm:$0xff] }
   0x5   :  { %v7134_v22 = vlaneseq  ;;  %s4020_s23 = smov 1   ;;  %s4021_s24 = smov 15  }
   0x6   :  { %3858 = vset.pattern.permute.xlu1 %v4000_v4  ;;  %165 = vperm.xlu0 %3856, %v4144_v3   ;;  %s4022_s25 = smov 127   ;;  %s4023_s26 = smov 113  }
   0x7   :  { %225 = vperm.xlu1 %3858, %v4137_v2   ;;  %v4184_v23 = vshrl.u32 %v7134_v22, 7  ;;  %s4024_s27 = smov 112   ;;  %s4025_s28 = smov 111  }
   0x8   :  { %s4110_s18 = smov 9   ;;  %s4111_s19 = smov 8  }
   0x9   :  { %7463 = vst [vmem:[#allocation4_spill] sm:$0xff] %v4184_v23  ;;  %v4187_v26 = vsub.s32 1, %v4184_v23  ;;  %v4199_v30 = vsub.s32 0, %v4184_v23  ;;  %v4205_v32 = vsub.s32 2, %v4184_v23  ;;  %v4221_v38 = vsub.s32 4, %v4184_v23  ;;  %s4112_s20 = smov 120  }
   0xa   :  { %3859 = vset.pattern.permute.xlu0 %v4001_v5  ;;  %v4233_v42 = vsub.s32 3, %v4184_v23  ;;  %v4243_v46 = vsub.s32 6, %v4184_v23  ;;  %v4255_v51 = vsub.s32 5, %v4184_v23  ;;  %v4269_v56 = vsub.s32 7, %v4184_v23 }
   0xb   :  { %3860 = vset.pattern.permute.xlu1 %v4002_v6  ;;  %257 = vperm.xlu0 %3859, %v4137_v2   ;;  %7464 = vst [vmem:[#allocation5_spill] sm:$0xff] %v4187_v26  ;;  %7465 = vst [vmem:[#allocation6_spill] sm:$0xff] %v4199_v30  ;;  %v4212_v35 = vrot.slane %v152_v27, %v4187_v26  ;;  %v4215_v36 = vrot.slane %v153_v28, %v4187_v26 }
   0xc   :  { %289 = vperm.xlu1 %3860, %v4137_v2   ;;  %7466 = vst [vmem:[#allocation7_spill] sm:$0xff] %v4205_v32  ;;  %v4218_v37 = vrot.slane %v154_v29, %v4187_v26  ;;  %7469 = vst [vmem:[#allocation10_spill] sm:$0xff] %v4221_v38  ;;  %v4224_v39 = vrot.slane %v155_v31, %v4187_v26  ;;  %v4227_v40 = vrot.slane %v152_v27, %v4199_v30 }
   0xd   :  { %7467 = vst [vmem:[#allocation8_spill] sm:$0xff] %v4215_v36  ;;  %v4230_v41 = vrot.slane %v153_v28, %v4199_v30  ;;  %7470 = vst [vmem:[#allocation11_spill] sm:$0xff] %v4233_v42  ;;  %v4236_v43 = vrot.slane %v154_v29, %v4199_v30  ;;  %v183_v44 = vrot.slane %v155_v31, %v4199_v30 }
   0xe   :  { %7468 = vst [vmem:[#allocation9_spill] sm:$0xff] %v4218_v37  ;;  %v4240_v45 = vrot.slane %v152_v27, %v4205_v32  ;;  %7473 = vst [vmem:[#allocation14_spill] sm:$0xff] %v4243_v46  ;;  %v4246_v47 = vrot.slane %v153_v28, %v4205_v32  ;;  %v4249_v48 = vrot.slane %v154_v29, %v4205_v32 }
   0xf   :  { %3862 = vset.pattern.permute.xlu0 %v4003_v7  ;;  %7471 = vst [vmem:[#allocation12_spill] sm:$0xff] %v4236_v43  ;;  %v4252_v49 = vrot.slane %v155_v31, %v4205_v32  ;;  %7476 = vst [vmem:[#allocation17_spill] sm:$0xff] %v4255_v51  ;;  %v4260_v53 = vrot.slane %v152_v27, %v4221_v38  ;;  %v4263_v54 = vrot.slane %v153_v28, %v4221_v38 }
  0x10   :  { %3861 = vset.pattern.permute.xlu1 %v4004_v8  ;;  %369 = vperm.xlu0 %3862, %v4137_v2   ;;  %7472 = vst [vmem:[#allocation13_spill] sm:$0xff] %v4240_v45  ;;  %7474 = vst [vmem:[#allocation15_spill] sm:$0xff] %v4246_v47  ;;  %v4266_v55 = vrot.slane %v154_v29, %v4221_v38  ;;  %v4272_v57 = vrot.slane %v155_v31, %v4221_v38 }
  0x11   :  { %329 = vperm.xlu1 %3861, %v4137_v2   ;;  %7475 = vst [vmem:[#allocation16_spill] sm:$0xff] %v4249_v48  ;;  %7477 = vst [vmem:[#allocation18_spill] sm:$0xff] %v4269_v56  ;;  %v4275_v58 = vrot.slane %v152_v27, %v4233_v42  ;;  %v4278_v59 = vrot.slane %v153_v28, %v4233_v42  ;;  %v4281_v60 = vrot.slane %v154_v29, %v4233_v42 }
  0x12   :  { %v4284_v61 = vrot.slane %v155_v31, %v4233_v42  ;;  %v4287_v62 = vrot.slane %v152_v27, %v4243_v46  ;;  %v4290_v63 = vrot.slane %v153_v28, %v4243_v46 }
  0x13   :  { %7478 = vst [vmem:[#allocation19_spill] sm:$0xff] %v4275_v58  ;;  %7479 = vst [vmem:[#allocation20_spill] sm:$0xff] %v4278_v59 }
  0x14   :  { %3865 = vset.pattern.permute.xlu0 %v7131_v0  ;;  %7480 = vst [vmem:[#allocation21_spill] sm:$0xff] %v4281_v60  ;;  %7481 = vst [vmem:[#allocation22_spill] sm:$0xff] %v4287_v62  ;;  %v4317_v0 = vrot.slane %v154_v29, %v4269_v56 }
  0x15   :  { %3863 = vset.pattern.permute.xlu1 %v4005_v9  ;;  %197 = vperm.xlu0 %3865, %v4144_v3   ;;  %7482 = vst [vmem:[#allocation23_spill] sm:$0xff] %v4290_v63 }
  0x16   :  { %409 = vperm.xlu1 %3863, %v4137_v2   ;;  %7488 = vst [vmem:[#allocation29_spill] sm:$0xff] %v4317_v0 }
  0x19   :  { %3868 = vset.pattern.permute.xlu0 %v4002_v6  ;;  %v4299_v6 = vrot.slane %v152_v27, %v4255_v51 }
  0x1a   :  { %3864 = vset.pattern.permute.xlu1 %v4006_v10  ;;  %293 = vperm.xlu0 %3868, %v4144_v3  }
  0x1b   :  { %473 = vperm.xlu1 %3864, %v4137_v2  }
  0x1e   :  { %3871 = vset.pattern.permute.xlu0 %v4005_v9  ;;  %v4308_v9 = vrot.slane %v155_v31, %v4255_v51 }
  0x1f   :  { %3866 = vset.pattern.permute.xlu1 %v4000_v4  ;;  %413 = vperm.xlu0 %3871, %v4144_v3   ;;  %v4293_v4 = vrot.slane %v154_v29, %v4243_v46 }
  0x20   :  { %229 = vperm.xlu1 %3866, %v4144_v3  }
  0x21   :  { %7483 = vst [vmem:[#allocation24_spill] sm:$0xff] %v4293_v4 }
  0x23   :  { %3874 = vset.pattern.permute.xlu0 %v7144_v11 }
  0x24   :  { %3867 = vset.pattern.permute.xlu1 %v4001_v5  ;;  %579 = vperm.xlu0 %3874, %v4137_v2   ;;  %v4296_v5 = vrot.slane %v155_v31, %v4243_v46 }
  0x25   :  { %261 = vperm.xlu1 %3867, %v4144_v3  }
  0x28   :  { %3877 = vset.pattern.permute.xlu0 %v7142_v12 }
  0x29   :  { %3869 = vset.pattern.permute.xlu1 %v4004_v8  ;;  %628 = vperm.xlu0 %3877, %v4137_v2   ;;  %v4305_v8 = vrot.slane %v154_v29, %v4255_v51 }
  0x2a   :  { %333 = vperm.xlu1 %3869, %v4144_v3  }
  0x2b   :  { %7485 = vst [vmem:[#allocation26_spill] sm:$0xff] %v4305_v8 }
  0x2d   :  { %3880 = vset.pattern.permute.xlu0 %v7140_v13 }
  0x2e   :  { %3870 = vset.pattern.permute.xlu1 %v4003_v7  ;;  %872 = vperm.xlu0 %3880, %v4137_v2   ;;  %v4302_v7 = vrot.slane %v153_v28, %v4255_v51 }
  0x2f   :  { %373 = vperm.xlu1 %3870, %v4144_v3  }
  0x30   :  { %7484 = vst [vmem:[#allocation25_spill] sm:$0xff] %v4302_v7 }
  0x32   :  { %3884 = vset.pattern.permute.xlu0 %v4010_v14 }
  0x33   :  { %3872 = vset.pattern.permute.xlu1 %v4006_v10  ;;  %v4311_v10 = vrot.slane %v152_v27, %v4269_v56 }
  0x34   :  { %477 = vperm.xlu1 %3872, %v4144_v3  }
  0x35   :  { %7486 = vst [vmem:[#allocation27_spill] sm:$0xff] %v4311_v10 }
  0x38   :  { %3873 = vset.pattern.permute.xlu1 %v4010_v14  ;;  %v4314_v14 = vrot.slane %v153_v28, %v4269_v56 }
  0x39   :  { %530 = vperm.xlu1 %3873, %v4137_v2  }
  0x3a   :  { %7487 = vst [vmem:[#allocation28_spill] sm:$0xff] %v4314_v14 }
  0x3d   :  { %3875 = vset.pattern.permute.xlu1 %v7143_v15 }
  0x3e   :  { %677 = vperm.xlu1 %3875, %v4137_v2  }
  0x42   :  { %3876 = vset.pattern.permute.xlu1 %v7139_v16 }
  0x43   :  { %701 = vperm.xlu1 %3876, %v4137_v2  }
  0x47   :  { %3878 = vset.pattern.permute.xlu1 %v7141_v17 }
  0x48   :  { %758 = vperm.xlu1 %3878, %v4137_v2  }
  0x4c   :  { %3879 = vset.pattern.permute.xlu1 %v7138_v18  ;;  %v4323_v18 = vrot.slane %v155_v31, %v4269_v56 }
  0x4d   :  { %815 = vperm.xlu1 %3879, %v4137_v2  }
  0x51   :  { %3881 = vset.pattern.permute.xlu1 %v7136_v19 }
  0x52   :  { %929 = vperm.xlu1 %3881, %v4137_v2  }
  0x56   :  { %3882 = vset.pattern.permute.xlu1 %v7137_v20 }
  0x57   :  { %985 = vperm.xlu1 %3882, %v4137_v2  }
  0x5b   :  { %3883 = vset.pattern.permute.xlu1 %v7135_v21 }
  0x81   :  { %v194_v24 = vpop.permute.xlu1 %193  ;;  %v161_v25 = vpop.permute.xlu0 %160 }
  0x82   :  { %v216_v1 = vmul.f32 %v4212_v35, %v194_v24  ;;  %v217_v22 = vmul.f32 %v4215_v36, %v194_v24  ;;  %v218_v21 = vmul.f32 %v4218_v37, %v194_v24  ;;  %v219_v27 = vmul.f32 %v4224_v39, %v194_v24 }
  0x83   :  { %v184_v16 = vmul.f32 %v4227_v40, %v161_v25  ;;  %v185_v28 = vmul.f32 %v4230_v41, %v161_v25  ;;  %v186_v29 = vmul.f32 %v4236_v43, %v161_v25  ;;  %v187_v13 = vmul.f32 %v183_v44, %v161_v25 }
  0x85   :  { %v4207_v33 = vpop.permute.xlu0 %165 }
  0x86   :  { %v4209_v34 = vpop.permute.xlu1 %225  ;;  %v191_v15 = vmul.f32 %v183_v44, %v4207_v33 }
  0x87   :  { %v248_v17 = vmul.f32 %v4240_v45, %v4209_v34  ;;  %v249_v12 = vmul.f32 %v4246_v47, %v4209_v34  ;;  %v250_v31 = vmul.f32 %v4249_v48, %v4209_v34 }
  0x8a   :  { %v258_v50 = vpop.permute.xlu0 %257 }
  0x8b   :  { %v4257_v52 = vpop.permute.xlu1 %289  ;;  %v280_v46 = vmul.f32 %v4275_v58, %v258_v50  ;;  %v281_v38 = vmul.f32 %v4278_v59, %v258_v50  ;;  %v282_v42 = vmul.f32 %v4281_v60, %v258_v50  ;;  %v283_v32 = vmul.f32 %v4284_v61, %v258_v50 }
  0x8c   :  { %v312_v24 = vmul.f32 %v4260_v53, %v4257_v52  ;;  %v313_v25 = vmul.f32 %v4263_v54, %v4257_v52  ;;  %v314_v60 = vmul.f32 %v4266_v55, %v4257_v52 }
  0x8e   :  { %v320_v59 = vadd.f32 %v312_v24, %v184_v16  ;;  %v7495_v24 = vld [vmem:[#allocation15_spill] sm:$0xff] }
  0x8f   :  { %v370_v19 = vpop.permute.xlu0 %369 }
  0x90   :  { %v330_v20 = vpop.permute.xlu1 %329  ;;  %v392_v30 = vmul.f32 %v4287_v62, %v370_v19  ;;  %v393_v51 = vmul.f32 %v4290_v63, %v370_v19  ;;  %v394_v26 = vmul.f32 %v4293_v4, %v370_v19  ;;  %v321_v62 = vadd.f32 %v313_v25, %v185_v28 }
  0x91   :  { %v352_v11 = vmul.f32 %v4299_v6, %v330_v20  ;;  %v353_v56 = vmul.f32 %v4302_v7, %v330_v20  ;;  %v354_v3 = vmul.f32 %v4305_v8, %v330_v20  ;;  %v395_v63 = vmul.f32 %v4296_v5, %v370_v19 }
  0x92   :  { %v400_v47 = vadd.f32 %v392_v30, %v248_v17  ;;  %v401_v45 = vadd.f32 %v393_v51, %v249_v12  ;;  %v251_v12 = vmul.f32 %v4252_v49, %v4209_v34  ;;  %v315_v17 = vmul.f32 %v4272_v57, %v4257_v52 }
  0x93   :  { %v360_v50 = vadd.f32 %v352_v11, %v216_v1  ;;  %v361_v48 = vadd.f32 %v353_v56, %v217_v22  ;;  %v362_v7 = vadd.f32 %v354_v3, %v218_v21 }
  0x94   :  { %v4345_v44 = vpop.permute.xlu0 %197  ;;  %v403_v21 = vadd.f32 %v395_v63, %v251_v12  ;;  %v189_v63 = vmul.f32 %v4230_v41, %v4207_v33  ;;  %v7501_v12 = vld [vmem:[#allocation28_spill] sm:$0xff] }
  0x95   :  { %v410_v23 = vpop.permute.xlu1 %409  ;;  %v448_v16 = vadd.f32 %v360_v50, %v320_v59  ;;  %v449_v22 = vadd.f32 %v361_v48, %v321_v62  ;;  %v323_v48 = vadd.f32 %v315_v17, %v187_v13  ;;  %v7496_v50 = vld [vmem:[#allocation19_spill] sm:$0xff] }
  0x96   :  { %v432_v2 = vmul.f32 %v4311_v10, %v410_v23  ;;  %v433_v43 = vmul.f32 %v4314_v14, %v410_v23  ;;  %v434_v37 = vmul.f32 %v4317_v0, %v410_v23  ;;  %v435_v8 = vmul.f32 %v4323_v18, %v410_v23 }
  0x97   :  { %v402_v14 = vadd.f32 %v394_v26, %v250_v31  ;;  %v355_v0 = vmul.f32 %v4308_v9, %v330_v20  ;;  %v322_v23 = vadd.f32 %v314_v60, %v186_v29  ;;  %v7494_v31 = vld [vmem:[#allocation13_spill] sm:$0xff] }
  0x98   :  { %v440_v58 = vadd.f32 %v432_v2, %v280_v46  ;;  %v441_v4 = vadd.f32 %v433_v43, %v281_v38  ;;  %v442_v10 = vadd.f32 %v434_v37, %v282_v42  ;;  %v443_v26 = vadd.f32 %v435_v8, %v283_v32 }
  0x99   :  { %v4359_v36 = vpop.permute.xlu0 %293  ;;  %v363_v38 = vadd.f32 %v355_v0, %v219_v27  ;;  %v450_v42 = vadd.f32 %v362_v7, %v322_v23 }
  0x9a   :  { %v319_v1 = vmul.f32 %v4272_v57, %v4359_v36  ;;  %v474_v11 = vpop.permute.xlu1 %473  ;;  %v456_v19 = vadd.f32 %v440_v58, %v400_v47  ;;  %v457_v2 = vadd.f32 %v441_v4, %v401_v45  ;;  %v458_v37 = vadd.f32 %v442_v10, %v402_v14  ;;  %v7492_v10 = vld [vmem:[#allocation25_spill] sm:$0xff] }
  0x9b   :  { %v459_v45 = vadd.f32 %v443_v26, %v403_v21  ;;  %v451_v58 = vadd.f32 %v363_v38, %v323_v48  ;;  %v316_v59 = vmul.f32 %v4260_v53, %v4359_v36  ;;  %v317_v60 = vmul.f32 %v4263_v54, %v4359_v36  ;;  %v7502_v21 = vld [vmem:[#allocation22_spill] sm:$0xff]  ;;  %v7504_v48 = vld [vmem:[#allocation24_spill] sm:$0xff] }
  0x9c   :  { %v327_v30 = vadd.f32 %v319_v1, %v191_v15  ;;  %v464_v20 = vadd.f32 %v456_v19, %v448_v16  ;;  %v465_v3 = vadd.f32 %v457_v2, %v449_v22  ;;  %v466_v51 = vadd.f32 %v458_v37, %v450_v42  ;;  %v7497_v1 = vld [vmem:[#allocation27_spill] sm:$0xff]  ;;  %v7500_v19 = vld [vmem:[#allocation20_spill] sm:$0xff] }
  0x9d   :  { %v467_v52 = vadd.f32 %v459_v45, %v451_v58  ;;  %v220_v4 = vmul.f32 %v4212_v35, %v4345_v44  ;;  %v223_v54 = vmul.f32 %v4224_v39, %v4345_v44  ;;  %v325_v29 = vadd.f32 %v317_v60, %v189_v63  ;;  %v7503_v42 = vld [vmem:[#allocation23_spill] sm:$0xff] }
  0x9e   :  { %v480_v43 = vadd.f32 %v474_v11, %v464_v20  ;;  %v414_v47 = vpop.permute.xlu0 %413  ;;  %v481_v56 = vadd.f32 %v474_v11, %v465_v3  ;;  %v482_v0 = vadd.f32 %v474_v11, %v466_v51 }
  0x9f   :  { %v230_v46 = vpop.permute.xlu1 %229  ;;  %v439_v15 = vmul.f32 %v4323_v18, %v414_v47  ;;  %v188_v18 = vmul.f32 %v4227_v40, %v4207_v33  ;;  %v7493_v40 = vld [vmem:[#allocation8_spill] sm:$0xff]  ;;  %v437_v17 = vmul.f32 %v7501_v12, %v414_v47  ;;  %v7520_v12 = vmov 14  }
  0xa0   :  { %v4368_v34 = vmax.f32 %v480_v43, 0.0  ;;  %v4373_v57 = vmax.f32 %v481_v56, 0.0  ;;  %v4388_v7 = vmax.f32 %v482_v0, 0.0  ;;  %v221_v28 = vmul.f32 %v7493_v40, %v4345_v44  ;;  %v7505_v56 = vld [vmem:[#allocation21_spill] sm:$0xff] }
  0xa1   :  { %v324_v41 = vadd.f32 %v316_v59, %v188_v18  ;;  %v252_v35 = vmul.f32 %v7494_v31, %v230_v46  ;;  %v253_v25 = vmul.f32 %v7495_v24, %v230_v46  ;;  %v255_v23 = vmul.f32 %v4252_v49, %v230_v46  ;;  %v7508_v18 = vld [vmem:[#allocation9_spill] sm:$0xff] }
  0xa2   :  { %7489 = vst [vmem:[#allocation30_spill] sm:$0xff] %v4368_v34  ;;  %496 = vrot.lane.b32.xlu1 %v4368_v34, %s4018_s21  ;;  %7490 = vst [vmem:[#allocation31_spill] sm:$0xff] %v4373_v57  ;;  %v222_v63 = vmul.f32 %v7508_v18, %v4345_v44 }
  0xa3   :  { %7491 = vst [vmem:[#allocation32_spill] sm:$0xff] %v4388_v7 }
  0xa4   :  { %v262_v32 = vpop.permute.xlu1 %261 }
  0xa5   :  { %v287_v13 = vmul.f32 %v4284_v61, %v262_v32  ;;  %v483_v61 = vadd.f32 %v474_v11, %v467_v52  ;;  %v284_v39 = vmul.f32 %v7496_v50, %v262_v32  ;;  %v285_v2 = vmul.f32 %v7500_v19, %v262_v32 }
  0xa6   :  { %500 = vrot.lane.b32.xlu1 %v4373_v57, %s4018_s21  ;;  %v286_v58 = vmul.f32 %v7505_v56, %v262_v32  ;;  %v7518_v19 = vmov 11   ;;  %v4554_v56 = vpop.permute.xlu0 %579 }
  0xa7   :  { %v447_v62 = vadd.f32 %v439_v15, %v287_v13  ;;  %v4403_v16 = vmax.f32 %v483_v61, 0.0  ;;  %v7506_v15 = vld [vmem:[#allocation29_spill] sm:$0xff]  ;;  %v445_v13 = vadd.f32 %v437_v17, %v285_v2  ;;  %7531 = vst [vmem:[#allocation24_spill] sm:$0xff] %v4554_v56 }
  0xa8   :  { %v438_v52 = vmul.f32 %v7506_v15, %v414_v47 }
  0xa9   :  { %v334_v53 = vpop.permute.xlu1 %333  ;;  %7498 = vst [vmem:[#allocation25_spill] sm:$0xff] %v4403_v16 }
  0xaa   :  { %v356_v8 = vmul.f32 %v4299_v6, %v334_v53  ;;  %v357_v14 = vmul.f32 %v7492_v10, %v334_v53  ;;  %v359_v27 = vmul.f32 %v4308_v9, %v334_v53  ;;  %504 = vrot.lane.b32.xlu1 %v4388_v7, %s4018_s21  ;;  %v436_v6 = vmul.f32 %v7497_v1, %v414_v47  ;;  %v7499_v9 = vld [vmem:[#allocation16_spill] sm:$0xff] }
  0xab   :  { %v254_v22 = vmul.f32 %v7499_v9, %v230_v46  ;;  %v7507_v46 = vld [vmem:[#allocation26_spill] sm:$0xff]  ;;  %v7517_v9 = vmov 12  }
  0xac   :  { %v367_v11 = vadd.f32 %v359_v27, %v223_v54  ;;  %v364_v26 = vadd.f32 %v356_v8, %v220_v4  ;;  %v365_v37 = vadd.f32 %v357_v14, %v221_v28  ;;  %v444_v49 = vadd.f32 %v436_v6, %v284_v39  ;;  %v7509_v8 = vld [vmem:[#allocation12_spill] sm:$0xff]  ;;  %v7513_v39 = vld [vmem:[#allocation2_spill] sm:$0xff] }
  0xad   :  { %v358_v0 = vmul.f32 %v7507_v46, %v334_v53  ;;  %v190_v10 = vmul.f32 %v7509_v8, %v4207_v33  ;;  %v446_v14 = vadd.f32 %v438_v52, %v286_v58  ;;  %v7515_v6 = vmov 10   ;;  %v4565_v52 = vpop.permute.xlu0 %628 }
  0xae   :  { %v374_v20 = vpop.permute.xlu1 %373  ;;  %v455_v3 = vadd.f32 %v367_v11, %v327_v30  ;;  %508 = vrot.lane.b32.xlu1 %v4403_v16, %s4018_s21  ;;  %v452_v61 = vadd.f32 %v364_v26, %v324_v41  ;;  %v453_v47 = vadd.f32 %v365_v37, %v325_v29  ;;  %v7516_v11 = vld [vmem:[#allocation3_spill] sm:$0xff]  ;;  %v7522_v26 = vmov 16   ;;  %7532 = vst [vmem:[#allocation21_spill] sm:$0xff] %v4565_v52 }
  0xaf   :  { %v396_v38 = vmul.f32 %v7502_v21, %v374_v20  ;;  %v397_v43 = vmul.f32 %v7503_v42, %v374_v20  ;;  %v398_v45 = vmul.f32 %v7504_v48, %v374_v20  ;;  %v399_v51 = vmul.f32 %v4296_v5, %v374_v20 }
  0xb0   :  { %v318_v5 = vmul.f32 %v4266_v55, %v4359_v36  ;;  %v366_v27 = vadd.f32 %v358_v0, %v222_v63  ;;  %v7523_v37 = vmov 13   ;;  %v7526_v21 = vmov 15  }
  0xb1   :  { %v404_v30 = vadd.f32 %v396_v38, %v252_v35  ;;  %v405_v59 = vadd.f32 %v397_v43, %v253_v25  ;;  %v407_v60 = vadd.f32 %v399_v51, %v255_v23  ;;  %v406_v4 = vadd.f32 %v398_v45, %v254_v22  ;;  %v4574_v0 = vpop.permute.xlu0 %872 }
  0xb2   :  { %545 = vrot.lane.b32.xlu1 %v4368_v34, %s4019_s22  ;;  %v326_v55 = vadd.f32 %v318_v5, %v190_v10  ;;  %v7527_v38 = vmov 19   ;;  %v7529_v43 = vmov 17   ;;  %7533 = vst [vmem:[#allocation29_spill] sm:$0xff] %v4574_v0 }
  0xb3   :  { %v460_v32 = vadd.f32 %v444_v49, %v404_v30  ;;  %v461_v54 = vadd.f32 %v445_v13, %v405_v59  ;;  %v463_v53 = vadd.f32 %v447_v62, %v407_v60  ;;  %v4426_v40 = vpop.permute.xlu1 %477  ;;  %v462_v41 = vadd.f32 %v446_v14, %v406_v4 }
  0xb4   :  { %v454_v29 = vadd.f32 %v366_v27, %v326_v55  ;;  %v4026_v49 = vmov 18   ;;  %v7539_v27 = vmov 20  }
  0xb5   :  { %v468_v44 = vadd.f32 %v460_v32, %v452_v61  ;;  %v469_v28 = vadd.f32 %v461_v54, %v453_v47  ;;  %v471_v36 = vadd.f32 %v463_v53, %v455_v3 }
  0xb6   :  { %553 = vrot.lane.b32.xlu1 %v4388_v7, %s4019_s22  ;;  %v470_v33 = vadd.f32 %v462_v41, %v454_v29 }
  0xb7   :  { %v484_v31 = vadd.f32 %v4426_v40, %v468_v44  ;;  %v485_v62 = vadd.f32 %v4426_v40, %v469_v28  ;;  %v487_v23 = vadd.f32 %v4426_v40, %v471_v36  ;;  %v4027_v28 = vmov 21  }
  0xb8   :  { %v486_v25 = vadd.f32 %v4426_v40, %v470_v33  ;;  %v4490_v1 = vpop.permute.xlu1 %530  ;;  %v7188_v36 = vmov 22   ;;  %v7186_v33 = vmov 23  }
  0xb9   :  { %v4432_v35 = vmax.f32 %v484_v31, 0.0  ;;  %v4438_v24 = vmax.f32 %v485_v62, 0.0  ;;  %7514 = vst [vmem:[#allocation19_spill] sm:$0xff] %v4490_v1  ;;  %v4522_v3 = vmax.f32 %v487_v23, 0.0  ;;  %v7187_v31 = vmov 24  }
  0xba   :  { %643 = vrot.lane.b32.xlu1 %v4368_v34, %s4020_s23  ;;  %v4445_v50 = vmax.f32 %v486_v25, 0.0 }
  0xbb   :  { %7510 = vst [vmem:[#allocation8_spill] sm:$0xff] %v4432_v35  ;;  %498 = vrot.lane.b32.xlu0 %v4432_v35, %s4018_s21  ;;  %7511 = vst [vmem:[#allocation13_spill] sm:$0xff] %v4438_v24 }
  0xbc   :  { %7512 = vst [vmem:[#allocation15_spill] sm:$0xff] %v4445_v50  ;;  %7525 = vst [vmem:[#allocation28_spill] sm:$0xff] %v4522_v3 }
  0xbd   :  { %v4499_v22 = vpop.permute.xlu1 %677 }
  0xbe   :  { %651 = vrot.lane.b32.xlu1 %v4388_v7, %s4020_s23 }
  0xbf   :  { %502 = vrot.lane.b32.xlu0 %v4438_v24, %s4018_s21 }
  0xc2   :  { %598 = vrot.lane.b32.xlu1 %v4373_v57, %s4021_s24  ;;  %v4506_v2 = vpop.permute.xlu1 %701 }
  0xc3   :  { %506 = vrot.lane.b32.xlu0 %v4445_v50, %s4018_s21  ;;  %7519 = vst [vmem:[#allocation27_spill] sm:$0xff] %v4506_v2 }
  0xc6   :  { %606 = vrot.lane.b32.xlu1 %v4403_v16, %s4021_s24 }
  0xc7   :  { %549 = vrot.lane.b32.xlu0 %v4373_v57, %s4019_s22  ;;  %v4511_v17 = vpop.permute.xlu1 %758 }
  0xc8   :  { %7521 = vst [vmem:[#allocation16_spill] sm:$0xff] %v4511_v17 }
  0xca   :  { %728 = vrot.lane.b32.xlu1 %v4373_v57, %s4022_s25 }
  0xcb   :  { %557 = vrot.lane.b32.xlu0 %v4403_v16, %s4019_s22 }
  0xcc   :  { %v4519_v20 = vpop.permute.xlu1 %815 }
  0xcd   :  { %7524 = vst [vmem:[#allocation20_spill] sm:$0xff] %v4519_v20 }
  0xce   :  { %736 = vrot.lane.b32.xlu1 %v4403_v16, %s4022_s25 }
  0xcf   :  { %647 = vrot.lane.b32.xlu0 %v4373_v57, %s4020_s23 }
  0xd1   :  { %v4529_v42 = vpop.permute.xlu1 %929 }
  0xd2   :  { %785 = vrot.lane.b32.xlu1 %v4373_v57, %s4023_s26  ;;  %7528 = vst [vmem:[#allocation22_spill] sm:$0xff] %v4529_v42  ;;  %v7563_v42 = vmov 0.0  }
  0xd3   :  { %655 = vrot.lane.b32.xlu0 %v4403_v16, %s4020_s23 }
  0xd6   :  { %793 = vrot.lane.b32.xlu1 %v4403_v16, %s4023_s26  ;;  %v4538_v48 = vpop.permute.xlu1 %985 }
  0xd7   :  { %594 = vrot.lane.b32.xlu0 %v4368_v34, %s4021_s24  ;;  %7530 = vst [vmem:[#allocation23_spill] sm:$0xff] %v4538_v48 }
  0xda   :  { %842 = vrot.lane.b32.xlu1 %v4373_v57, %s4024_s27 }
  0xdb   :  { %602 = vrot.lane.b32.xlu0 %v4388_v7, %s4021_s24 }
  0xde   :  { %850 = vrot.lane.b32.xlu1 %v4403_v16, %s4024_s27 }
  0xdf   :  { %724 = vrot.lane.b32.xlu0 %v4368_v34, %s4022_s25 }
  0xe2   :  { %899 = vrot.lane.b32.xlu1 %v4373_v57, %s4025_s28 }
  0xe3   :  { %732 = vrot.lane.b32.xlu0 %v4388_v7, %s4022_s25 }
  0xe6   :  { %907 = vrot.lane.b32.xlu1 %v4403_v16, %s4025_s28  ;;  %v4768_v16 = vmul.f32 %v4506_v2, %v4368_v34 }
  0xe7   :  { %781 = vrot.lane.b32.xlu0 %v4368_v34, %s4023_s26 }
  0xea   :  { %1009 = vperm.xlu1 %3883, %v7513_v39  }
  0xeb   :  { %789 = vrot.lane.b32.xlu0 %v4388_v7, %s4023_s26 }
  0xee   :  { %3885 = vset.pattern.permute.xlu1 %v7515_v6 }
  0xef   :  { %838 = vrot.lane.b32.xlu0 %v4368_v34, %s4024_s27  ;;  %583 = vperm.xlu1 %3885, %v7516_v11  }
  0xf3   :  { %846 = vrot.lane.b32.xlu0 %v4388_v7, %s4024_s27  ;;  %3886 = vset.pattern.permute.xlu1 %v7517_v9 }
  0xf4   :  { %681 = vperm.xlu1 %3886, %v7516_v11  }
  0xf7   :  { %895 = vrot.lane.b32.xlu0 %v4368_v34, %s4025_s28  ;;  %v4789_v34 = vmul.f32 %v4506_v2, %v4373_v57 }
  0xf8   :  { %3888 = vset.pattern.permute.xlu1 %v7518_v19  ;;  %v7184_v19 = vmov 28  }
  0xf9   :  { %632 = vperm.xlu1 %3888, %v7516_v11  }
  0xfb   :  { %903 = vrot.lane.b32.xlu0 %v4388_v7, %s4025_s28 }
  0xfd   :  { %3889 = vset.pattern.permute.xlu1 %v7520_v12  ;;  %v7542_v12 = vlaneseq }
  0xfe   :  { %762 = vperm.xlu1 %3889, %v7516_v11  }
  0xff   :  { %534 = vperm.xlu0 %3884, %v7516_v11   ;;  %v4673_v23 = vand.u32 127, %v7542_v12 }
 0x101   :  { %vm512_vm10 = vcmp.lt.s32.totalorder %v4673_v23, 17  ;;  %vm561_vm14 = vcmp.lt.s32.totalorder %v4673_v23, 16 }
 0x102   :  { %3891 = vset.pattern.permute.xlu1 %v7522_v26 }
 0x103   :  { %3887 = vset.pattern.permute.xlu0 %v7523_v37  ;;  %876 = vperm.xlu1 %3891, %v7516_v11  }
 0x104   :  { %705 = vperm.xlu0 %3887, %v7516_v11  }
 0x107   :  { %510 = vrot.lane.b32.xlu1 %v4522_v3, %s4018_s21 }
 0x108   :  { %3890 = vset.pattern.permute.xlu0 %v7526_v21  ;;  %3894 = vset.pattern.permute.xlu1 %v7527_v38  ;;  %v13_v21 = vadd.s32 128, %v4673_v23 }
 0x109   :  { %819 = vperm.xlu0 %3890, %v7516_v11  }
 0x10b   :  { %551 = vrot.lane.b32.xlu1 %v4438_v24, %s4019_s22 }
 0x10d   :  { %547 = vrot.lane.b32.xlu0 %v4432_v35, %s4019_s22 }
 0x10e   :  { %3892 = vset.pattern.permute.xlu0 %v7529_v43  ;;  %v7191_v43 = vmov 30  }
 0x10f   :  { %559 = vrot.lane.b32.xlu1 %v4522_v3, %s4019_s22 }
 0x111   :  { %555 = vrot.lane.b32.xlu0 %v4445_v50, %s4019_s22 }
 0x113   :  { %649 = vrot.lane.b32.xlu1 %v4438_v24, %s4020_s23 }
 0x114   :  { %v4544_v45 = vpop.permute.xlu1 %496 }
 0x115   :  { %645 = vrot.lane.b32.xlu0 %v4432_v35, %s4020_s23 }
 0x117   :  { %657 = vrot.lane.b32.xlu1 %v4522_v3, %s4020_s23 }
 0x118   :  { %v4550_v51 = vpop.permute.xlu1 %500 }
 0x119   :  { %653 = vrot.lane.b32.xlu0 %v4445_v50, %s4020_s23  ;;  %v517_v48 = vsel %vm512_vm10, %v4544_v45, %v4550_v51 }
 0x11b   :  { %596 = vrot.lane.b32.xlu1 %v4432_v35, %s4021_s24 }
 0x11c   :  { %v4558_v58 = vpop.permute.xlu1 %504 }
 0x11d   :  { %933 = vperm.xlu0 %3892, %v7516_v11  }
 0x11f   :  { %600 = vrot.lane.b32.xlu1 %v4438_v24, %s4021_s24 }
 0x120   :  { %v4563_v15 = vpop.permute.xlu1 %508 }
 0x121   :  { %3893 = vset.pattern.permute.xlu0 %v4026_v49  ;;  %v14_v49 = vadd.s32 256, %v4673_v23 }
 0x122   :  { %969 = vperm.xlu0 %3893, %v7513_v39  }
 0x123   :  { %608 = vrot.lane.b32.xlu1 %v4522_v3, %s4021_s24 }
 0x124   :  { %v4570_v46 = vpop.permute.xlu1 %545 }
 0x126   :  { %604 = vrot.lane.b32.xlu0 %v4445_v50, %s4021_s24 }
 0x127   :  { %730 = vrot.lane.b32.xlu1 %v4438_v24, %s4022_s25 }
 0x128   :  { %v4578_v13 = vpop.permute.xlu1 %553 }
 0x129   :  { %7534 = vst [vmem:[#allocation26_spill] sm:$0xff] %v4578_v13 }
 0x12a   :  { %726 = vrot.lane.b32.xlu0 %v4432_v35, %s4022_s25 }
 0x12b   :  { %738 = vrot.lane.b32.xlu1 %v4522_v3, %s4022_s25 }
 0x12c   :  { %v4584_v30 = vpop.permute.xlu1 %643 }
 0x12d   :  { %v4586_v59 = vpop.permute.xlu0 %498 }
 0x12e   :  { %7535 = vst [vmem:[#allocation9_spill] sm:$0xff] %v4586_v59  ;;  %734 = vrot.lane.b32.xlu0 %v4445_v50, %s4022_s25 }
 0x12f   :  { %787 = vrot.lane.b32.xlu1 %v4438_v24, %s4023_s26 }
 0x130   :  { %v4592_v60 = vpop.permute.xlu1 %651 }
 0x131   :  { %v4594_v18 = vpop.permute.xlu0 %502 }
 0x132   :  { %7536 = vst [vmem:[#allocation12_spill] sm:$0xff] %v4594_v18  ;;  %783 = vrot.lane.b32.xlu0 %v4432_v35, %s4023_s26 }
 0x133   :  { %795 = vrot.lane.b32.xlu1 %v4522_v3, %s4023_s26 }
 0x134   :  { %v4600_v63 = vpop.permute.xlu1 %598 }
 0x135   :  { %v4602_v5 = vpop.permute.xlu0 %506 }
 0x136   :  { %7537 = vst [vmem:[#allocation2_spill] sm:$0xff] %v4602_v5  ;;  %791 = vrot.lane.b32.xlu0 %v4445_v50, %s4023_s26 }
 0x137   :  { %844 = vrot.lane.b32.xlu1 %v4438_v24, %s4024_s27 }
 0x138   :  { %v4608_v4 = vpop.permute.xlu1 %606 }
 0x139   :  { %v4610_v61 = vpop.permute.xlu0 %549 }
 0x13a   :  { %840 = vrot.lane.b32.xlu0 %v4432_v35, %s4024_s27  ;;  %v566_v20 = vsel %vm561_vm14, %v4570_v46, %v4610_v61 }
 0x13b   :  { %852 = vrot.lane.b32.xlu1 %v4522_v3, %s4024_s27 }
 0x13c   :  { %v4616_v47 = vpop.permute.xlu1 %728 }
 0x13d   :  { %v4618_v32 = vpop.permute.xlu0 %557 }
 0x13e   :  { %7538 = vst [vmem:[#allocation3_spill] sm:$0xff] %v4618_v32  ;;  %848 = vrot.lane.b32.xlu0 %v4445_v50, %s4024_s27  ;;  %v568_v0 = vsel %vm561_vm14, %v4618_v32, %v4570_v46 }
 0x13f   :  { %901 = vrot.lane.b32.xlu1 %v4438_v24, %s4025_s28 }
 0x140   :  { %v4624_v54 = vpop.permute.xlu1 %736 }
 0x141   :  { %v4626_v53 = vpop.permute.xlu0 %647 }
 0x142   :  { %897 = vrot.lane.b32.xlu0 %v4432_v35, %s4025_s28 }
 0x143   :  { %909 = vrot.lane.b32.xlu1 %v4522_v3, %s4025_s28 }
 0x144   :  { %v4636_v10 = vpop.permute.xlu1 %785 }
 0x145   :  { %v4632_v8 = vpop.permute.xlu0 %655 }
 0x146   :  { %905 = vrot.lane.b32.xlu0 %v4445_v50, %s4025_s28 }
 0x147   :  { %989 = vperm.xlu1 %3894, %v7516_v11  }
 0x148   :  { %v4644_v40 = vpop.permute.xlu1 %793 }
 0x149   :  { %v4639_v14 = vpop.permute.xlu0 %594  ;;  %7540 = vst [vmem:[#allocation33_spill] sm:$0xff] %v4644_v40  ;;  %v519_v40 = vsel %vm512_vm10, %v4563_v15, %v4544_v45 }
 0x14a   :  { %973 = vperm.xlu0 %3893, %v7516_v11  }
 0x14b   :  { %3895 = vset.pattern.permute.xlu1 %v7539_v27  ;;  %v17_v27 = vand.u32 255, %v13_v21 }
 0x14c   :  { %1013 = vperm.xlu1 %3895, %v7516_v11   ;;  %v4653_v41 = vpop.permute.xlu1 %842  ;;  %v7185_v11 = vmov 26  }
 0x14d   :  { %v4646_v44 = vpop.permute.xlu0 %602 }
 0x14e   :  { %3896 = vset.pattern.permute.xlu0 %v4027_v28  ;;  %v18_v28 = vand.u32 255, %v14_v49  ;;  %v15_v49 = vadd.s32 384, %v4673_v23 }
 0x14f   :  { %1065 = vperm.xlu0 %3896, %v7513_v39  }
 0x150   :  { %3897 = vset.pattern.permute.xlu1 %v7188_v36  ;;  %v4659_v62 = vpop.permute.xlu1 %850  ;;  %v4696_v36 = vand.u32 15, %v18_v28 }
 0x151   :  { %v4650_v55 = vpop.permute.xlu0 %724  ;;  %1113 = vperm.xlu1 %3897, %v7513_v39  }
 0x152   :  { %vm42_vm3 = vcmp.ge.s32.totalorder %v4696_v36, 1  ;;  %vm7219_vm12 = vcmp.le.s32.totalorder %v4696_v36, 14 }
 0x153   :  { %v4809_v57 = vsel %vm42_vm3, 1.0, %v7563_v42 }
 0x154   :  { %v4665_v6 = vpop.permute.xlu1 %899  ;;  %7565 = vst [vmem:[#allocation52_spill] sm:$0xff] %v4809_v57 }
 0x155   :  { %3898 = vset.pattern.permute.xlu1 %v7187_v31  ;;  %v4656_v29 = vpop.permute.xlu0 %732  ;;  %7541 = vst [vmem:[#allocation34_spill] sm:$0xff] %v4665_v6  ;;  %v4694_v31 = vshra.s32 %v18_v28, 4 }
 0x156   :  { %1209 = vperm.xlu1 %3898, %v7513_v39  }
 0x157   :  { %vm34_vm2 = vcmp.ge.s32.totalorder %v4694_v31, 1 }
 0x158   :  { %v4675_v26 = vpop.permute.xlu1 %907  ;;  %vm50_vm7 = vmand %vm34_vm2, %vm42_vm3 }
 0x159   :  { %v4663_v25 = vpop.permute.xlu0 %781  ;;  %7543 = vst [vmem:[#allocation35_spill] sm:$0xff] %v4675_v26 }
 0x15a   :  { %3899 = vset.pattern.permute.xlu1 %v7186_v33  ;;  %v4692_v33 = vand.u32 15, %v17_v27 }
 0x15b   :  { %1161 = vperm.xlu1 %3899, %v7513_v39  }
 0x15c   :  { %vm41_vm1 = vcmp.ge.s32.totalorder %v4692_v33, 1  ;;  %vm45_vm11 = vcmp.le.s32.totalorder %v4692_v33, 14 }
 0x15d   :  { %v4669_v9 = vpop.permute.xlu0 %789 }
 0x15f   :  { %3900 = vset.pattern.permute.xlu1 %v7185_v11  ;;  %v16_v11 = vand.u32 255, %v4673_v23 }
 0x160   :  { %1289 = vperm.xlu1 %3900, %v7513_v39  }
 0x161   :  { %v4678_v37 = vpop.permute.xlu0 %838  ;;  %v4698_v3 = vshra.s32 %v16_v11, 4 }
 0x163   :  { %vm32_vm4 = vcmp.ge.s32.totalorder %v4698_v3, 1 }
 0x164   :  { %3901 = vset.pattern.permute.xlu1 %v7184_v19 }
 0x165   :  { %1401 = vperm.xlu1 %3901, %v7513_v39   ;;  %v4685_v19 = vpop.permute.xlu0 %846  ;;  %v4690_v39 = vshra.s32 %v17_v27, 4 }
 0x167   :  { %vm33_vm0 = vcmp.ge.s32.totalorder %v4690_v39, 1 }
 0x168   :  { %vm49_vm6 = vmand %vm33_vm0, %vm41_vm1 }
 0x169   :  { %v4681_v38 = vpop.permute.xlu1 %1009  ;;  %3902 = vset.pattern.permute.xlu1 %v7191_v43  ;;  %v4700_v43 = vand.u32 15, %v16_v11  ;;  %v4705_v50 = vpop.permute.xlu0 %895  ;;  %v19_v11 = vand.u32 255, %v15_v49  ;;  %v7210_v49 = vmov 0.0   ;;  %vm4780_vm15 = vmand %vm33_vm0, %vm45_vm11 }
 0x16a   :  { %7544 = vst [vmem:[#allocation36_spill] sm:$0xff] %v4681_v38  ;;  %7547 = vst [vmem:[#allocation39_spill] sm:$0xff] %v4705_v50  ;;  %v4749_v5 = vsel %vm33_vm0, 1.0, %v7210_v49  ;;  %v4754_v59 = vsel %vm34_vm2, 1.0, %v7210_v49  ;;  %v4774_v38 = vsel %vm32_vm4, 1.0, %v7210_v49  ;;  %v4850_v46 = vsel %vm4780_vm15, 1.0, %v7563_v42 }
 0x16b   :  { %vm40_vm5 = vcmp.ge.s32.totalorder %v4700_v43, 1  ;;  %vm44_vm9 = vcmp.le.s32.totalorder %v4700_v43, 14  ;;  %v4738_v24 = vshra.s32 %v19_v11, 4  ;;  %v4741_v35 = vand.u32 15, %v19_v11  ;;  %7554 = vst [vmem:[#allocation46_spill] sm:$0xff] %v4749_v5  ;;  %7555 = vst [vmem:[#allocation47_spill] sm:$0xff] %v4754_v59 }
 0x16c   :  { %vm48_vm8 = vmand %vm32_vm4, %vm40_vm5  ;;  %7559 = vst [vmem:[#allocation49_spill] sm:$0xff] %v4774_v38  ;;  %v4872_v11 = vsel %vm44_vm9, 1.0, %v7563_v42  ;;  %v571_v26 = vmul.f32 %v4749_v5, %v566_v20  ;;  %v570_v6 = vmul.f32 %v4774_v38, %v568_v0  ;;  %vm797_vm15 = vcmp.lt.s32.totalorder %v4673_v23, 113 }
 0x16d   :  { %v4728_v28 = vpop.permute.xlu0 %903  ;;  %7552 = vst [vmem:[#allocation44_spill] sm:$0xff] %v4741_v35  ;;  %vm4760_vm13 = vmand %vm32_vm4, %vm44_vm9  ;;  %vm659_vm4 = vcmp.lt.s32.totalorder %v4673_v23, 1 }
 0x16e   :  { %v4687_v12 = vpop.permute.xlu1 %583  ;;  %7549 = vst [vmem:[#allocation41_spill] sm:$0xff] %v4728_v28  ;;  %vm70_vm0 = vmand %vm34_vm2, %vm7219_vm12  ;;  %vm610_vm2 = vcmp.lt.s32.totalorder %v4673_v23, 15  ;;  %v662_v20 = vsel %vm659_vm4, %v4626_v53, %v4592_v60 }
 0x16f   :  { %7545 = vst [vmem:[#allocation37_spill] sm:$0xff] %v4687_v12  ;;  %v4744_v12 = vsel %vm48_vm8, 1.0, %v7210_v49  ;;  %vm38_vm8 = vcmp.le.s32.totalorder %v4694_v31, 14  ;;  %7570 = vst [vmem:[#allocation55_spill] sm:$0xff] %v4850_v46  ;;  %v4853_v32 = vsel %vm70_vm0, 1.0, %v7563_v42  ;;  %v515_v46 = vsel %vm512_vm10, %v4550_v51, %v4558_v58 }
 0x170   :  { %7553 = vst [vmem:[#allocation45_spill] sm:$0xff] %v4744_v12  ;;  %7571 = vst [vmem:[#allocation56_spill] sm:$0xff] %v4853_v32  ;;  %v4878_v32 = vsel %vm45_vm11, 1.0, %v7563_v42  ;;  %v521_v33 = vmul.f32 %v4744_v12, %v519_v40  ;;  %v4967_v40 = vsel %vm38_vm8, 1.0, %v7563_v42 }
 0x171   :  { %7575 = vst [vmem:[#allocation58_spill] sm:$0xff] %v4872_v11  ;;  %7576 = vst [vmem:[#allocation59_spill] sm:$0xff] %v4878_v32 }
 0x172   :  { %7592 = vst [vmem:[#allocation69_spill] sm:$0xff] %v4967_v40  ;;  %v537_v43 = vmul.f32 %v4490_v1, %v521_v33 }
 0x173   :  { %v4702_v21 = vpop.permute.xlu1 %681 }
 0x174   :  { %7546 = vst [vmem:[#allocation38_spill] sm:$0xff] %v4702_v21  ;;  %v4736_v21 = vsel %vm50_vm7, 1.0, %v7210_v49  ;;  %vm37_vm7 = vcmp.le.s32.totalorder %v4690_v39, 14 }
 0x175   :  { %7551 = vst [vmem:[#allocation43_spill] sm:$0xff] %v4736_v21 }
 0x178   :  { %v4717_v27 = vpop.permute.xlu1 %632 }
 0x179   :  { %7548 = vst [vmem:[#allocation40_spill] sm:$0xff] %v4717_v27  ;;  %v4733_v27 = vsel %vm49_vm6, 1.0, %v7210_v49  ;;  %vm36_vm6 = vcmp.le.s32.totalorder %v4698_v3, 14  ;;  %v4793_v49 = vmul.f32 %v4506_v2, %v4388_v7  ;;  %v4814_v2 = vsel %vm40_vm5, 1.0, %v7563_v42 }
 0x17a   :  { %7550 = vst [vmem:[#allocation42_spill] sm:$0xff] %v4733_v27  ;;  %7566 = vst [vmem:[#allocation53_spill] sm:$0xff] %v4814_v2  ;;  %v564_v7 = vsel %vm561_vm14, %v4610_v61, %v4578_v13  ;;  %v664_v61 = vsel %vm659_vm4, %v4584_v30, %v4626_v53  ;;  %v4845_v13 = vsel %vm4760_vm13, 1.0, %v7563_v42  ;;  %vm740_vm13 = vcmp.lt.s32.totalorder %v4673_v23, 127 }
 0x17b   :  { %vm4834_vm12 = vmand %vm36_vm6, %vm40_vm5  ;;  %7569 = vst [vmem:[#allocation54_spill] sm:$0xff] %v4845_v13  ;;  %v572_v50 = vmul.f32 %v4754_v59, %v564_v7  ;;  %v522_v17 = vmul.f32 %v4733_v27, %v517_v48  ;;  %v4944_v52 = vsel %vm36_vm6, 1.0, %v7563_v42  ;;  %v670_v3 = vmul.f32 %v4809_v57, %v662_v20 }
 0x17c   :  { %vm4859_vm5 = vmand %vm37_vm7, %vm41_vm1  ;;  %v4919_v45 = vsel %vm4834_vm12, 1.0, %v7563_v42  ;;  %7588 = vst [vmem:[#allocation66_spill] sm:$0xff] %v4944_v52  ;;  %vm854_vm12 = vcmp.lt.s32.totalorder %v4673_v23, 112  ;;  %v666_v7 = vsel %vm659_vm4, %v4632_v8, %v4584_v30  ;;  %v617_v20 = vsel %vm610_vm2, %v4608_v4, %v4639_v14 }
 0x17d   :  { %v4764_v18 = vpop.permute.xlu1 %762  ;;  %vm4908_vm0 = vmand %vm36_vm6, %vm44_vm9  ;;  %7582 = vst [vmem:[#allocation62_spill] sm:$0xff] %v4919_v45  ;;  %v4924_v51 = vsel %vm4859_vm5, 1.0, %v7563_v42  ;;  %v588_v48 = vmul.f32 %v4554_v56, %v572_v50  ;;  %vm911_vm6 = vcmp.lt.s32.totalorder %v4673_v23, 111  ;;  %v538_v31 = vmul.f32 %v4490_v1, %v522_v17 }
 0x17e   :  { %7558 = vst [vmem:[#allocation48_spill] sm:$0xff] %v4764_v18  ;;  %v4785_v18 = vpop.permute.xlu0 %534  ;;  %7583 = vst [vmem:[#allocation63_spill] sm:$0xff] %v4924_v51  ;;  %v4972_v50 = vsel %vm4908_vm0, 1.0, %v7563_v42  ;;  %v686_v30 = vmul.f32 %v4499_v22, %v670_v3  ;;  %v745_v33 = vsel %vm740_vm13, %v4650_v55, %v4616_v47  ;;  %vm39_vm0 = vcmp.le.s32.totalorder %v4738_v24, 14 }
 0x17f   :  { %7562 = vst [vmem:[#allocation50_spill] sm:$0xff] %v4785_v18  ;;  %v4804_v18 = vsel %vm41_vm1, 1.0, %v7563_v42  ;;  %vm98_vm1 = vmand %vm38_vm8, %vm42_vm3  ;;  %vm7578_vm3 = vcmp.le.s32.totalorder %v4696_v36, 14  ;;  %v4962_v36 = vsel %vm37_vm7, 1.0, %v7563_v42  ;;  %v5002_v17 = vadd.f32 %v4793_v49, %v588_v48 }
 0x180   :  { %7564 = vst [vmem:[#allocation51_spill] sm:$0xff] %v4804_v18  ;;  %v669_v35 = vmul.f32 %v4804_v18, %v664_v61  ;;  %v4927_v0 = vsel %vm98_vm1, 1.0, %v7563_v42  ;;  %vm4933_vm9 = vmand %vm37_vm7, %vm45_vm11  ;;  %v523_v61 = vmul.f32 %v4736_v21, %v515_v46  ;;  %v587_v18 = vmul.f32 %v4554_v56, %v571_v26 }
 0x181   :  { %7584 = vst [vmem:[#allocation64_spill] sm:$0xff] %v4927_v0  ;;  %vm7589_vm5 = vmmov %vm7578_vm3  ;;  %v586_v46 = vmul.f32 %v4554_v56, %v570_v6  ;;  %v613_v49 = vsel %vm610_vm2, %v4600_v63, %v4646_v44  ;;  %v749_v3 = vmul.f32 %v4872_v11, %v745_v33  ;;  %vm35_vm7 = vcmp.ge.s32.totalorder %v4738_v24, 1  ;;  %v7602_v33 = vld [vmem:[#allocation34_spill] sm:$0xff]  ;;  %v7604_v11 = vld [vmem:[#allocation35_spill] sm:$0xff] }
 0x182   :  { %v4863_v28 = vpop.permute.xlu1 %876  ;;  %vm118_vm11 = vmand %vm38_vm8, %vm7589_vm5  ;;  %v685_v38 = vmul.f32 %v4499_v22, %v669_v35  ;;  %7591 = vst [vmem:[#allocation68_spill] sm:$0xff] %v4962_v36  ;;  %v4978_v35 = vsel %vm4933_vm9, 1.0, %v7563_v42  ;;  %v4987_v39 = vmul.f32 %v4490_v1, %v523_v61 }
 0x183   :  { %7574 = vst [vmem:[#allocation57_spill] sm:$0xff] %v4863_v28  ;;  %v4884_v28 = vpop.permute.xlu0 %705  ;;  %7593 = vst [vmem:[#allocation70_spill] sm:$0xff] %v4972_v50  ;;  %v4981_v6 = vsel %vm118_vm11, 1.0, %v7563_v42  ;;  %v5005_v61 = vadd.f32 %v4768_v16, %v586_v46  ;;  %v615_v16 = vsel %vm610_vm2, %v4639_v14, %v4600_v63  ;;  %v859_v46 = vsel %vm854_vm12, %v4678_v37, %v4653_v41 }
 0x184   :  { %7577 = vst [vmem:[#allocation60_spill] sm:$0xff] %v4884_v28  ;;  %v4901_v28 = vsel %vm7578_vm3, 1.0, %v7563_v42  ;;  %7594 = vst [vmem:[#allocation71_spill] sm:$0xff] %v4978_v35  ;;  %v5010_v12 = vadd.f32 %v685_v38, %v538_v31  ;;  %v619_v38 = vmul.f32 %v4845_v13, %v617_v20  ;;  %v855_v14 = vsel %vm854_vm12, %v4685_v19, %v4659_v62  ;;  %v7600_v13 = vld [vmem:[#allocation44_spill] sm:$0xff] }
 0x185   :  { %7579 = vst [vmem:[#allocation61_spill] sm:$0xff] %v4901_v28  ;;  %7595 = vst [vmem:[#allocation72_spill] sm:$0xff] %v4981_v6  ;;  %v857_v63 = vsel %vm854_vm12, %v4653_v41, %v4685_v19  ;;  %vm43_vm8 = vcmp.ge.s32.totalorder %v7600_v13, 1  ;;  %v7601_v41 = vld [vmem:[#allocation33_spill] sm:$0xff]  ;;  %vm47_vm1 = vcmp.le.s32.totalorder %v7600_v13, 14  ;;  %v5212_v13 = vsel %vm39_vm0, 1.0, %v7563_v42 }
 0x186   :  { %v4937_v53 = vpop.permute.xlu1 %510  ;;  %v798_v19 = vsel %vm797_vm15, %v4669_v9, %v7601_v41  ;;  %vm51_vm3 = vmand %vm35_vm7, %vm43_vm8 }
 0x187   :  { %7587 = vst [vmem:[#allocation65_spill] sm:$0xff] %v4937_v53  ;;  %v7606_v53 = vld [vmem:[#allocation55_spill] sm:$0xff]  ;;  %vm5138_vm9 = vmand %vm35_vm7, %vm47_vm1 }
 0x188   :  { %v4955_v59 = vpop.permute.xlu0 %819  ;;  %vm5151_vm5 = vmand %vm39_vm0, %vm43_vm8 }
 0x189   :  { %7590 = vst [vmem:[#allocation67_spill] sm:$0xff] %v4955_v59  ;;  %v4999_v59 = vadd.f32 %v4789_v34, %v587_v18  ;;  %v743_v34 = vsel %vm740_vm13, %v4616_v47, %v4656_v29  ;;  %v668_v18 = vmul.f32 %v4814_v2, %v666_v7  ;;  %v741_v47 = vsel %vm740_vm13, %v4656_v29, %v4624_v54  ;;  %v7605_v2 = vld [vmem:[#allocation41_spill] sm:$0xff]  ;;  %vm5176_vm11 = vmand %vm39_vm0, %vm47_vm1 }
 0x18a   :  { %v4983_v26 = vpop.permute.xlu1 %551  ;;  %v750_v31 = vmul.f32 %v4878_v32, %v743_v34  ;;  %v802_v29 = vsel %vm797_vm15, %v4663_v25, %v4636_v10  ;;  %v800_v7 = vsel %vm797_vm15, %v4636_v10, %v4669_v9  ;;  %v7603_v34 = vld [vmem:[#allocation39_spill] sm:$0xff]  ;;  %v912_v10 = vsel %vm911_vm6, %v7605_v2, %v7604_v11 }
 0x18b   :  { %7596 = vst [vmem:[#allocation73_spill] sm:$0xff] %v4983_v26  ;;  %v916_v32 = vsel %vm911_vm6, %v7603_v34, %v7602_v33  ;;  %v914_v21 = vsel %vm911_vm6, %v7602_v33, %v7605_v2  ;;  %v751_v27 = vmul.f32 %v4901_v28, %v741_v47  ;;  %v864_v9 = vmul.f32 %v4962_v36, %v857_v63  ;;  %v7607_v26 = vld [vmem:[#allocation56_spill] sm:$0xff] }
 0x18c   :  { %v5007_v57 = vpop.permute.xlu0 %547  ;;  %v621_v1 = vmul.f32 %v7607_v26, %v613_v49  ;;  %v806_v56 = vmul.f32 %v4919_v45, %v802_v29  ;;  %v807_v11 = vmul.f32 %v4924_v51, %v800_v7  ;;  %v808_v2 = vmul.f32 %v4927_v0, %v798_v19  ;;  %v7609_v36 = vld [vmem:[#allocation16_spill] sm:$0xff] }
 0x18d   :  { %7597 = vst [vmem:[#allocation74_spill] sm:$0xff] %v5007_v57  ;;  %v620_v57 = vmul.f32 %v7606_v53, %v615_v16  ;;  %v920_v47 = vmul.f32 %v4972_v50, %v916_v32  ;;  %v922_v63 = vmul.f32 %v4981_v6, %v912_v10  ;;  %v765_v49 = vmul.f32 %v7609_v36, %v749_v3  ;;  %v7611_v6 = vld [vmem:[#allocation20_spill] sm:$0xff] }
 0x18e   :  { %v5030_v48 = vpop.permute.xlu1 %559  ;;  %v766_v29 = vmul.f32 %v7609_v36, %v750_v31  ;;  %v767_v7 = vmul.f32 %v7609_v36, %v751_v27  ;;  %v823_v3 = vmul.f32 %v7611_v6, %v807_v11  ;;  %v824_v31 = vmul.f32 %v7611_v6, %v808_v2  ;;  %7631 = vst [vmem:[#allocation16_spill] sm:$0xff] %v5212_v13 }
 0x18f   :  { %7598 = vst [vmem:[#allocation75_spill] sm:$0xff] %v5030_v48  ;;  %v865_v48 = vmul.f32 %v4967_v40, %v855_v14  ;;  %v684_v14 = vmul.f32 %v4499_v22, %v668_v18  ;;  %v7608_v40 = vld [vmem:[#allocation21_spill] sm:$0xff] }
 0x190   :  { %v5058_v20 = vpop.permute.xlu0 %555  ;;  %v635_v16 = vmul.f32 %v7608_v40, %v619_v38  ;;  %v636_v10 = vmul.f32 %v7608_v40, %v620_v57  ;;  %v637_v18 = vmul.f32 %v7608_v40, %v621_v1  ;;  %v822_v38 = vmul.f32 %v7611_v6, %v806_v56 }
 0x191   :  { %7599 = vst [vmem:[#allocation76_spill] sm:$0xff] %v5058_v20  ;;  %v863_v20 = vmul.f32 %v4944_v52, %v859_v46  ;;  %v921_v46 = vmul.f32 %v4978_v35, %v914_v21  ;;  %v7610_v52 = vld [vmem:[#allocation29_spill] sm:$0xff]  ;;  %v7612_v35 = vld [vmem:[#allocation22_spill] sm:$0xff]  ;;  %v692_v51 = vadd.f32 %v684_v14, %v537_v43 }
 0x192   :  { %v5082_v5 = vpop.permute.xlu1 %649  ;;  %v880_v32 = vmul.f32 %v7610_v52, %v864_v9  ;;  %v881_v21 = vmul.f32 %v7610_v52, %v865_v48  ;;  %v936_v27 = vmul.f32 %v7612_v35, %v920_v47  ;;  %v938_v9 = vmul.f32 %v7612_v35, %v922_v63 }
 0x193   :  { %v879_v19 = vmul.f32 %v7610_v52, %v863_v20  ;;  %v937_v20 = vmul.f32 %v7612_v35, %v921_v46  ;;  %v694_v48 = vadd.f32 %v686_v30, %v4987_v39  ;;  %v773_v57 = vadd.f32 %v765_v49, %v635_v16  ;;  %v7633_v49 = vld [vmem:[#allocation36_spill] sm:$0xff] }
 0x194   :  { %v5092_v33 = vpop.permute.xlu0 %645  ;;  %v774_v45 = vadd.f32 %v766_v29, %v636_v10  ;;  %v775_v1 = vadd.f32 %v767_v7, %v637_v18  ;;  %v888_v11 = vadd.f32 %v880_v32, %v4999_v59  ;;  %v889_v2 = vadd.f32 %v881_v21, %v5002_v17  ;;  %v7619_v32 = vld [vmem:[#allocation30_spill] sm:$0xff]  ;;  %v7620_v21 = vld [vmem:[#allocation23_spill] sm:$0xff] }
 0x195   :  { %v887_v56 = vadd.f32 %v879_v19, %v5005_v61  ;;  %v830_v47 = vadd.f32 %v822_v38, %v692_v51  ;;  %v831_v46 = vadd.f32 %v823_v3, %v5010_v12  ;;  %v832_v39 = vadd.f32 %v824_v31, %v694_v48  ;;  %v7621_v18 = vld [vmem:[#allocation31_spill] sm:$0xff]  ;;  %v7622_v3 = vld [vmem:[#allocation32_spill] sm:$0xff]  ;;  %v7625_v48 = vld [vmem:[#allocation26_spill] sm:$0xff] }
 0x196   :  { %v5102_v50 = vpop.permute.xlu1 %657  ;;  %v944_v43 = vadd.f32 %v936_v27, %v773_v57  ;;  %v945_v30 = vadd.f32 %v937_v20, %v774_v45  ;;  %v946_v61 = vadd.f32 %v938_v9, %v775_v1  ;;  %v5132_v12 = vsel %vm51_vm3, 1.0, %v7563_v42  ;;  %v7624_v9 = vld [vmem:[#allocation3_spill] sm:$0xff] }
 0x197   :  { %v952_v59 = vadd.f32 %v887_v56, %v830_v47  ;;  %v953_v17 = vadd.f32 %v888_v11, %v831_v46  ;;  %v954_v14 = vadd.f32 %v889_v2, %v832_v39  ;;  %7613 = vst [vmem:[#allocation44_spill] sm:$0xff] %v5132_v12  ;;  %v5145_v45 = vsel %vm35_vm7, 1.0, %v7563_v42 }
 0x198   :  { %v5112_v0 = vpop.permute.xlu0 %653  ;;  %7616 = vst [vmem:[#allocation33_spill] sm:$0xff] %v5145_v45  ;;  %v992_v10 = vmul.f32 %v7620_v21, %v7619_v32  ;;  %v993_v38 = vmul.f32 %v7620_v21, %v7621_v18  ;;  %v994_v31 = vmul.f32 %v7620_v21, %v7622_v3  ;;  %v5164_v27 = vsel %vm43_vm8, 1.0, %v7563_v42 }
 0x199   :  { %v960_v29 = vadd.f32 %v952_v59, %v944_v43  ;;  %v961_v7 = vadd.f32 %v953_v17, %v945_v30  ;;  %v962_v19 = vadd.f32 %v954_v14, %v946_v61  ;;  %7623 = vst [vmem:[#allocation34_spill] sm:$0xff] %v5164_v27  ;;  %v562_v57 = vsel %vm561_vm14, %v7625_v48, %v7624_v9  ;;  %v7637_v48 = vld [vmem:[#allocation25_spill] sm:$0xff] }
 0x19a   :  { %v5118_v26 = vpop.permute.xlu1 %596  ;;  %v660_v47 = vsel %vm659_vm4, %v4592_v60, %v4632_v8  ;;  %v5190_v46 = vsel %vm5138_vm9, 1.0, %v7563_v42  ;;  %v5195_v39 = vsel %vm47_vm1, 1.0, %v7563_v42  ;;  %v5200_v43 = vsel %vm5151_vm5, 1.0, %v7563_v42 }
 0x19b   :  { %7628 = vst [vmem:[#allocation39_spill] sm:$0xff] %v5190_v46  ;;  %7629 = vst [vmem:[#allocation41_spill] sm:$0xff] %v5195_v39  ;;  %v747_v60 = vsel %vm740_vm13, %v4624_v54, %v4650_v55  ;;  %v573_v17 = vmul.f32 %v5145_v45, %v562_v57  ;;  %v861_v14 = vsel %vm854_vm12, %v4659_v62, %v4678_v37  ;;  %v5221_v54 = vsel %vm5176_vm11, 1.0, %v7563_v42  ;;  %v7638_v57 = vld [vmem:[#allocation27_spill] sm:$0xff] }
 0x19c   :  { %v5126_v63 = vpop.permute.xlu0 %933  ;;  %7630 = vst [vmem:[#allocation21_spill] sm:$0xff] %v5200_v43  ;;  %7632 = vst [vmem:[#allocation29_spill] sm:$0xff] %v5221_v54  ;;  %v513_v51 = vsel %vm512_vm10, %v4558_v58, %v4563_v15  ;;  %v671_v24 = vmul.f32 %v5164_v27, %v660_v47  ;;  %v611_v62 = vsel %vm610_vm2, %v4646_v44, %v4608_v4  ;;  %v7634_v58 = vld [vmem:[#allocation35_spill] sm:$0xff]  ;;  %v7636_v44 = vld [vmem:[#allocation24_spill] sm:$0xff] }
 0x19d   :  { %v752_v37 = vmul.f32 %v5195_v39, %v747_v60  ;;  %v918_v15 = vsel %vm911_vm6, %v7634_v58, %v7603_v34  ;;  %v866_v32 = vmul.f32 %v5212_v13, %v861_v14  ;;  %v524_v4 = vmul.f32 %v5132_v12, %v513_v51  ;;  %v7639_v60 = vld [vmem:[#allocation19_spill] sm:$0xff]  ;;  %v7641_v58 = vld [vmem:[#allocation74_spill] sm:$0xff] }
 0x19e   :  { %v5129_v16 = vpop.permute.xlu1 %600  ;;  %v589_v3 = vmul.f32 %v7636_v44, %v573_v17  ;;  %v923_v34 = vmul.f32 %v5221_v54, %v918_v15  ;;  %v711_v1 = vmul.f32 %v7638_v57, %v7637_v48  ;;  %v7643_v44 = vld [vmem:[#allocation9_spill] sm:$0xff] }
 0x1a0   :  { %v939_v51 = vmul.f32 %v7612_v35, %v923_v34  ;;  %v7645_v34 = vld [vmem:[#allocation65_spill] sm:$0xff] }
 0x1a1   :  { %v5166_v20 = vpop.permute.xlu0 %969  ;;  %v520_v57 = vsel %vm512_vm10, %v7645_v34, %v7643_v44 }
 0x1a2   :  { %v976_v56 = vadd.f32 %v5166_v20, %v960_v29  ;;  %v977_v11 = vadd.f32 %v5166_v20, %v961_v7  ;;  %v978_v2 = vadd.f32 %v5166_v20, %v962_v19  ;;  %v5206_v59 = vpop.permute.xlu1 %608  ;;  %v804_v19 = vsel %vm797_vm15, %v7601_v41, %v4663_v25 }
 0x1a3   :  { %v622_v25 = vmul.f32 %v5190_v46, %v611_v62  ;;  %v809_v41 = vmul.f32 %v5200_v43, %v804_v19  ;;  %v7640_v19 = vld [vmem:[#allocation73_spill] sm:$0xff] }
 0x1a4   :  { %v1000_v8 = vadd.f32 %v992_v10, %v976_v56  ;;  %v1001_v30 = vadd.f32 %v993_v38, %v977_v11  ;;  %v1002_v61 = vadd.f32 %v994_v31, %v978_v2  ;;  %v687_v56 = vmul.f32 %v4499_v22, %v671_v24 }
 0x1a5   :  { %v5223_v55 = vpop.permute.xlu0 %604  ;;  %v768_v11 = vmul.f32 %v7609_v36, %v752_v37  ;;  %v882_v2 = vmul.f32 %v7610_v52, %v866_v32  ;;  %v638_v17 = vmul.f32 %v7608_v40, %v622_v25  ;;  %v825_v14 = vmul.f32 %v7611_v6, %v809_v41  ;;  %v7644_v25 = vld [vmem:[#allocation2_spill] sm:$0xff] }
 0x1a6   :  { %v1016_v29 = vadd.f32 %v7633_v49, %v1000_v8  ;;  %v1017_v7 = vadd.f32 %v7633_v49, %v1001_v30  ;;  %v1018_v10 = vadd.f32 %v7633_v49, %v1002_v61  ;;  %v5258_v9 = vpop.permute.xlu1 %730  ;;  %v540_v8 = vmul.f32 %v7639_v60, %v524_v4  ;;  %v7642_v4 = vld [vmem:[#allocation12_spill] sm:$0xff] }
 0x1a7   :  { %v719_v30 = vadd.f32 %v711_v1, %v589_v3  ;;  %v776_v52 = vadd.f32 %v768_v11, %v638_v17  ;;  %v567_v15 = vsel %vm561_vm14, %v7641_v58, %v7640_v19  ;;  %v518_v3 = vsel %vm512_vm10, %v7643_v44, %v7642_v4  ;;  %v7646_v1 = vld [vmem:[#allocation46_spill] sm:$0xff]  ;;  %v7648_v11 = vld [vmem:[#allocation76_spill] sm:$0xff] }
 0x1a8   :  { %v5247_v18 = vmax.f32 %v1016_v29, 0.0  ;;  %v5249_v38 = vmax.f32 %v1017_v7, 0.0  ;;  %v5269_v47 = vmax.f32 %v1018_v10, 0.0  ;;  %v695_v22 = vadd.f32 %v687_v56, %v540_v8  ;;  %v7649_v17 = vld [vmem:[#allocation42_spill] sm:$0xff] }
 0x1a9   :  { %v5253_v31 = vpop.permute.xlu0 %726  ;;  %v890_v36 = vadd.f32 %v882_v2, %v719_v30  ;;  %v947_v62 = vadd.f32 %v939_v51, %v776_v52  ;;  %v995_v10 = vmul.f32 %v7620_v21, %v7637_v48  ;;  %v516_v41 = vsel %vm512_vm10, %v7642_v4, %v7644_v25  ;;  %v7647_v21 = vld [vmem:[#allocation75_spill] sm:$0xff] }
 0x1aa   :  { %7635 = vst [vmem:[#allocation20_spill] sm:$0xff] %v5247_v18  ;;  %1036 = vrot.lane.b32.xlu0 %v5249_v38, %s4018_s21  ;;  %1032 = vrot.lane.b32.xlu1 %v5247_v18, %s4018_s21  ;;  %v5281_v24 = vpop.permute.xlu1 %738  ;;  %v833_v7 = vadd.f32 %v825_v14, %v695_v22  ;;  %v569_v48 = vsel %vm561_vm14, %v7647_v21, %v7641_v58  ;;  %v7650_v51 = vld [vmem:[#allocation43_spill] sm:$0xff] }
 0x1ab   :  { %v565_v2 = vsel %vm561_vm14, %v7640_v19, %v7648_v11  ;;  %v665_v60 = vsel %vm659_vm4, %v5092_v33, %v5082_v5  ;;  %v526_v14 = vmul.f32 %v7649_v17, %v518_v3  ;;  %v527_v22 = vmul.f32 %v7650_v51, %v516_v41  ;;  %v7655_v4 = vld [vmem:[#allocation47_spill] sm:$0xff]  ;;  %v7657_v41 = vld [vmem:[#allocation8_spill] sm:$0xff] }
 0x1ac   :  { %v955_v40 = vadd.f32 %v890_v36, %v833_v7  ;;  %v514_v52 = vsel %vm512_vm10, %v7644_v25, %v7645_v34  ;;  %v7651_v36 = vld [vmem:[#allocation45_spill] sm:$0xff]  ;;  %v667_v58 = vsel %vm659_vm4, %v5102_v50, %v5092_v33  ;;  %v576_v44 = vmul.f32 %v7655_v4, %v565_v2  ;;  %v7656_v3 = vld [vmem:[#allocation51_spill] sm:$0xff]  ;;  %v7658_v34 = vld [vmem:[#allocation60_spill] sm:$0xff] }
 0x1ad   :  { %v5272_v61 = vpop.permute.xlu0 %734  ;;  %v525_v7 = vmul.f32 %v7651_v36, %v520_v57  ;;  %v673_v25 = vmul.f32 %v7656_v3, %v665_v60  ;;  %v712_v57 = vmul.f32 %v7658_v34, %v7657_v41  ;;  %v563_v2 = vsel %vm561_vm14, %v7648_v11, %v7647_v21  ;;  %v7662_v60 = vld [vmem:[#allocation53_spill] sm:$0xff]  ;;  %v7663_v11 = vld [vmem:[#allocation38_spill] sm:$0xff] }
 0x1ae   :  { %1080 = vrot.lane.b32.xlu0 %v5247_v18, %s4019_s22  ;;  %1040 = vrot.lane.b32.xlu1 %v5269_v47, %s4018_s21  ;;  %v963_v6 = vadd.f32 %v955_v40, %v947_v62  ;;  %v788_v37 = vpop.permute.xlu1 %787  ;;  %v7652_v62 = vld [vmem:[#allocation37_spill] sm:$0xff] }
 0x1af   :  { %v592_v21 = vmul.f32 %v7652_v62, %v576_v44  ;;  %v744_v44 = vsel %vm740_vm13, %v5258_v9, %v5272_v61 }
 0x1b0   :  { %v979_v32 = vadd.f32 %v5166_v20, %v963_v6  ;;  %v575_v20 = vmul.f32 %v7646_v1, %v567_v15  ;;  %v7653_v6 = vld [vmem:[#allocation49_spill] sm:$0xff]  ;;  %v7654_v15 = vld [vmem:[#allocation50_spill] sm:$0xff] }
 0x1b1   :  { %v5283_v29 = vpop.permute.xlu0 %783  ;;  %v574_v19 = vmul.f32 %v7653_v6, %v569_v48  ;;  %v7660_v48 = vld [vmem:[#allocation15_spill] sm:$0xff] }
 0x1b2   :  { %1088 = vrot.lane.b32.xlu0 %v5269_v47, %s4019_s22  ;;  %1084 = vrot.lane.b32.xlu1 %v5249_v38, %s4019_s22  ;;  %v1003_v8 = vadd.f32 %v995_v10, %v979_v32  ;;  %v5333_v30 = vpop.permute.xlu1 %795  ;;  %v591_v40 = vmul.f32 %v7652_v62, %v575_v20  ;;  %v542_v32 = vmul.f32 %v7654_v15, %v526_v14  ;;  %v7659_v20 = vld [vmem:[#allocation13_spill] sm:$0xff] }
 0x1b3   :  { %v5354_v10 = vmul.f32 %v7654_v15, %v527_v22  ;;  %v713_v33 = vmul.f32 %v7658_v34, %v7659_v20  ;;  %v714_v36 = vmul.f32 %v7658_v34, %v7660_v48  ;;  %v5366_v14 = vmul.f32 %v5132_v12, %v514_v52  ;;  %v7665_v12 = vld [vmem:[#allocation58_spill] sm:$0xff] }
 0x1b4   :  { %v1019_v6 = vadd.f32 %v7633_v49, %v1003_v8  ;;  %v541_v22 = vmul.f32 %v7654_v15, %v525_v7  ;;  %v590_v3 = vmul.f32 %v7652_v62, %v574_v19  ;;  %v663_v49 = vsel %vm659_vm4, %v5082_v5, %v5112_v0  ;;  %v7668_v15 = vld [vmem:[#allocation56_spill] sm:$0xff] }
 0x1b5   :  { %v5289_v35 = vpop.permute.xlu0 %791  ;;  %7661 = vst [vmem:[#allocation22_spill] sm:$0xff] %v5366_v14  ;;  %v5374_v1 = vadd.f32 %v713_v33, %v591_v40  ;;  %v689_v52 = vmul.f32 %v7663_v11, %v673_v25  ;;  %v616_v7 = vsel %vm610_vm2, %v5118_v26, %v5129_v16  ;;  %v746_v5 = vsel %vm740_vm13, %v5253_v31, %v5258_v9  ;;  %v7664_v33 = vld [vmem:[#allocation52_spill] sm:$0xff] }
 0x1b6   :  { %1180 = vrot.lane.b32.xlu0 %v5249_v38, %s4020_s23  ;;  %1176 = vrot.lane.b32.xlu1 %v5247_v18, %s4020_s23  ;;  %v845_v8 = vpop.permute.xlu1 %844  ;;  %v5395_v40 = vmax.f32 %v1019_v6, 0.0  ;;  %v618_v19 = vsel %vm610_vm2, %v5206_v59, %v5118_v26  ;;  %v5410_v25 = vmul.f32 %v5145_v45, %v563_v2  ;;  %v614_v26 = vsel %vm610_vm2, %v5129_v16, %v5223_v55  ;;  %v7667_v2 = vld [vmem:[#allocation59_spill] sm:$0xff] }
 0x1b7   :  { %v753_v51 = vmul.f32 %v7665_v12, %v746_v5  ;;  %v803_v17 = vsel %vm797_vm15, %v5283_v29, %v788_v37  ;;  %v801_v9 = vsel %vm797_vm15, %v788_v37, %v5289_v35  ;;  %v5435_v45 = vadd.f32 %v712_v57, %v590_v3  ;;  %v7672_v3 = vld [vmem:[#allocation40_spill] sm:$0xff] }
 0x1b8   :  { %v697_v37 = vadd.f32 %v689_v52, %v542_v32  ;;  %v625_v14 = vmul.f32 %v7668_v15, %v614_v26  ;;  %v7674_v26 = vld [vmem:[#allocation67_spill] sm:$0xff] }
 0x1b9   :  { %v5323_v56 = vpop.permute.xlu0 %840 }
 0x1ba   :  { %1136 = vrot.lane.b32.xlu0 %v5269_v47, %s4021_s24  ;;  %1184 = vrot.lane.b32.xlu1 %v5269_v47, %s4020_s23  ;;  %v5440_v34 = vpop.permute.xlu1 %852  ;;  %v860_v32 = vsel %vm854_vm12, %v5323_v56, %v845_v8 }
 0x1bd   :  { %v849_v4 = vpop.permute.xlu0 %848 }
 0x1be   :  { %1264 = vrot.lane.b32.xlu0 %v5269_v47, %s4022_s25  ;;  %1128 = vrot.lane.b32.xlu1 %v5247_v18, %s4021_s24  ;;  %v672_v18 = vmul.f32 %v7662_v60, %v667_v58  ;;  %v742_v58 = vsel %vm740_vm13, %v5272_v61, %v5281_v24  ;;  %v674_v60 = vmul.f32 %v7664_v33, %v663_v49  ;;  %v7666_v61 = vld [vmem:[#allocation54_spill] sm:$0xff] }
 0x1bf   :  { %v623_v16 = vmul.f32 %v7666_v61, %v618_v19  ;;  %v754_v49 = vmul.f32 %v7667_v2, %v744_v44  ;;  %v755_v5 = vmul.f32 %v4901_v28, %v742_v58  ;;  %v5437_v33 = vadd.f32 %v714_v36, %v592_v21  ;;  %v7670_v61 = vld [vmem:[#allocation63_spill] sm:$0xff]  ;;  %v7671_v2 = vld [vmem:[#allocation48_spill] sm:$0xff]  ;;  %v902_v28 = vpop.permute.xlu1 %901 }
 0x1c0   :  { %v688_v6 = vmul.f32 %v7663_v11, %v672_v18  ;;  %v624_v18 = vmul.f32 %v7606_v53, %v616_v7  ;;  %v690_v7 = vmul.f32 %v7663_v11, %v674_v60  ;;  %v7669_v53 = vld [vmem:[#allocation62_spill] sm:$0xff]  ;;  %v811_v44 = vmul.f32 %v7670_v61, %v801_v9 }
 0x1c1   :  { %v5433_v12 = vpop.permute.xlu0 %897  ;;  %v810_v19 = vmul.f32 %v7669_v53, %v803_v17  ;;  %v769_v58 = vmul.f32 %v7671_v2, %v753_v51  ;;  %v799_v36 = vsel %vm797_vm15, %v5289_v35, %v5333_v30  ;;  %v29_v17 = vand.u32 63, %v4673_v23 }
 0x1c2   :  { %1316 = vrot.lane.b32.xlu0 %v5249_v38, %s4023_s26  ;;  %1132 = vrot.lane.b32.xlu1 %v5249_v38, %s4021_s24  ;;  %v696_v42 = vadd.f32 %v688_v6, %v541_v22  ;;  %v640_v57 = vmul.f32 %v7672_v3, %v624_v18  ;;  %v639_v51 = vmul.f32 %v7672_v3, %v623_v16  ;;  %v7675_v18 = vld [vmem:[#allocation64_spill] sm:$0xff] }
 0x1c3   :  { %v770_v22 = vmul.f32 %v7671_v2, %v754_v49  ;;  %v771_v35 = vmul.f32 %v7671_v2, %v755_v5  ;;  %v641_v60 = vmul.f32 %v7672_v3, %v625_v14  ;;  %v856_v21 = vsel %vm854_vm12, %v849_v4, %v5440_v34  ;;  %v7676_v49 = vld [vmem:[#allocation66_spill] sm:$0xff] }
 0x1c4   :  { %v858_v52 = vsel %vm854_vm12, %v845_v8, %v849_v4  ;;  %v5468_v6 = vshra.s32 %v29_v17, 3  ;;  %v826_v9 = vmul.f32 %v7674_v26, %v810_v19  ;;  %v812_v53 = vmul.f32 %v7675_v18, %v799_v36  ;;  %v7677_v36 = vld [vmem:[#allocation68_spill] sm:$0xff] }
 0x1c5   :  { %v827_v16 = vmul.f32 %v7674_v26, %v811_v44  ;;  %v867_v15 = vmul.f32 %v7676_v49, %v860_v32  ;;  %v906_v5 = vpop.permute.xlu0 %905  ;;  %v5475_v14 = vadd.f32 %v690_v7, %v5354_v10  ;;  %v5477_v61 = vadd.f32 %v769_v58, %v639_v51  ;;  %v7678_v7 = vld [vmem:[#allocation69_spill] sm:$0xff] }
 0x1c6   :  { %1324 = vrot.lane.b32.xlu0 %v5395_v40, %s4023_s26  ;;  %1260 = vrot.lane.b32.xlu1 %v5249_v38, %s4022_s25  ;;  %7673 = vst [vmem:[#allocation30_spill] sm:$0xff] %v5468_v6  ;;  %v7297_v4 = vshra.s32 %v4673_v23, 6  ;;  %v1755_v8 = vmul.u32 2, %v5468_v6  ;;  %v5485_v19 = vadd.f32 %v770_v22, %v640_v57  ;;  %v5487_v44 = vadd.f32 %v771_v35, %v641_v60  ;;  %v7680_v35 = vld [vmem:[#allocation57_spill] sm:$0xff] }
 0x1c7   :  { %v868_v10 = vmul.f32 %v7677_v36, %v858_v52  ;;  %v869_v58 = vmul.f32 %v7678_v7, %v856_v21  ;;  %v915_v32 = vsel %vm911_vm6, %v902_v28, %v906_v5  ;;  %v5493_v51 = vand.u32 7, %v29_v17  ;;  %v7681_v52 = vld [vmem:[#allocation4_spill] sm:$0xff] }
 0x1c8   :  { %v1754_v49 = vmul.u32 256, %v7297_v4  ;;  %v1756_v18 = vmul.u32 16, %v1755_v8  ;;  %v5497_v3 = vadd.f32 %v826_v9, %v696_v42  ;;  %v5500_v57 = vmul.f32 %v7674_v26, %v812_v53  ;;  %v7683_v9 = vld [vmem:[#allocation71_spill] sm:$0xff]  ;;  %v5519_v8 = vpop.permute.xlu1 %909 }
 0x1c9   :  { %7679 = vst [vmem:[#allocation23_spill] sm:$0xff] %v5493_v51  ;;  %v5502_v22 = vadd.f32 %v827_v16, %v697_v37  ;;  %v883_v60 = vmul.f32 %v7680_v35, %v867_v15  ;;  %v917_v21 = vsel %vm911_vm6, %v5433_v12, %v902_v28  ;;  %v1758_v42 = vmul.u32 2, %v5493_v51 }
 0x1ca   :  { %1376 = vrot.lane.b32.xlu0 %v5269_v47, %s4024_s27  ;;  %1268 = vrot.lane.b32.xlu1 %v5395_v40, %s4022_s25  ;;  %v1757_v17 = vadd.s32 %v1756_v18, %v1754_v49  ;;  %v5514_v53 = vadd.s32 8, %v7681_v52  ;;  %v884_v37 = vmul.f32 %v7680_v35, %v868_v10  ;;  %v885_v15 = vmul.f32 %v7680_v35, %v869_v58  ;;  %v7684_v10 = vld [vmem:[#allocation70_spill] sm:$0xff] }
 0x1cb   :  { %v925_v16 = vmul.f32 %v7683_v9, %v915_v32  ;;  %v7302_v28 = vmov 0.0|0.0   ;;  %v1825_v18 = vadd.s32 128, %v7681_v52  ;;  %v2049_v51 = vadd.s32 256, %v7681_v52 }
 0x1cc   :  { %7682 = vst [vmem:[#allocation31_spill] sm:$0xff] %v5514_v53  ;;  %3594 = vmatprep.subr.bf16.mxu1 %v7302_v28  ;;  %3642 = vmatprep.subr.bf16.mxu0 %v7302_v28  ;;  %v5523_v4 = vadd.s32 %v1758_v42, %v1757_v17  ;;  %v1826_v49 = vadd.s32 128, %v5514_v53  ;;  %v924_v6 = vmul.f32 %v7684_v10, %v917_v21  ;;  %v2050_v32 = vadd.s32 256, %v5514_v53  ;;  %v5536_v28 = vld [vmem:[%s7128_s1 + $0x8] sm:$0xff] }
 0x1cd   :  { %v913_v58 = vsel %vm911_vm6, %v906_v5, %v5519_v8  ;;  %v5545_v5 = vadd.s32 16, %v7681_v52  ;;  %v891_v21 = vadd.f32 %v883_v60, %v5435_v45  ;;  %v941_v17 = vmul.f32 %v5126_v63, %v925_v16  ;;  %v7687_v16 = vld [vmem:[#allocation72_spill] sm:$0xff] }
 0x1ce   :  { %1428 = vrot.lane.b32.xlu0 %v5249_v38, %s4025_s28  ;;  %1320 = vrot.lane.b32.xlu1 %v5269_v47, %s4023_s26  ;;  %vm1841_vm7 = vcmp.eq.s32.totalorder %v1825_v18, %v5523_v4  ;;  %vm1842_vm8 = vcmp.eq.s32.totalorder %v1826_v49, %v5523_v4  ;;  %vm2065_vm1 = vcmp.eq.s32.totalorder %v2049_v51, %v5523_v4  ;;  %v5551_v42 = vadd.s32 24, %v7681_v52 }
 0x1cf   :  { %7685 = vst [vmem:[#allocation32_spill] sm:$0xff] %v5545_v5  ;;  %vm3595_vm3 = vmpackc.low %vm1842_vm8, %vm1841_vm7  ;;  %vm2066_vm0 = vcmp.eq.s32.totalorder %v2050_v32, %v5523_v4  ;;  %v892_v10 = vadd.f32 %v884_v37, %v5374_v1  ;;  %v893_v18 = vadd.f32 %v885_v15, %v5437_v33  ;;  %v7306_v49 = vmov 1.0|1.0  }
 0x1d0   :  { %7686 = vst [vmem:[#allocation3_spill] sm:$0xff] %v5551_v42  ;;  %3596 = vmatpush3.bf16.msk.msra.mxu1 %vm3595_vm3, %v7306_v49  ;;  %vm3643_vm9 = vmpackc.low %vm2066_vm0, %vm2065_vm1  ;;  %v1827_v51 = vadd.s32 128, %v5545_v5  ;;  %v2051_v45 = vadd.s32 256, %v5545_v5  ;;  %v940_v60 = vmul.f32 %v5126_v63, %v924_v6  ;;  %v926_v53 = vmul.f32 %v7687_v16, %v913_v58 }
 0x1d1   :  { %3644 = vmatpush3.bf16.msk.msra.mxu0 %vm3643_vm9, %v7306_v49  ;;  %v7688_v32 = vmov 0.0|0.0   ;;  %v1828_v1 = vadd.s32 128, %v5551_v42  ;;  %v2052_v33 = vadd.s32 256, %v5551_v42  ;;  %v4037_v37 = vmov 25   ;;  %v5578_v49 = vld [vmem:[%s7128_s1] sm:$0xff] }
 0x1d2   :  { %1436 = vrot.lane.b32.xlu0 %v5395_v40, %s4025_s28  ;;  %1372 = vrot.lane.b32.xlu1 %v5249_v38, %s4024_s27  ;;  %vm1843_vm5 = vcmp.eq.s32.totalorder %v1827_v51, %v5523_v4  ;;  %vm2067_vm11 = vcmp.eq.s32.totalorder %v2051_v45, %v5523_v4  ;;  %v5569_v6 = vadd.s32 32, %v7681_v52  ;;  %v5572_v15 = vadd.s32 40, %v7681_v52 }
 0x1d3   :  { %3597 = vmatprep.subr.bf16.mxu1 %v7688_v32  ;;  %v949_v58 = vadd.f32 %v941_v17, %v5485_v19  ;;  %3645 = vmatprep.subr.bf16.mxu0 %v7688_v32  ;;  %vm1844_vm7 = vcmp.eq.s32.totalorder %v1828_v1, %v5523_v4  ;;  %vm2068_vm8 = vcmp.eq.s32.totalorder %v2052_v33, %v5523_v4  ;;  %v7689_v9 = vmov 1.0|1.0  }
 0x1d4   :  { %vm3598_vm1 = vmpackc.low %vm1844_vm7, %vm1843_vm5  ;;  %v1829_v51 = vadd.s32 128, %v5569_v6  ;;  %v2053_v19 = vadd.s32 256, %v5569_v6  ;;  %v2054_v17 = vadd.s32 256, %v5572_v15  ;;  %v836_v42 = vadd.f32 %v5500_v57, %v5475_v14 }
 0x1d5   :  { %v957_v5 = vadd.f32 %v892_v10, %v5502_v22  ;;  %v948_v16 = vadd.f32 %v940_v60, %v5477_v61  ;;  %v942_v1 = vmul.f32 %v5126_v63, %v926_v53  ;;  %3599 = vmatpush3.bf16.msk.msra.mxu1 %vm3598_vm1, %v7689_v9  ;;  %vm3646_vm3 = vmpackc.low %vm2068_vm8, %vm2067_vm11  ;;  %v5602_v14 = vadd.s32 48, %v7681_v52 }
 0x1d6   :  { %1069 = vperm.xlu0 %3896, %v5536_v28   ;;  %1380 = vrot.lane.b32.xlu1 %v5395_v40, %s4024_s27  ;;  %vm1845_vm0 = vcmp.eq.s32.totalorder %v1829_v51, %v5523_v4  ;;  %vm2069_vm5 = vcmp.eq.s32.totalorder %v2053_v19, %v5523_v4  ;;  %v956_v61 = vadd.f32 %v891_v21, %v5497_v3  ;;  %v5609_v22 = vadd.s32 56, %v7681_v52 }
 0x1d7   :  { %3647 = vmatpush3.bf16.msk.msra.mxu0 %vm3646_vm3, %v7689_v9  ;;  %v965_v57 = vadd.f32 %v957_v5, %v949_v58  ;;  %3600 = vmatprep.subr.bf16.mxu1 %v7688_v32  ;;  %vm2070_vm7 = vcmp.eq.s32.totalorder %v2054_v17, %v5523_v4  ;;  %v661_v53 = vsel %vm659_vm4, %v5112_v0, %v5102_v50  ;;  %v1831_v3 = vadd.s32 128, %v5602_v14  ;;  %v5622_v58 = vpop.permute.xlu1 %989  ;;  %v5624_v0 = vpop.permute.xlu0 %973 }
 0x1d8   :  { %v958_v10 = vadd.f32 %v893_v18, %v836_v42  ;;  %3648 = vmatprep.subr.bf16.mxu0 %v7688_v32  ;;  %vm3649_vm8 = vmpackc.low %vm2070_vm7, %vm2069_vm5  ;;  %v2055_v5 = vadd.s32 256, %v5602_v14  ;;  %v950_v21 = vadd.f32 %v942_v1, %v5487_v44  ;;  %v964_v45 = vadd.f32 %v956_v61, %v948_v16 }
 0x1d9   :  { %v1832_v60 = vadd.s32 128, %v5609_v22  ;;  %v2056_v33 = vadd.s32 256, %v5609_v22  ;;  %v7690_v50 = vmov 22   ;;  %vm1847_vm1 = vcmp.eq.s32.totalorder %v1831_v3, %v5523_v4 }
 0x1da   :  { %3903 = vset.pattern.permute.xlu0 %v4037_v37  ;;  %1432 = vrot.lane.b32.xlu1 %v5269_v47, %s4025_s28  ;;  %v1830_v37 = vadd.s32 128, %v5572_v15  ;;  %vm2071_vm3 = vcmp.eq.s32.totalorder %v2055_v5, %v5523_v4  ;;  %v5631_v44 = vadd.s32 64, %v7681_v52  ;;  %v5634_v42 = vadd.s32 72, %v7681_v52 }
 0x1db   :  { %1233 = vperm.xlu0 %3903, %v5578_v49   ;;  %3650 = vmatpush3.bf16.msk.msra.mxu0 %vm3649_vm8, %v7689_v9  ;;  %v981_v18 = vadd.f32 %v5624_v0, %v965_v57  ;;  %v4038_v16 = vmov 27   ;;  %v996_v1 = vmul.f32 %v5622_v58, %v7657_v41  ;;  %v997_v61 = vmul.f32 %v5622_v58, %v7659_v20 }
 0x1dc   :  { %vm1846_vm9 = vcmp.eq.s32.totalorder %v1830_v37, %v5523_v4  ;;  %7691 = vst [vmem:[#allocation26_spill] sm:$0xff] %v5634_v42  ;;  %v1833_v51 = vadd.s32 128, %v5631_v44  ;;  %v1834_v37 = vadd.s32 128, %v5634_v42  ;;  %v2057_v19 = vadd.s32 256, %v5631_v44  ;;  %3651 = vmatprep.subr.bf16.mxu0 %v7688_v32 }
 0x1dd   :  { %vm3601_vm11 = vmpackc.low %vm1846_vm9, %vm1845_vm0  ;;  %vm1848_vm0 = vcmp.eq.s32.totalorder %v1832_v60, %v5523_v4  ;;  %vm2072_vm9 = vcmp.eq.s32.totalorder %v2056_v33, %v5523_v4  ;;  %v2058_v17 = vadd.s32 256, %v5634_v42  ;;  %v980_v57 = vadd.f32 %v5624_v0, %v964_v45  ;;  %v7751_v42 = vld [vmem:[#allocation47_spill] sm:$0xff] }
 0x1de   :  { %1497 = vperm.xlu1 %3902, %v5578_v49   ;;  %3602 = vmatpush3.bf16.msk.msra.mxu1 %vm3601_vm11, %v7689_v9  ;;  %vm3604_vm5 = vmpackc.low %vm1848_vm0, %vm1847_vm1  ;;  %vm1849_vm7 = vcmp.eq.s32.totalorder %v1833_v51, %v5523_v4  ;;  %vm1850_vm8 = vcmp.eq.s32.totalorder %v1834_v37, %v5523_v4  ;;  %vm2073_vm1 = vcmp.eq.s32.totalorder %v2057_v19, %v5523_v4  ;;  %v5661_v41 = vadd.s32 80, %v7681_v52 }
 0x1df   :  { %1237 = vperm.xlu0 %3903, %v5536_v28   ;;  %3603 = vmatprep.subr.bf16.mxu1 %v7688_v32  ;;  %vm3652_vm11 = vmpackc.low %vm2072_vm9, %vm2071_vm3  ;;  %v966_v20 = vadd.f32 %v958_v10, %v950_v21  ;;  %v1005_v3 = vadd.f32 %v997_v61, %v981_v18  ;;  %v7693_v45 = vmov 24   ;;  %vm2074_vm0 = vcmp.eq.s32.totalorder %v2058_v17, %v5523_v4 }
 0x1e0   :  { %3653 = vmatpush3.bf16.msk.msra.mxu0 %vm3652_vm11, %v7689_v9  ;;  %7692 = vst [vmem:[#allocation36_spill] sm:$0xff] %v5661_v41  ;;  %vm3607_vm3 = vmpackc.low %vm1850_vm8, %vm1849_vm7  ;;  %v5667_v5 = vadd.s32 88, %v7681_v52  ;;  %v5671_v60 = vmul.f32 %v7652_v62, %v5410_v25  ;;  %v5674_v33 = vmul.f32 %v5164_v27, %v661_v53  ;;  %v1835_v10 = vadd.s32 128, %v5661_v41  ;;  %v5687_v53 = vpop.permute.xlu1 %1013 }
 0x1e1   :  { %3654 = vmatprep.subr.bf16.mxu0 %v7688_v32  ;;  %vm3655_vm9 = vmpackc.low %vm2074_vm0, %vm2073_vm1  ;;  %v2059_v21 = vadd.s32 256, %v5661_v41  ;;  %v1004_v18 = vadd.f32 %v996_v1, %v980_v57  ;;  %v1021_v51 = vadd.f32 %v5687_v53, %v1005_v3  ;;  %v4039_v37 = vmov 29  }
 0x1e2   :  { %3904 = vset.pattern.permute.xlu1 %v7690_v50  ;;  %3605 = vmatpush3.bf16.msk.msra.mxu1 %vm3604_vm5, %v7689_v9  ;;  %7694 = vst [vmem:[#allocation35_spill] sm:$0xff] %v5667_v5  ;;  %v748_v50 = vsel %vm740_vm13, %v5281_v24, %v5253_v31  ;;  %v1836_v62 = vadd.s32 128, %v5667_v5  ;;  %v2060_v25 = vadd.s32 256, %v5667_v5  ;;  %vm1851_vm5 = vcmp.eq.s32.totalorder %v1835_v10, %v5523_v4 }
 0x1e3   :  { %3906 = vset.pattern.permute.xlu0 %v4038_v16  ;;  %1117 = vperm.xlu1 %3904, %v5536_v28   ;;  %vm2075_vm11 = vcmp.eq.s32.totalorder %v2059_v21, %v5523_v4  ;;  %v5694_v16 = vadd.s32 96, %v7681_v52  ;;  %v5697_v31 = vadd.s32 104, %v7681_v52  ;;  %v982_v24 = vadd.f32 %v5624_v0, %v966_v20 }
 0x1e4   :  { %1345 = vperm.xlu0 %3906, %v5578_v49   ;;  %3606 = vmatprep.subr.bf16.mxu1 %v7688_v32  ;;  %vm1852_vm7 = vcmp.eq.s32.totalorder %v1836_v62, %v5523_v4  ;;  %vm2076_vm8 = vcmp.eq.s32.totalorder %v2060_v25, %v5523_v4  ;;  %v7697_v19 = vmov 23   ;;  %v862_v20 = vsel %vm854_vm12, %v5440_v34, %v5323_v56  ;;  %v7710_v25 = vld [vmem:[#allocation22_spill] sm:$0xff] }
 0x1e5   :  { %3656 = vmatpush3.bf16.msk.msra.mxu0 %vm3655_vm9, %v7689_v9  ;;  %7695 = vst [vmem:[#allocation24_spill] sm:$0xff] %v5694_v16  ;;  %7696 = vst [vmem:[#allocation25_spill] sm:$0xff] %v5697_v31  ;;  %v1837_v17 = vadd.s32 128, %v5694_v16  ;;  %v1838_v1 = vadd.s32 128, %v5697_v31  ;;  %v2061_v61 = vadd.s32 256, %v5694_v16  ;;  %v2062_v57 = vadd.s32 256, %v5697_v31 }
 0x1e6   :  { %3608 = vmatpush3.bf16.msk.msra.mxu1 %vm3607_vm3, %v7689_v9  ;;  %3657 = vmatprep.subr.bf16.mxu0 %v7688_v32  ;;  %vm3610_vm1 = vmpackc.low %vm1852_vm7, %vm1851_vm5  ;;  %v998_v3 = vmul.f32 %v5622_v58, %v7660_v48  ;;  %v5726_v56 = vadd.s32 112, %v7681_v52  ;;  %v5728_v48 = vmax.f32 %v1021_v51, 0.0  ;;  %v5738_v21 = vadd.s32 120, %v7681_v52  ;;  %v7745_v31 = vld [vmem:[#allocation43_spill] sm:$0xff] }
 0x1e7   :  { %3905 = vset.pattern.permute.xlu1 %v7693_v45  ;;  %3609 = vmatprep.subr.bf16.mxu1 %v7688_v32  ;;  %v1020_v45 = vadd.f32 %v5687_v53, %v1004_v18  ;;  %vm3658_vm3 = vmpackc.low %vm2076_vm8, %vm2075_vm11  ;;  %vm1853_vm0 = vcmp.eq.s32.totalorder %v1837_v17, %v5523_v4  ;;  %vm1854_vm9 = vcmp.eq.s32.totalorder %v1838_v1, %v5523_v4 }
 0x1e8   :  { %1349 = vperm.xlu0 %3906, %v5536_v28   ;;  %1213 = vperm.xlu1 %3905, %v5536_v28   ;;  %vm2077_vm5 = vcmp.eq.s32.totalorder %v2061_v61, %v5523_v4  ;;  %7698 = vst [vmem:[#allocation27_spill] sm:$0xff] %v5726_v56  ;;  %v1006_v34 = vadd.f32 %v998_v3, %v982_v24  ;;  %7699 = vst [vmem:[#allocation19_spill] sm:$0xff] %v5728_v48  ;;  %v1839_v24 = vadd.s32 128, %v5726_v56  ;;  %v7706_v61 = vmov 0.0  }
 0x1e9   :  { %3659 = vmatpush3.bf16.msk.msra.mxu0 %vm3658_vm3, %v7689_v9  ;;  %vm5732_vm11 = vmpackc.low %vm1854_vm9, %vm1853_vm0  ;;  %vm2078_vm7 = vcmp.eq.s32.totalorder %v2062_v57, %v5523_v4  ;;  %7702 = vst [vmem:[#allocation73_spill] sm:$0xff] %v5738_v21  ;;  %v612_v18 = vsel %vm610_vm2, %v5223_v55, %v5206_v59  ;;  %v756_v62 = vmul.f32 %v5195_v39, %v748_v50  ;;  %v2063_v51 = vadd.s32 256, %v5726_v56  ;;  %v7707_v57 = vld [vmem:[#allocation28_spill] sm:$0xff] }
 0x1ea   :  { %3611 = vmatpush3.bf16.msk.msra.mxu1 %vm3610_vm1, %v7689_v9  ;;  %3660 = vmatprep.subr.bf16.mxu0 %v7688_v32  ;;  %vm5745_vm8 = vmpackc.low %vm2078_vm7, %vm2077_vm5  ;;  %v919_v59 = vsel %vm911_vm6, %v5519_v8, %v5433_v12  ;;  %v7705_v55 = vmov 26   ;;  %v1840_v50 = vadd.s32 128, %v5738_v21  ;;  %v870_v17 = vmul.f32 %v5212_v13, %v862_v20  ;;  %v7708_v20 = vld [vmem:[#allocation60_spill] sm:$0xff] }
 0x1eb   :  { %3612 = vmatprep.subr.bf16.mxu1 %v7688_v32  ;;  %v5765_v1 = vmax.f32 %v1020_v45, 0.0  ;;  %vm1855_vm1 = vcmp.eq.s32.totalorder %v1839_v24, %v5523_v4  ;;  %vm2079_vm3 = vcmp.eq.s32.totalorder %v2063_v51, %v5523_v4  ;;  %v1022_v12 = vadd.f32 %v5687_v53, %v1006_v34  ;;  %v7711_v24 = vld [vmem:[#allocation50_spill] sm:$0xff] }
 0x1ec   :  { %3909 = vset.pattern.permute.xlu0 %v4039_v37  ;;  %3907 = vset.pattern.permute.xlu1 %v7697_v19  ;;  %v805_v37 = vsel %vm797_vm15, %v5333_v30, %v5283_v29  ;;  %v2064_v19 = vadd.s32 256, %v5738_v21  ;;  %vm1856_vm0 = vcmp.eq.s32.totalorder %v1840_v50, %v5523_v4  ;;  %v626_v29 = vmul.f32 %v5190_v46, %v612_v18  ;;  %v7744_v21 = vld [vmem:[#allocation42_spill] sm:$0xff] }
 0x1ed   :  { %1457 = vperm.xlu0 %3909, %v5578_v49   ;;  %1165 = vperm.xlu1 %3907, %v5536_v28   ;;  %v813_v30 = vmul.f32 %v5200_v43, %v805_v37  ;;  %v927_v8 = vmul.f32 %v5221_v54, %v919_v59  ;;  %vm3616_vm5 = vmpackc.low %vm1856_vm0, %vm1855_vm1  ;;  %v715_v3 = vmul.f32 %v7708_v20, %v7707_v57  ;;  %v7709_v18 = vmov 28  }
 0x1ee   :  { %3614 = vmatpush3.bf16.msk.msra.mxu1 %vm5732_vm11, %v7689_v9  ;;  %3662 = vmatpush3.bf16.msk.msra.mxu0 %vm5745_vm8, %v7689_v9  ;;  %vm2080_vm9 = vcmp.eq.s32.totalorder %v2064_v19, %v5523_v4  ;;  %vm7372_vm11 = vmmov 0   ;;  %v691_v45 = vmul.f32 %v7663_v11, %v5674_v33  ;;  %v772_v34 = vmul.f32 %v7671_v2, %v756_v62  ;;  %v7713_v11 = vld [vmem:[#allocation40_spill] sm:$0xff] }
 0x1ef   :  { %3615 = vmatprep.subr.bf16.mxu1 %v7688_v32  ;;  %3663 = vmatprep.subr.bf16.mxu0 %v7688_v32  ;;  %vm3664_vm7 = vmpackc.low %vm2080_vm9, %vm2079_vm3  ;;  %v886_v10 = vmul.f32 %v7680_v35, %v870_v17  ;;  %v544_v37 = vmul.f32 %v7711_v24, %v7710_v25  ;;  %v723_v51 = vadd.f32 %v715_v3, %v5671_v60  ;;  %v5803_v59 = vmax.f32 %v1022_v12, 0.0 }
 0x1f0   :  { %3427 = vmatprep.mubr.msk.f32.mxu1 %vm7372_vm11, %v7706_v61  ;;  %3509 = vmatprep.mubr.msk.f32.mxu0 %vm7372_vm11, %v7706_v61  ;;  %v642_v33 = vmul.f32 %v7713_v11, %v626_v29  ;;  %v829_v2 = vmul.f32 %v7674_v26, %v813_v30  ;;  %v943_v35 = vmul.f32 %v5126_v63, %v927_v8  ;;  %v4041_v17 = vmov 82   ;;  %v5818_v26 = vpop.permute.xlu1 %1113 }
 0x1f1   :  { %1038 = vrot.lane.b32.xlu0 %v5728_v48, %s4018_s21  ;;  %3908 = vset.pattern.permute.xlu1 %v7705_v55  ;;  %7712 = vst [vmem:[#allocation74_spill] sm:$0xff] %v5803_v59  ;;  %v699_v60 = vadd.f32 %v691_v45, %v544_v37  ;;  %v894_v55 = vadd.f32 %v886_v10, %v723_v51  ;;  %7714 = vst [vmem:[#allocation12_spill] sm:$0xff] %v5818_v26  ;;  %v4042_v8 = vmov 85   ;;  %v4044_v10 = vmov 83  }
 0x1f2   :  { %1293 = vperm.xlu1 %3908, %v5536_v28   ;;  %3617 = vmatpush3.bf16.msk.msra.mxu1 %vm3616_vm5, %v7689_v9  ;;  %v780_v62 = vadd.f32 %v772_v34, %v642_v33  ;;  %v999_v20 = vmul.f32 %v5622_v58, %v7707_v57  ;;  %v4045_v25 = vmov 86   ;;  %v4046_v51 = vmov 84  }
 0x1f3   :  { %3665 = vmatpush3.bf16.msk.msra.mxu0 %vm3664_vm7, %v7689_v9  ;;  %3618 = vmatprep.subr.bf16.mxu1 %v7688_v32  ;;  %v837_v50 = vadd.f32 %v829_v2, %v699_v60  ;;  %v4047_v60 = vmov 90   ;;  %vm1777_vm8 = vcmp.eq.s32.totalorder %v7681_v52, %v5523_v4 }
 0x1f4   :  { %3666 = vmatprep.subr.bf16.mxu0 %v7688_v32  ;;  %v951_v19 = vadd.f32 %v943_v35, %v780_v62  ;;  %v5826_v30 = vpop.permute.xlu1 %1209 }
 0x1f5   :  { %1082 = vrot.lane.b32.xlu0 %v5765_v1, %s4019_s22  ;;  %v959_v63 = vadd.f32 %v894_v55, %v837_v50  ;;  %7715 = vst [vmem:[#allocation9_spill] sm:$0xff] %v5826_v30 }
 0x1f6   :  { %3910 = vset.pattern.permute.xlu1 %v7709_v18 }
 0x1f7   :  { %1405 = vperm.xlu1 %3910, %v5536_v28   ;;  %v967_v12 = vadd.f32 %v959_v63, %v951_v19 }
 0x1f8   :  { %v5835_v45 = vpop.permute.xlu1 %1161 }
 0x1f9   :  { %1090 = vrot.lane.b32.xlu0 %v5803_v59, %s4019_s22  ;;  %v983_v29 = vadd.f32 %v5624_v0, %v967_v12  ;;  %7716 = vst [vmem:[#allocation2_spill] sm:$0xff] %v5835_v45  ;;  %v4043_v0 = vmov 87   ;;  %v5908_v12 = vld [vmem:[%s7129_s0] sm:$0xff] }
 0x1fa   :  { %7730 = vst [vmem:[#allocation28_spill] sm:$0xff] %v5908_v12 }
 0x1fb   :  { %1034 = vrot.lane.b32.xlu1 %v5765_v1, %s4018_s21  ;;  %v1007_v3 = vadd.f32 %v999_v20, %v983_v29  ;;  %v5918_v20 = vld [vmem:[%s7129_s0 + $0x10] sm:$0xff] }
 0x1fc   :  { %3911 = vset.pattern.permute.xlu1 %v4041_v17  ;;  %v5845_v57 = vpop.permute.xlu1 %1289  ;;  %v5897_v17 = vld [vmem:[%s7129_s0 + $0x8] sm:$0xff]  ;;  %7731 = vst [vmem:[#allocation60_spill] sm:$0xff] %v5918_v20 }
 0x1fd   :  { %1182 = vrot.lane.b32.xlu0 %v5728_v48, %s4020_s23  ;;  %v1023_v34 = vadd.f32 %v5687_v53, %v1007_v3  ;;  %7718 = vst [vmem:[#allocation75_spill] sm:$0xff] %v5845_v57  ;;  %v5852_v53 = vpop.permute.xlu0 %1065  ;;  %7728 = vst [vmem:[#allocation57_spill] sm:$0xff] %v5897_v17 }
 0x1fe   :  { %7719 = vst [vmem:[#allocation76_spill] sm:$0xff] %v5852_v53 }
 0x1ff   :  { %1042 = vrot.lane.b32.xlu1 %v5803_v59, %s4018_s21  ;;  %v5843_v58 = vmax.f32 %v1023_v34, 0.0 }
 0x200   :  { %v5854_v18 = vpop.permute.xlu1 %1401 }
 0x201   :  { %1461 = vperm.xlu0 %3909, %v5536_v28   ;;  %7717 = vst [vmem:[#allocation65_spill] sm:$0xff] %v5843_v58  ;;  %7720 = vst [vmem:[#allocation37_spill] sm:$0xff] %v5854_v18 }
 0x203   :  { %1086 = vrot.lane.b32.xlu1 %v5728_v48, %s4019_s22 }
 0x205   :  { %3913 = vset.pattern.permute.xlu0 %v4042_v8 }
 0x206   :  { %1603 = vperm.xlu0 %3913, %v5578_v49  }
 0x207   :  { %1178 = vrot.lane.b32.xlu1 %v5765_v1, %s4020_s23 }
 0x20a   :  { %1134 = vrot.lane.b32.xlu0 %v5728_v48, %s4021_s24 }
 0x20b   :  { %1186 = vrot.lane.b32.xlu1 %v5803_v59, %s4020_s23  ;;  %3916 = vset.pattern.permute.xlu0 %v4043_v0  ;;  %v4048_v0 = vmov 88  }
 0x20e   :  { %1262 = vrot.lane.b32.xlu0 %v5728_v48, %s4022_s25 }
 0x20f   :  { %1531 = vperm.xlu1 %3911, %v5578_v49  }
 0x212   :  { %1270 = vrot.lane.b32.xlu0 %v5843_v58, %s4022_s25 }
 0x213   :  { %3912 = vset.pattern.permute.xlu1 %v4044_v10  ;;  %v4049_v10 = vmov 89  }
 0x214   :  { %1555 = vperm.xlu1 %3912, %v5578_v49  }
 0x216   :  { %1322 = vrot.lane.b32.xlu0 %v5803_v59, %s4023_s26 }
 0x218   :  { %3914 = vset.pattern.permute.xlu1 %v4045_v25 }
 0x219   :  { %1615 = vperm.xlu1 %3914, %v5578_v49  }
 0x21a   :  { %1374 = vrot.lane.b32.xlu0 %v5728_v48, %s4024_s27 }
 0x21c   :  { %v5859_v24 = vpop.permute.xlu0 %1036  ;;  %v5861_v37 = vpop.permute.xlu1 %1032 }
 0x21d   :  { %7721 = vst [vmem:[#allocation8_spill] sm:$0xff] %v5861_v37  ;;  %1130 = vrot.lane.b32.xlu1 %v5765_v1, %s4021_s24 }
 0x21e   :  { %1382 = vrot.lane.b32.xlu0 %v5843_v58, %s4024_s27  ;;  %3915 = vset.pattern.permute.xlu1 %v4046_v51 }
 0x220   :  { %v5867_v11 = vpop.permute.xlu0 %1080  ;;  %v5869_v33 = vpop.permute.xlu1 %1040 }
 0x221   :  { %7722 = vst [vmem:[#allocation13_spill] sm:$0xff] %v5867_v11  ;;  %7723 = vst [vmem:[#allocation15_spill] sm:$0xff] %v5869_v33  ;;  %1138 = vrot.lane.b32.xlu1 %v5803_v59, %s4021_s24 }
 0x222   :  { %1643 = vperm.xlu0 %3916, %v5578_v49  }
 0x224   :  { %v5874_v2 = vpop.permute.xlu0 %1088  ;;  %v5876_v35 = vpop.permute.xlu1 %1084 }
 0x225   :  { %7724 = vst [vmem:[#allocation38_spill] sm:$0xff] %v5874_v2  ;;  %1266 = vrot.lane.b32.xlu1 %v5803_v59, %s4022_s25 }
 0x226   :  { %1430 = vrot.lane.b32.xlu0 %v5728_v48, %s4025_s28 }
 0x227   :  { %3919 = vset.pattern.permute.xlu0 %v4047_v60  ;;  %v7736_v60 = vmov 30  }
 0x228   :  { %v1181_v62 = vpop.permute.xlu0 %1180  ;;  %v5882_v55 = vpop.permute.xlu1 %1176 }
 0x229   :  { %7725 = vst [vmem:[#allocation48_spill] sm:$0xff] %v5882_v55  ;;  %1318 = vrot.lane.b32.xlu1 %v5728_v48, %s4023_s26  ;;  %v1050_v48 = vsel %vm512_vm10, %v5859_v24, %v5869_v33 }
 0x22a   :  { %1438 = vrot.lane.b32.xlu0 %v5843_v58, %s4025_s28  ;;  %v1058_v16 = vmul.f32 %v7745_v31, %v1050_v48  ;;  %v1100_v48 = vsel %vm561_vm14, %v5867_v11, %v5876_v35  ;;  %v4050_v31 = vmov 91   ;;  %v7750_v11 = vld [vmem:[#allocation46_spill] sm:$0xff] }
 0x22b   :  { %v1105_v41 = vmul.f32 %v7750_v11, %v1100_v48 }
 0x22c   :  { %v5888_v50 = vpop.permute.xlu1 %1184  ;;  %v5890_v19 = vpop.permute.xlu0 %1136 }
 0x22d   :  { %7726 = vst [vmem:[#allocation67_spill] sm:$0xff] %v5888_v50  ;;  %7727 = vst [vmem:[#allocation69_spill] sm:$0xff] %v5890_v19  ;;  %1326 = vrot.lane.b32.xlu1 %v5843_v58, %s4023_s26  ;;  %v1194_v5 = vsel %vm659_vm4, %v1181_v62, %v5888_v50 }
 0x22e   :  { %1515 = vrot.lane.b32.xlu0 %v5897_v17, %s4018_s21 }
 0x230   :  { %v5901_v63 = vpop.permute.xlu1 %1128  ;;  %v1265_v29 = vpop.permute.xlu0 %1264 }
 0x231   :  { %7729 = vst [vmem:[#allocation4_spill] sm:$0xff] %v5901_v63  ;;  %1378 = vrot.lane.b32.xlu1 %v5803_v59, %s4024_s27 }
 0x232   :  { %1538 = vrot.lane.b32.xlu0 %v5908_v12, %s4019_s22 }
 0x234   :  { %v5912_v8 = vpop.permute.xlu1 %1132  ;;  %v5922_v3 = vpop.permute.xlu0 %1316 }
 0x235   :  { %1579 = vperm.xlu1 %3915, %v5578_v49   ;;  %7732 = vst [vmem:[#allocation22_spill] sm:$0xff] %v5922_v3 }
 0x236   :  { %1542 = vrot.lane.b32.xlu0 %v5918_v20, %s4019_s22 }
 0x238   :  { %v5927_v34 = vpop.permute.xlu1 %1260  ;;  %v5930_v25 = vpop.permute.xlu0 %1324 }
 0x239   :  { %3917 = vset.pattern.permute.xlu1 %v4048_v0  ;;  %7733 = vst [vmem:[#allocation50_spill] sm:$0xff] %v5927_v34  ;;  %7734 = vst [vmem:[#allocation40_spill] sm:$0xff] %v5930_v25 }
 0x23a   :  { %1588 = vrot.lane.b32.xlu0 %v5897_v17, %s4020_s23  ;;  %1671 = vperm.xlu1 %3917, %v5578_v49  }
 0x23c   :  { %v5933_v51 = vpop.permute.xlu1 %1268  ;;  %v1377_v0 = vpop.permute.xlu0 %1376 }
 0x23d   :  { %7735 = vst [vmem:[#allocation77_spill] sm:$0xff] %v5933_v51 }
 0x23e   :  { %1727 = vperm.xlu0 %3919, %v5578_v49   ;;  %3918 = vset.pattern.permute.xlu1 %v4049_v10  ;;  %v5947_v10 = vld [vmem:[%s7129_s0 + $0x18] sm:$0xff] }
 0x23f   :  { %1699 = vperm.xlu1 %3918, %v5578_v49   ;;  %7737 = vst [vmem:[#allocation78_spill] sm:$0xff] %v5947_v10 }
 0x240   :  { %v1321_v54 = vpop.permute.xlu1 %1320  ;;  %v5951_v46 = vpop.permute.xlu0 %1428 }
 0x241   :  { %7738 = vst [vmem:[#allocation79_spill] sm:$0xff] %v5951_v46 }
 0x242   :  { %1564 = vrot.lane.b32.xlu0 %v5897_v17, %s4021_s24 }
 0x243   :  { %1434 = vrot.lane.b32.xlu1 %v5803_v59, %s4025_s28  ;;  %v1052_v59 = vsel %vm512_vm10, %v5861_v37, %v5859_v24  ;;  %v1196_v37 = vsel %vm659_vm4, %v5882_v55, %v1181_v62  ;;  %v7749_v55 = vld [vmem:[#allocation52_spill] sm:$0xff] }
 0x244   :  { %3920 = vset.pattern.permute.xlu1 %v7736_v60  ;;  %v5955_v60 = vpop.permute.xlu1 %1372  ;;  %v5961_v43 = vpop.permute.xlu0 %1436  ;;  %v1057_v56 = vmul.f32 %v7744_v21, %v1052_v59  ;;  %v7748_v59 = vld [vmem:[#allocation51_spill] sm:$0xff]  ;;  %v1202_v50 = vmul.f32 %v7749_v55, %v1194_v5  ;;  %v1328_v5 = vsel %vm797_vm15, %v1321_v54, %v5930_v25 }
 0x245   :  { %7739 = vst [vmem:[#allocation80_spill] sm:$0xff] %v5955_v60  ;;  %7740 = vst [vmem:[#allocation81_spill] sm:$0xff] %v5961_v43  ;;  %v1201_v62 = vmul.f32 %v7748_v59, %v1196_v37  ;;  %v7754_v25 = vld [vmem:[#allocation59_spill] sm:$0xff] }
 0x246   :  { %1628 = vrot.lane.b32.xlu0 %v5897_v17, %s4022_s25  ;;  %v1073_v21 = vmul.f32 %v5852_v53, %v1057_v56  ;;  %v1146_v56 = vsel %vm610_vm2, %v5912_v8, %v5890_v19  ;;  %v1218_v19 = vmul.f32 %v5826_v30, %v1202_v50  ;;  %v7758_v55 = vld [vmem:[#allocation55_spill] sm:$0xff] }
 0x247   :  { %1513 = vrot.lane.b32.xlu1 %v5908_v12, %s4018_s21 }
 0x248   :  { %v5965_v27 = vpop.permute.xlu1 %1380 }
 0x249   :  { %7741 = vst [vmem:[#allocation82_spill] sm:$0xff] %v5965_v27 }
 0x24a   :  { %1632 = vrot.lane.b32.xlu0 %v5947_v10, %s4022_s25 }
 0x24b   :  { %1517 = vrot.lane.b32.xlu1 %v5918_v20, %s4018_s21 }
 0x24c   :  { %v1433_v13 = vpop.permute.xlu1 %1432 }
 0x24e   :  { %1658 = vrot.lane.b32.xlu0 %v5918_v20, %s4023_s26 }
 0x24f   :  { %1540 = vrot.lane.b32.xlu1 %v5897_v17, %s4019_s22 }
 0x252   :  { %1684 = vrot.lane.b32.xlu0 %v5897_v17, %s4024_s27 }
 0x253   :  { %1586 = vrot.lane.b32.xlu1 %v5908_v12, %s4020_s23 }
 0x255   :  { %v5969_v39 = vpop.permute.xlu0 %1069 }
 0x256   :  { %7742 = vst [vmem:[#allocation83_spill] sm:$0xff] %v5969_v39  ;;  %1688 = vrot.lane.b32.xlu0 %v5947_v10, %s4024_s27 }
 0x257   :  { %1590 = vrot.lane.b32.xlu1 %v5918_v20, %s4020_s23 }
 0x25a   :  { %1092 = vrot.lane.b32.xlu0 %v5395_v40, %s4019_s22  ;;  %v5985_v39 = vpop.permute.xlu0 %1233 }
 0x25b   :  { %7743 = vst [vmem:[#allocation84_spill] sm:$0xff] %v5985_v39  ;;  %1501 = vperm.xlu1 %3920, %v5536_v28   ;;  %v1098_v28 = vsel %vm561_vm14, %v5876_v35, %v5874_v2  ;;  %v1274_v2 = vsel %vm740_vm13, %v5927_v34, %v1265_v29  ;;  %v1272_v35 = vsel %vm740_vm13, %v1265_v29, %v5933_v51  ;;  %v7756_v51 = vld [vmem:[#allocation63_spill] sm:$0xff] }
 0x25c   :  { %v1106_v37 = vmul.f32 %v7751_v42, %v1098_v28  ;;  %v1148_v29 = vsel %vm610_vm2, %v5901_v63, %v5912_v8  ;;  %v1386_v28 = vsel %vm854_vm12, %v5955_v60, %v1377_v0  ;;  %v7755_v8 = vld [vmem:[#allocation61_spill] sm:$0xff]  ;;  %v7757_v60 = vld [vmem:[#allocation64_spill] sm:$0xff] }
 0x25d   :  { %v5996_v24 = vpop.permute.xlu1 %1497  ;;  %v1282_v63 = vmul.f32 %v7755_v8, %v1272_v35  ;;  %v1153_v59 = vmul.f32 %v7758_v55, %v1148_v29  ;;  %v7759_v42 = vld [vmem:[#allocation56_spill] sm:$0xff]  ;;  %v1393_v50 = vmul.f32 %v7677_v36, %v1386_v28 }
 0x25e   :  { %7746 = vst [vmem:[#allocation85_spill] sm:$0xff] %v5996_v24  ;;  %1712 = vrot.lane.b32.xlu0 %v5897_v17, %s4025_s28  ;;  %v6000_v33 = vpop.permute.xlu0 %1237  ;;  %v7760_v35 = vld [vmem:[#allocation20_spill] sm:$0xff] }
 0x25f   :  { %7747 = vst [vmem:[#allocation86_spill] sm:$0xff] %v6000_v33  ;;  %1562 = vrot.lane.b32.xlu1 %v5908_v12, %s4021_s24  ;;  %v1074_v33 = vmul.f32 %v5852_v53, %v1058_v16  ;;  %v1330_v16 = vsel %vm797_vm15, %v5922_v3, %v1321_v54  ;;  %v1384_v54 = vsel %vm854_vm12, %v1377_v0, %v5965_v27 }
 0x260   :  { %3921 = vset.pattern.permute.xlu1 %v4050_v31  ;;  %v1217_v53 = vmul.f32 %v5826_v30, %v1201_v62  ;;  %v1281_v3 = vmul.f32 %v7754_v25, %v1274_v2  ;;  %v1337_v34 = vmul.f32 %v7756_v51, %v1330_v16  ;;  %v1241_v0 = vmul.f32 %v5985_v39, %v5249_v38 }
 0x261   :  { %v1242_v27 = vmul.f32 %v5985_v39, %v5269_v47  ;;  %v1154_v62 = vmul.f32 %v7759_v42, %v1146_v56  ;;  %v1394_v2 = vmul.f32 %v7678_v7, %v1384_v54  ;;  %v1121_v16 = vmul.f32 %v5818_v26, %v1105_v41 }
 0x262   :  { %1716 = vrot.lane.b32.xlu0 %v5947_v10, %s4025_s28  ;;  %v6032_v31 = vpop.permute.xlu1 %1117  ;;  %v1297_v29 = vmul.f32 %v5845_v57, %v1281_v3  ;;  %v1298_v28 = vmul.f32 %v5845_v57, %v1282_v63  ;;  %v1440_v41 = vsel %vm911_vm6, %v1433_v13, %v5961_v43  ;;  %v1409_v3 = vmul.f32 %v5854_v18, %v1393_v50  ;;  %v7763_v43 = vld [vmem:[#allocation71_spill] sm:$0xff] }
 0x263   :  { %7752 = vst [vmem:[#allocation46_spill] sm:$0xff] %v6032_v31  ;;  %v6048_v48 = vpop.permute.xlu0 %1345  ;;  %1566 = vrot.lane.b32.xlu1 %v5918_v20, %s4021_s24  ;;  %v1338_v31 = vmul.f32 %v7757_v60, %v1328_v5  ;;  %v1122_v5 = vmul.f32 %v5818_v26, %v1106_v37  ;;  %v1225_v37 = vadd.f32 %v1217_v53, %v1073_v21 }
 0x264   :  { %7753 = vst [vmem:[#allocation87_spill] sm:$0xff] %v6048_v48  ;;  %v1353_v38 = vmul.f32 %v6048_v48, %v1337_v34  ;;  %v1442_v34 = vsel %vm911_vm6, %v5951_v46, %v1433_v13  ;;  %v1249_v54 = vadd.f32 %v1241_v0, %v1121_v16  ;;  %v1169_v26 = vmul.f32 %v5835_v45, %v1153_v59  ;;  %v7789_v46 = vld [vmem:[#allocation25_spill] sm:$0xff] }
 0x265   :  { %v1354_v30 = vmul.f32 %v6048_v48, %v1338_v31  ;;  %v1226_v31 = vadd.f32 %v1218_v19, %v1074_v33  ;;  %v1250_v48 = vadd.f32 %v1242_v27, %v1122_v5  ;;  %v1170_v39 = vmul.f32 %v5835_v45, %v1154_v62  ;;  %v7792_v45 = vld [vmem:[#allocation27_spill] sm:$0xff] }
 0x266   :  { %1256 = vrot.lane.b32.xlu0 %v7760_v35, %s4022_s25  ;;  %v1410_v63 = vmul.f32 %v5854_v18, %v1394_v2  ;;  %v1449_v57 = vmul.f32 %v7763_v43, %v1442_v34  ;;  %v1361_v13 = vadd.f32 %v1353_v38, %v1225_v37  ;;  %v1305_v21 = vadd.f32 %v1297_v29, %v1169_v26 }
 0x267   :  { %1630 = vrot.lane.b32.xlu1 %v5918_v20, %s4022_s25  ;;  %v6074_v47 = vpop.permute.xlu1 %1213  ;;  %v6076_v56 = vpop.permute.xlu0 %1349  ;;  %v1362_v27 = vadd.f32 %v1354_v30, %v1226_v31  ;;  %v1306_v53 = vadd.f32 %v1298_v28, %v1170_v39  ;;  %v1417_v62 = vadd.f32 %v1409_v3, %v1249_v54  ;;  %v2196_v31 = vadd.s32 384, %v7681_v52  ;;  %v7771_v54 = vld [vmem:[#allocation31_spill] sm:$0xff] }
 0x268   :  { %7761 = vst [vmem:[#allocation59_spill] sm:$0xff] %v6074_v47  ;;  %7762 = vst [vmem:[#allocation63_spill] sm:$0xff] %v6076_v56  ;;  %v7764_v56 = vld [vmem:[#allocation72_spill] sm:$0xff]  ;;  %v1418_v50 = vadd.f32 %v1410_v63, %v1250_v48  ;;  %v2197_v3 = vadd.s32 384, %v7771_v54  ;;  %vm1778_vm1 = vcmp.eq.s32.totalorder %v7771_v54, %v5523_v4  ;;  %v2210_v18 = vadd.s32 384, %v7792_v45 }
 0x269   :  { %v1450_v47 = vmul.f32 %v7764_v56, %v1440_v41  ;;  %v1481_v30 = vadd.f32 %v1417_v62, %v1361_v13  ;;  %vm2212_vm3 = vcmp.eq.s32.totalorder %v2196_v31, %v5523_v4  ;;  %vm3619_vm0 = vmpackc.low %vm1778_vm1, %vm1777_vm8  ;;  %v2204_v31 = vadd.s32 384, %v5631_v44 }
 0x26a   :  { %1368 = vrot.lane.b32.xlu0 %v7760_v35, %s4024_s27  ;;  %v1482_v39 = vadd.f32 %v1418_v50, %v1362_v27  ;;  %vm2213_vm9 = vcmp.eq.s32.totalorder %v2197_v3, %v5523_v4  ;;  %v7774_v27 = vld [vmem:[#allocation32_spill] sm:$0xff]  ;;  %v2200_v50 = vadd.s32 384, %v5569_v6  ;;  %v7782_v3 = vld [vmem:[#allocation26_spill] sm:$0xff] }
 0x26b   :  { %1656 = vrot.lane.b32.xlu1 %v5897_v17, %s4023_s26  ;;  %vm3667_vm5 = vmpackc.low %vm2213_vm9, %vm2212_vm3  ;;  %vm1779_vm7 = vcmp.eq.s32.totalorder %v7774_v27, %v5523_v4 }
 0x26c   :  { %v6096_v33 = vpop.permute.xlu0 %1457  ;;  %v6098_v19 = vpop.permute.xlu1 %1165 }
 0x26d   :  { %7765 = vst [vmem:[#allocation64_spill] sm:$0xff] %v6096_v33  ;;  %v1465_v59 = vmul.f32 %v6096_v33, %v1449_v57  ;;  %v1466_v0 = vmul.f32 %v6096_v33, %v1450_v47 }
 0x26e   :  { %1046 = vrot.lane.b32.xlu0 %v5843_v58, %s4018_s21 }
 0x26f   :  { %1660 = vrot.lane.b32.xlu1 %v5947_v10, %s4023_s26  ;;  %v1473_v2 = vadd.f32 %v1465_v59, %v1305_v21  ;;  %v1474_v26 = vadd.f32 %v1466_v0, %v1306_v53  ;;  %v2198_v21 = vadd.s32 384, %v7774_v27  ;;  %v7775_v53 = vld [vmem:[#allocation3_spill] sm:$0xff] }
 0x270   :  { %v6106_v16 = vpop.permute.xlu0 %1038  ;;  %v2199_v59 = vadd.s32 384, %v7775_v53  ;;  %vm1780_vm8 = vcmp.eq.s32.totalorder %v7775_v53, %v5523_v4 }
 0x271   :  { %v6108_v5 = vpop.permute.xlu1 %1293  ;;  %v1489_v38 = vadd.f32 %v1481_v30, %v1473_v2  ;;  %v1490_v57 = vadd.f32 %v1482_v39, %v1474_v26  ;;  %vm2214_vm1 = vcmp.eq.s32.totalorder %v2198_v21, %v5523_v4  ;;  %vm3622_vm3 = vmpackc.low %vm1780_vm8, %vm1779_vm7  ;;  %v2201_v2 = vadd.s32 384, %v5572_v15 }
 0x272   :  { %7766 = vst [vmem:[#allocation55_spill] sm:$0xff] %v6108_v5  ;;  %1190 = vrot.lane.b32.xlu0 %v5843_v58, %s4020_s23  ;;  %vm1782_vm7 = vcmp.eq.s32.totalorder %v5572_v15, %v5523_v4  ;;  %v2202_v39 = vadd.s32 384, %v5602_v14  ;;  %v2205_v21 = vadd.s32 384, %v7782_v3 }
 0x273   :  { %1686 = vrot.lane.b32.xlu1 %v5918_v20, %s4024_s27  ;;  %v1505_v48 = vadd.f32 %v5996_v24, %v1489_v38  ;;  %v1506_v47 = vadd.f32 %v5996_v24, %v1490_v57  ;;  %v2203_v38 = vadd.s32 384, %v5609_v22 }
 0x274   :  { %v6116_v29 = vpop.permute.xlu0 %1082 }
 0x275   :  { %7767 = vst [vmem:[#allocation56_spill] sm:$0xff] %v6116_v29  ;;  %3428 = vmatmul.mubr.f32.vlgmr.msra.gmra.mrb[0].mxu1 %v1505_v48  ;;  %3510 = vmatmul.mubr.f32.vlgmr.msra.gmra.mrb[0].mxu0 %v1506_v47 }
 0x276   :  { %1142 = vrot.lane.b32.xlu0 %v5843_v58, %s4021_s24  ;;  %v6120_v28 = vpop.permute.xlu1 %1405  ;;  %3430 = vmatprep.mubr.msk.f32.mxu1 %vm7372_vm11, %v7706_v61 }
 0x277   :  { %7768 = vst [vmem:[#allocation20_spill] sm:$0xff] %v6120_v28  ;;  %1044 = vrot.lane.b32.xlu1 %v5395_v40, %s4018_s21  ;;  %3512 = vmatprep.mubr.msk.f32.mxu0 %vm7372_vm11, %v7706_v61  ;;  %vm2218_vm11 = vcmp.eq.s32.totalorder %v2202_v39, %v5523_v4 }
 0x278   :  { %v6128_v41 = vpop.permute.xlu0 %1090  ;;  %3620 = vmatpush3.bf16.msk.msra.mxu1 %vm3619_vm0, %v7689_v9  ;;  %3668 = vmatpush3.bf16.msk.msra.mxu0 %vm3667_vm5, %v7689_v9  ;;  %vm2215_vm0 = vcmp.eq.s32.totalorder %v2199_v59, %v5523_v4  ;;  %vm1781_vm5 = vcmp.eq.s32.totalorder %v5569_v6, %v5523_v4 }
 0x279   :  { %7769 = vst [vmem:[#allocation88_spill] sm:$0xff] %v6128_v41  ;;  %3621 = vmatprep.subr.bf16.mxu1 %v7688_v32  ;;  %3669 = vmatprep.subr.bf16.mxu0 %v7688_v32  ;;  %vm3670_vm9 = vmpackc.low %vm2215_vm0, %vm2214_vm1  ;;  %vm2216_vm1 = vcmp.eq.s32.totalorder %v2200_v50, %v5523_v4 }
 0x27a   :  { %1314 = vrot.lane.b32.xlu0 %v5765_v1, %s4023_s26  ;;  %v6132_v34 = vpop.permute.xlu1 %1034  ;;  %vm3625_vm8 = vmpackc.low %vm1782_vm7, %vm1781_vm5  ;;  %vm1784_vm5 = vcmp.eq.s32.totalorder %v5609_v22, %v5523_v4 }
 0x27b   :  { %7770 = vst [vmem:[#allocation89_spill] sm:$0xff] %v6132_v34  ;;  %1188 = vrot.lane.b32.xlu1 %v5395_v40, %s4020_s23 }
 0x27c   :  { %v6136_v37 = vpop.permute.xlu0 %1182  ;;  %3623 = vmatpush3.bf16.msk.msra.mxu1 %vm3622_vm3, %v7689_v9  ;;  %3671 = vmatpush3.bf16.msk.msra.mxu0 %vm3670_vm9, %v7689_v9  ;;  %vm2217_vm3 = vcmp.eq.s32.totalorder %v2201_v2, %v5523_v4  ;;  %vm1783_vm9 = vcmp.eq.s32.totalorder %v5602_v14, %v5523_v4  ;;  %v7784_v2 = vld [vmem:[#allocation36_spill] sm:$0xff] }
 0x27d   :  { %3624 = vmatprep.subr.bf16.mxu1 %v7688_v32  ;;  %3672 = vmatprep.subr.bf16.mxu0 %v7688_v32  ;;  %vm3673_vm0 = vmpackc.low %vm2217_vm3, %vm2216_vm1  ;;  %vm1786_vm3 = vcmp.eq.s32.totalorder %v7782_v3, %v5523_v4  ;;  %v2206_v39 = vadd.s32 384, %v7784_v2 }
 0x27e   :  { %1426 = vrot.lane.b32.xlu0 %v5765_v1, %s4025_s28  ;;  %v6142_v63 = vpop.permute.xlu1 %1042  ;;  %vm3628_vm7 = vmpackc.low %vm1784_vm5, %vm1783_vm9  ;;  %vm2221_vm9 = vcmp.eq.s32.totalorder %v2205_v21, %v5523_v4 }
 0x27f   :  { %7772 = vst [vmem:[#allocation31_spill] sm:$0xff] %v6142_v63  ;;  %1714 = vrot.lane.b32.xlu1 %v5918_v20, %s4025_s28 }
 0x280   :  { %v6151_v13 = vpop.permute.xlu0 %1461  ;;  %3626 = vmatpush3.bf16.msk.msra.mxu1 %vm3625_vm8, %v7689_v9  ;;  %3674 = vmatpush3.bf16.msk.msra.mxu0 %vm3673_vm0, %v7689_v9  ;;  %vm2219_vm8 = vcmp.eq.s32.totalorder %v2203_v38, %v5523_v4  ;;  %vm2220_vm0 = vcmp.eq.s32.totalorder %v2204_v31, %v5523_v4  ;;  %v7785_v38 = vld [vmem:[#allocation35_spill] sm:$0xff] }
 0x281   :  { %7773 = vst [vmem:[#allocation90_spill] sm:$0xff] %v6151_v13  ;;  %3627 = vmatprep.subr.bf16.mxu1 %v7688_v32  ;;  %3675 = vmatprep.subr.bf16.mxu0 %v7688_v32  ;;  %vm3676_vm1 = vmpackc.low %vm2219_vm8, %vm2218_vm11  ;;  %vm1785_vm11 = vcmp.eq.s32.totalorder %v5631_v44, %v5523_v4  ;;  %v2207_v24 = vadd.s32 384, %v7785_v38  ;;  %vm1787_vm8 = vcmp.eq.s32.totalorder %v7784_v2, %v5523_v4  ;;  %v7788_v2 = vld [vmem:[#allocation24_spill] sm:$0xff] }
 0x282   :  { %v6157_v0 = vpop.permute.xlu1 %1086  ;;  %1544 = vrot.lane.b32.xlu0 %v5947_v10, %s4019_s22  ;;  %vm3631_vm5 = vmpackc.low %vm1786_vm3, %vm1785_vm11  ;;  %vm2222_vm11 = vcmp.eq.s32.totalorder %v2206_v39, %v5523_v4  ;;  %v2208_v33 = vadd.s32 384, %v7788_v2 }
 0x283   :  { %1140 = vrot.lane.b32.xlu1 %v5395_v40, %s4021_s24 }
 0x284   :  { %3629 = vmatpush3.bf16.msk.msra.mxu1 %vm3628_vm7, %v7689_v9  ;;  %3677 = vmatpush3.bf16.msk.msra.mxu0 %vm3676_vm1, %v7689_v9  ;;  %vm3679_vm7 = vmpackc.low %vm2221_vm9, %vm2220_vm0  ;;  %vm1788_vm1 = vcmp.eq.s32.totalorder %v7785_v38, %v5523_v4  ;;  %vm2223_vm0 = vcmp.eq.s32.totalorder %v2207_v24, %v5523_v4  ;;  %v2209_v38 = vadd.s32 384, %v7789_v46 }
 0x285   :  { %v6171_v62 = vpop.permute.xlu0 %1603  ;;  %3630 = vmatprep.subr.bf16.mxu1 %v7688_v32  ;;  %3678 = vmatprep.subr.bf16.mxu0 %v7688_v32  ;;  %vm3634_vm3 = vmpackc.low %vm1788_vm1, %vm1787_vm8  ;;  %vm2224_vm1 = vcmp.eq.s32.totalorder %v2208_v33, %v5523_v4 }
 0x286   :  { %7776 = vst [vmem:[#allocation32_spill] sm:$0xff] %v6171_v62  ;;  %v6176_v30 = vpop.permute.xlu1 %1178  ;;  %1568 = vrot.lane.b32.xlu0 %v5947_v10, %s4021_s24  ;;  %vm3682_vm9 = vmpackc.low %vm2223_vm0, %vm2222_vm11  ;;  %vm2225_vm11 = vcmp.eq.s32.totalorder %v2209_v38, %v5523_v4  ;;  %vm1791_vm0 = vcmp.eq.s32.totalorder %v7792_v45, %v5523_v4 }
 0x287   :  { %7777 = vst [vmem:[#allocation3_spill] sm:$0xff] %v6176_v30  ;;  %1312 = vrot.lane.b32.xlu1 %v7760_v35, %s4023_s26 }
 0x288   :  { %3632 = vmatpush3.bf16.msk.msra.mxu1 %vm3631_vm5, %v7689_v9  ;;  %3680 = vmatpush3.bf16.msk.msra.mxu0 %vm3679_vm7, %v7689_v9  ;;  %vm1789_vm5 = vcmp.eq.s32.totalorder %v7788_v2, %v5523_v4  ;;  %vm1790_vm7 = vcmp.eq.s32.totalorder %v7789_v46, %v5523_v4 }
 0x289   :  { %v6190_v26 = vpop.permute.xlu0 %1134  ;;  %3633 = vmatprep.subr.bf16.mxu1 %v7688_v32  ;;  %3681 = vmatprep.subr.bf16.mxu0 %v7688_v32  ;;  %vm3637_vm8 = vmpackc.low %vm1790_vm7, %vm1789_vm5  ;;  %vm2226_vm5 = vcmp.eq.s32.totalorder %v2210_v18, %v5523_v4 }
 0x28a   :  { %v6196_v57 = vpop.permute.xlu1 %1186  ;;  %1654 = vrot.lane.b32.xlu0 %v5908_v12, %s4023_s26 }
 0x28b   :  { %7778 = vst [vmem:[#allocation91_spill] sm:$0xff] %v6196_v57  ;;  %1747 = vperm.xlu1 %3921, %v5578_v49  }
 0x28c   :  { %3635 = vmatpush3.bf16.msk.msra.mxu1 %vm3634_vm3, %v7689_v9  ;;  %3683 = vmatpush3.bf16.msk.msra.mxu0 %vm3682_vm9, %v7689_v9  ;;  %vm3685_vm3 = vmpackc.low %vm2225_vm11, %vm2224_vm1 }
 0x28d   :  { %v6210_v48 = vpop.permute.xlu0 %1262  ;;  %3636 = vmatprep.subr.bf16.mxu1 %v7688_v32  ;;  %3684 = vmatprep.subr.bf16.mxu0 %v7688_v32 }
 0x28e   :  { %7779 = vst [vmem:[#allocation92_spill] sm:$0xff] %v6210_v48  ;;  %v6213_v49 = vpop.permute.xlu1 %1531  ;;  %1710 = vrot.lane.b32.xlu0 %v5908_v12, %s4025_s28 }
 0x28f   :  { %7780 = vst [vmem:[#allocation93_spill] sm:$0xff] %v6213_v49  ;;  %1094 = vrot.lane.b32.xlu1 %v5843_v58, %s4019_s22  ;;  %v7793_v49 = vld [vmem:[#allocation73_spill] sm:$0xff]  ;;  %s4115_s22 = smov 119  }
 0x290   :  { %3638 = vmatpush3.bf16.msk.msra.mxu1 %vm3637_vm8, %v7689_v9  ;;  %v2211_v62 = vadd.s32 384, %v7793_v49  ;;  %3686 = vmatpush3.bf16.msk.msra.mxu0 %vm3685_vm3, %v7689_v9  ;;  %vm1792_vm9 = vcmp.eq.s32.totalorder %v7793_v49, %v5523_v4 }
 0x291   :  { %v6223_v47 = vpop.permute.xlu0 %1270  ;;  %3639 = vmatprep.subr.bf16.mxu1 %v7688_v32  ;;  %3687 = vmatprep.subr.bf16.mxu0 %v7688_v32  ;;  %vm3640_vm7 = vmpackc.low %vm1792_vm9, %vm1791_vm0  ;;  %vm7832_vm0 = vmmov 0  }
 0x292   :  { %7781 = vst [vmem:[#allocation94_spill] sm:$0xff] %v6223_v47  ;;  %vm2227_vm8 = vcmp.eq.s32.totalorder %v2211_v62, %v5523_v4 }
 0x293   :  { %1424 = vrot.lane.b32.xlu1 %v7760_v35, %s4025_s28  ;;  %v6229_v59 = vpop.permute.xlu1 %1555  ;;  %vm3688_vm1 = vmpackc.low %vm2227_vm8, %vm2226_vm5 }
 0x294   :  { %7783 = vst [vmem:[#allocation26_spill] sm:$0xff] %v6229_v59  ;;  %3641 = vmatpush3.bf16.msk.msra.mxu1 %vm3640_vm7, %v7689_v9  ;;  %3689 = vmatpush3.bf16.msk.msra.mxu0 %vm3688_vm1, %v7689_v9  ;;  %v2344_v59 = vshra.s32 %v7771_v54, 6 }
 0x295   :  { %v6237_v50 = vpop.permute.xlu0 %1322 }
 0x296   :  { %vm2360_vm3 = vcmp.eq.s32.totalorder %v2344_v59, %v4673_v23  ;;  %v1101_v59 = vsel %vm561_vm14, %v6116_v29, %v6157_v0 }
 0x297   :  { %1258 = vrot.lane.b32.xlu1 %v5765_v1, %s4022_s25 }
 0x298   :  { %v6252_v31 = vpop.permute.xlu1 %1615 }
 0x299   :  { %7786 = vst [vmem:[#allocation95_spill] sm:$0xff] %v6252_v31  ;;  %v6255_v21 = vpop.permute.xlu0 %1374 }
 0x29a   :  { %7787 = vst [vmem:[#allocation96_spill] sm:$0xff] %v6255_v21 }
 0x29b   :  { %1370 = vrot.lane.b32.xlu1 %v5765_v1, %s4024_s27 }
 0x29c   :  { %v6269_v24 = vpop.permute.xlu1 %1130 }
 0x29d   :  { %7790 = vst [vmem:[#allocation97_spill] sm:$0xff] %v6269_v24  ;;  %v6273_v39 = vpop.permute.xlu0 %1382 }
 0x29e   :  { %7791 = vst [vmem:[#allocation98_spill] sm:$0xff] %v6273_v39 }
 0x29f   :  { %1519 = vrot.lane.b32.xlu1 %v5947_v10, %s4018_s21  ;;  %s4113_s21 = smov 121  }
 0x2a0   :  { %v6288_v33 = vpop.permute.xlu1 %1138 }
 0x2a1   :  { %7794 = vst [vmem:[#allocation99_spill] sm:$0xff] %v6288_v33  ;;  %v6291_v38 = vpop.permute.xlu0 %1643 }
 0x2a2   :  { %7795 = vst [vmem:[#allocation100_spill] sm:$0xff] %v6291_v38 }
 0x2a3   :  { %1592 = vrot.lane.b32.xlu1 %v5947_v10, %s4020_s23  ;;  %v2343_v10 = vshra.s32 %v7681_v52, 6 }
 0x2a4   :  { %v1267_v32 = vpop.permute.xlu1 %1266 }
 0x2a5   :  { %v6297_v45 = vpop.permute.xlu0 %1430  ;;  %vm2359_vm11 = vcmp.eq.s32.totalorder %v2343_v10, %v4673_v23  ;;  %v1053_v10 = vsel %vm512_vm10, %v6132_v34, %v6106_v16  ;;  %v1273_v58 = vsel %vm740_vm13, %v1267_v32, %v6223_v47  ;;  %v1149_v47 = vsel %vm610_vm2, %v6269_v24, %v6190_v26 }
 0x2a6   :  { %7796 = vst [vmem:[#allocation101_spill] sm:$0xff] %v6297_v45  ;;  %v1286_v24 = vmul.f32 %v7755_v8, %v1273_v58 }
 0x2a7   :  { %1626 = vrot.lane.b32.xlu1 %v5908_v12, %s4022_s25 }
 0x2a8   :  { %v6301_v18 = vpop.permute.xlu1 %1318 }
 0x2a9   :  { %7797 = vst [vmem:[#allocation102_spill] sm:$0xff] %v6301_v18  ;;  %v6303_v49 = vpop.permute.xlu0 %1438 }
 0x2aa   :  { %7798 = vst [vmem:[#allocation103_spill] sm:$0xff] %v6303_v49 }
 0x2ab   :  { %1682 = vrot.lane.b32.xlu1 %v5908_v12, %s4024_s27 }
 0x2ac   :  { %v6307_v4 = vpop.permute.xlu1 %1326 }
 0x2ad   :  { %7799 = vst [vmem:[#allocation104_spill] sm:$0xff] %v6307_v4  ;;  %v6309_v62 = vpop.permute.xlu0 %1515 }
 0x2ae   :  { %7800 = vst [vmem:[#allocation105_spill] sm:$0xff] %v6309_v62  ;;  %v3285_v62 = vsel %vm2359_vm11, 1.0, %v7706_v61 }
 0x2af   :  { %v2407_v12 = vmul.f32 0.015625, %v3285_v62  ;;  %v7811_v62 = vld [vmem:[#allocation19_spill] sm:$0xff] }
 0x2b0   :  { %v1379_v9 = vpop.permute.xlu1 %1378 }
 0x2b1   :  { %v6311_v46 = vpop.permute.xlu0 %1538 }
 0x2b2   :  { %7801 = vst [vmem:[#allocation106_spill] sm:$0xff] %v6311_v46  ;;  %v3286_v46 = vsel %vm2360_vm3, 1.0, %v7706_v61 }
 0x2b4   :  { %v6313_v2 = vpop.permute.xlu1 %1579 }
 0x2b5   :  { %7802 = vst [vmem:[#allocation107_spill] sm:$0xff] %v6313_v2  ;;  %v6315_v38 = vpop.permute.xlu0 %1542  ;;  %v2408_v2 = vmul.f32 0.015625, %v3286_v46  ;;  %v1051_v46 = vsel %vm512_vm10, %v6106_v16, %v6142_v63  ;;  %v1197_v16 = vsel %vm659_vm4, %v6176_v30, %v6136_v37  ;;  %v1275_v30 = vsel %vm740_vm13, %v6210_v48, %v1267_v32 }
 0x2b6   :  { %7803 = vst [vmem:[#allocation108_spill] sm:$0xff] %v6315_v38  ;;  %v1147_v32 = vsel %vm610_vm2, %v6190_v26, %v6288_v33 }
 0x2b7   :  { %v6331_v52 = vpack.c.bf16 %v2408_v2, %v2407_v12  ;;  %v1099_v12 = vsel %vm561_vm14, %v6157_v0, %v6128_v41  ;;  %v1195_v41 = vsel %vm659_vm4, %v6136_v37, %v6196_v57  ;;  %v7815_v0 = vld [vmem:[#allocation42_spill] sm:$0xff]  ;;  %v1385_v37 = vsel %vm854_vm12, %v1379_v9, %v6273_v39  ;;  %v7819_v57 = vld [vmem:[#allocation52_spill] sm:$0xff] }
 0x2b8   :  { %v1061_v29 = vmul.f32 %v7815_v0, %v1053_v10  ;;  %v1387_v10 = vsel %vm854_vm12, %v6255_v21, %v1379_v9  ;;  %v1331_v9 = vsel %vm797_vm15, %v6301_v18, %v6237_v50  ;;  %v1285_v21 = vmul.f32 %v7754_v25, %v1275_v30 }
 0x2b9   :  { %v6319_v20 = vpop.permute.xlu0 %1588  ;;  %v6321_v17 = vpop.permute.xlu1 %1671  ;;  %7808 = vst [vmem:[#allocation113_spill] sm:$0xff] %v6331_v52  ;;  %3691 = vmatprep.subr.bf16.mxu1 %v6331_v52  ;;  %v7812_v52 = vld [vmem:[#allocation86_spill] sm:$0xff]  ;;  %v1397_v18 = vmul.f32 %v7677_v36, %v1387_v10  ;;  %v1398_v33 = vmul.f32 %v7678_v7, %v1385_v37  ;;  %v7823_v10 = vld [vmem:[#allocation83_spill] sm:$0xff] }
 0x2ba   :  { %7804 = vst [vmem:[#allocation109_spill] sm:$0xff] %v6319_v20  ;;  %7805 = vst [vmem:[#allocation110_spill] sm:$0xff] %v6321_v17  ;;  %v7817_v20 = vld [vmem:[#allocation47_spill] sm:$0xff]  ;;  %v1077_v37 = vmul.f32 %v7823_v10, %v1061_v29 }
 0x2bb   :  { %v7824_v36 = vld [vmem:[#allocation59_spill] sm:$0xff] }
 0x2bd   :  { %v6327_v31 = vpop.permute.xlu0 %1727 }
 0x2be   :  { %7806 = vst [vmem:[#allocation111_spill] sm:$0xff] %v6327_v31  ;;  %v6329_v38 = vpop.permute.xlu1 %1699  ;;  %v1245_v31 = vmul.f32 %v7812_v52, %v7811_v62  ;;  %v1109_v62 = vmul.f32 %v7750_v11, %v1101_v59 }
 0x2bf   :  { %7807 = vst [vmem:[#allocation112_spill] sm:$0xff] %v6329_v38  ;;  %v7813_v38 = vld [vmem:[#allocation74_spill] sm:$0xff] }
 0x2c0   :  { %v1246_v34 = vmul.f32 %v7812_v52, %v7813_v38  ;;  %v1110_v38 = vmul.f32 %v7817_v20, %v1099_v12  ;;  %v1206_v12 = vmul.f32 %v7819_v57, %v1195_v41  ;;  %v1329_v41 = vsel %vm797_vm15, %v6237_v50, %v6307_v4 }
 0x2c1   :  { %v6334_v54 = vpop.permute.xlu0 %1564 }
 0x2c2   :  { %7809 = vst [vmem:[#allocation114_spill] sm:$0xff] %v6334_v54  ;;  %v1435_v17 = vpop.permute.xlu1 %1434 }
 0x2c3   :  { %v1443_v26 = vsel %vm911_vm6, %v6297_v45, %v1435_v17  ;;  %v1342_v45 = vmul.f32 %v7757_v60, %v1329_v41  ;;  %v1413_v41 = vmul.f32 %v6120_v28, %v1397_v18 }
 0x2c4   :  { %v1453_v30 = vmul.f32 %v7763_v43, %v1443_v26 }
 0x2c5   :  { %v6352_v2 = vpop.permute.xlu0 %1628 }
 0x2c6   :  { %7810 = vst [vmem:[#allocation115_spill] sm:$0xff] %v6352_v2  ;;  %v6366_v63 = vpop.permute.xlu1 %1513  ;;  %v7816_v2 = vld [vmem:[#allocation43_spill] sm:$0xff] }
 0x2c7   :  { %7814 = vst [vmem:[#allocation19_spill] sm:$0xff] %v6366_v63  ;;  %v1062_v54 = vmul.f32 %v7816_v2, %v1051_v46  ;;  %v7818_v46 = vld [vmem:[#allocation51_spill] sm:$0xff]  ;;  %v1158_v2 = vmul.f32 %v7759_v42, %v1147_v32  ;;  %v1301_v32 = vmul.f32 %v6108_v5, %v1285_v21 }
 0x2c8   :  { %v1205_v59 = vmul.f32 %v7818_v46, %v1197_v16  ;;  %v1441_v16 = vsel %vm911_vm6, %v1435_v17, %v6303_v49  ;;  %v1157_v49 = vmul.f32 %v7758_v55, %v1149_v47  ;;  %v1341_v17 = vmul.f32 %v7756_v51, %v1331_v9 }
 0x2c9   :  { %v6394_v48 = vpop.permute.xlu0 %1632  ;;  %v1454_v58 = vmul.f32 %v7764_v56, %v1441_v16  ;;  %v1222_v47 = vmul.f32 %v7824_v36, %v1206_v12  ;;  %v1302_v9 = vmul.f32 %v6108_v5, %v1286_v24  ;;  %v1414_v16 = vmul.f32 %v6120_v28, %v1398_v33 }
 0x2ca   :  { %7820 = vst [vmem:[#allocation86_spill] sm:$0xff] %v6394_v48  ;;  %v6410_v39 = vpop.permute.xlu1 %1517  ;;  %v7822_v48 = vld [vmem:[#allocation46_spill] sm:$0xff]  ;;  %v1173_v29 = vmul.f32 %v6098_v19, %v1157_v49 }
 0x2cb   :  { %7821 = vst [vmem:[#allocation74_spill] sm:$0xff] %v6410_v39  ;;  %v1125_v50 = vmul.f32 %v7822_v48, %v1109_v62  ;;  %v1126_v4 = vmul.f32 %v7822_v48, %v1110_v38  ;;  %v1078_v62 = vmul.f32 %v7823_v10, %v1062_v54  ;;  %v1221_v38 = vmul.f32 %v7824_v36, %v1205_v59  ;;  %v7825_v10 = vld [vmem:[#allocation63_spill] sm:$0xff] }
 0x2cc   :  { %v1174_v54 = vmul.f32 %v6098_v19, %v1158_v2  ;;  %v1357_v59 = vmul.f32 %v7825_v10, %v1341_v17  ;;  %v1358_v12 = vmul.f32 %v7825_v10, %v1342_v45  ;;  %v1469_v36 = vmul.f32 %v6151_v13, %v1453_v30 }
 0x2cd   :  { %v6424_v8 = vpop.permute.xlu0 %1658  ;;  %v1253_v26 = vadd.f32 %v1245_v31, %v1125_v50  ;;  %v1254_v56 = vadd.f32 %v1246_v34, %v1126_v4  ;;  %v1470_v21 = vmul.f32 %v6151_v13, %v1454_v58  ;;  %v1229_v24 = vadd.f32 %v1221_v38, %v1077_v37 }
 0x2ce   :  { %v6430_v48 = vpop.permute.xlu1 %1540  ;;  %v1230_v18 = vadd.f32 %v1222_v47, %v1078_v62  ;;  %v1309_v31 = vadd.f32 %v1301_v32, %v1173_v29  ;;  %v1310_v34 = vadd.f32 %v1302_v9, %v1174_v54  ;;  %v2349_v29 = vshra.s32 %v5602_v14, 6 }
 0x2cf   :  { %v1421_v33 = vadd.f32 %v1413_v41, %v1253_v26  ;;  %v1422_v49 = vadd.f32 %v1414_v16, %v1254_v56  ;;  %v1365_v4 = vadd.f32 %v1357_v59, %v1229_v24  ;;  %v2347_v16 = vshra.s32 %v5569_v6, 6 }
 0x2d0   :  { %v1366_v2 = vadd.f32 %v1358_v12, %v1230_v18  ;;  %v1477_v17 = vadd.f32 %v1469_v36, %v1309_v31  ;;  %v1478_v45 = vadd.f32 %v1470_v21, %v1310_v34  ;;  %v2345_v36 = vshra.s32 %v7774_v27, 6  ;;  %v7834_v27 = vld [vmem:[#allocation84_spill] sm:$0xff]  ;;  %v7840_v18 = vld [vmem:[#allocation57_spill] sm:$0xff] }
 0x2d1   :  { %v6442_v43 = vpop.permute.xlu0 %1684  ;;  %v1485_v30 = vadd.f32 %v1421_v33, %v1365_v4  ;;  %v2348_v26 = vshra.s32 %v5572_v15, 6  ;;  %v2350_v54 = vshra.s32 %v5609_v22, 6  ;;  %v2351_v59 = vshra.s32 %v5631_v44, 6  ;;  %v7835_v22 = vld [vmem:[#allocation65_spill] sm:$0xff] }
 0x2d2   :  { %7826 = vst [vmem:[#allocation42_spill] sm:$0xff] %v6442_v43  ;;  %v6444_v5 = vpop.permute.xlu1 %1586  ;;  %v1486_v58 = vadd.f32 %v1422_v49, %v1366_v2  ;;  %vm2361_vm9 = vcmp.eq.s32.totalorder %v2345_v36, %v4673_v23  ;;  %v6476_v12 = vmul.f32 %v7834_v27, %v7760_v35  ;;  %v6483_v6 = vmul.f32 %v7834_v27, %v5395_v40  ;;  %v7837_v35 = vld [vmem:[#allocation95_spill] sm:$0xff]  ;;  %v7842_v49 = vld [vmem:[#allocation108_spill] sm:$0xff]  ;;  %v7843_v2 = vld [vmem:[#allocation106_spill] sm:$0xff] }
 0x2d3   :  { %7827 = vst [vmem:[#allocation47_spill] sm:$0xff] %v6444_v5  ;;  %v1493_v10 = vadd.f32 %v1485_v30, %v1477_v17  ;;  %v3287_v15 = vsel %vm2361_vm9, 1.0, %v7706_v61  ;;  %vm2363_vm7 = vcmp.eq.s32.totalorder %v2347_v16, %v4673_v23  ;;  %v6490_v14 = vmul.f32 %v7812_v52, %v5765_v1 }
 0x2d4   :  { %v1494_v37 = vadd.f32 %v1486_v58, %v1478_v45  ;;  %v6494_v44 = vmul.f32 %v7812_v52, %v7835_v22  ;;  %vm2364_vm8 = vcmp.eq.s32.totalorder %v2348_v26, %v4673_v23  ;;  %v1619_v31 = vmul.f32 %v7840_v18, %v7837_v35  ;;  %v7844_v45 = vld [vmem:[#allocation109_spill] sm:$0xff] }
 0x2d5   :  { %v6446_v50 = vpop.permute.xlu0 %1688  ;;  %vm2365_vm1 = vcmp.eq.s32.totalorder %v2349_v29, %v4673_v23  ;;  %vm2366_vm11 = vcmp.eq.s32.totalorder %v2350_v54, %v4673_v23  ;;  %vm2367_vm3 = vcmp.eq.s32.totalorder %v2351_v59, %v4673_v23  ;;  %v2409_v34 = vmul.f32 0.015625, %v3287_v15  ;;  %v7846_v26 = vld [vmem:[#allocation13_spill] sm:$0xff]  ;;  %v7847_v15 = vld [vmem:[#allocation38_spill] sm:$0xff] }
 0x2d6   :  { %7828 = vst [vmem:[#allocation51_spill] sm:$0xff] %v6446_v50  ;;  %v6448_v28 = vpop.permute.xlu1 %1590  ;;  %7836 = vst [vmem:[#allocation84_spill] sm:$0xff] %v6494_v44  ;;  %v3289_v33 = vsel %vm2363_vm7, 1.0, %v7706_v61  ;;  %v1547_v4 = vsel %vm561_vm14, %v6430_v48, %v7842_v49  ;;  %v1548_v17 = vsel %vm561_vm14, %v7843_v2, %v6430_v48  ;;  %v1596_v30 = vsel %vm659_vm4, %v6444_v5, %v7844_v45  ;;  %v7849_v5 = vld [vmem:[#allocation49_spill] sm:$0xff]  ;;  %v7853_v44 = vld [vmem:[#allocation26_spill] sm:$0xff] }
 0x2d7   :  { %7829 = vst [vmem:[#allocation52_spill] sm:$0xff] %v6448_v28  ;;  %v3290_v58 = vsel %vm2364_vm8, 1.0, %v7706_v61  ;;  %v3293_v36 = vsel %vm2367_vm3, 1.0, %v7706_v61  ;;  %v1551_v59 = vmul.f32 %v7750_v11, %v1548_v17  ;;  %v1552_v27 = vmul.f32 %v7817_v20, %v1547_v4  ;;  %v7850_v4 = vld [vmem:[#allocation43_spill] sm:$0xff] }
 0x2d9   :  { %v1093_v13 = vpop.permute.xlu0 %1092 }
 0x2da   :  { %v6450_v62 = vpop.permute.xlu1 %1501  ;;  %v1102_v29 = vsel %vm561_vm14, %v1093_v13, %v7846_v26  ;;  %v1096_v22 = vsel %vm561_vm14, %v7847_v15, %v1093_v13  ;;  %v2412_v26 = vmul.f32 0.015625, %v3290_v58  ;;  %v7852_v15 = vld [vmem:[#allocation60_spill] sm:$0xff] }
 0x2db   :  { %7830 = vst [vmem:[#allocation116_spill] sm:$0xff] %v6450_v62  ;;  %v1509_v38 = vadd.f32 %v6450_v62, %v1493_v10  ;;  %v1510_v47 = vadd.f32 %v6450_v62, %v1494_v37  ;;  %v2346_v10 = vshra.s32 %v7775_v53, 6  ;;  %v2352_v53 = vshra.s32 %v7782_v3, 6  ;;  %v7838_v3 = vld [vmem:[#allocation28_spill] sm:$0xff] }
 0x2dc   :  { %v6498_v24 = vmul.f32 %v7838_v3, %v7837_v35  ;;  %v1595_v37 = vsel %vm659_vm4, %v7844_v45, %v6448_v28  ;;  %v1104_v11 = vmul.f32 %v7849_v5, %v1102_v29 }
 0x2dd   :  { %v6454_v56 = vpop.permute.xlu0 %1712  ;;  %3431 = vmatmul.mubr.f32.gmra.mrb[2].mxu1 %v1509_v38  ;;  %3513 = vmatmul.mubr.f32.gmra.mrb[2].mxu0 %v1510_v47  ;;  %vm2362_vm5 = vcmp.eq.s32.totalorder %v2346_v10, %v4673_v23  ;;  %vm2368_vm9 = vcmp.eq.s32.totalorder %v2352_v53, %v4673_v23  ;;  %v3291_v38 = vsel %vm2365_vm1, 1.0, %v7706_v61  ;;  %v3292_v47 = vsel %vm2366_vm11, 1.0, %v7706_v61  ;;  %v7845_v10 = vld [vmem:[#allocation105_spill] sm:$0xff] }
 0x2de   :  { %7831 = vst [vmem:[#allocation117_spill] sm:$0xff] %v6454_v56  ;;  %v6456_v32 = vpop.permute.xlu1 %1562  ;;  %3433 = vmatprep.mubr.msk.f32.mxu1 %vm7832_vm0, %v7706_v61  ;;  %3515 = vmatprep.mubr.msk.f32.mxu0 %vm7832_vm0, %v7706_v61  ;;  %7839 = vst [vmem:[#allocation65_spill] sm:$0xff] %v6498_v24  ;;  %v3288_v52 = vsel %vm2362_vm5, 1.0, %v7706_v61  ;;  %v1523_v48 = vsel %vm512_vm10, %v6366_v63, %v7845_v10  ;;  %v1522_v16 = vsel %vm512_vm10, %v7845_v10, %v6410_v39 }
 0x2df   :  { %v3294_v54 = vsel %vm2368_vm9, 1.0, %v7706_v61  ;;  %v1599_v53 = vmul.f32 %v7818_v46, %v1596_v30  ;;  %v1600_v45 = vmul.f32 %v7819_v57, %v1595_v37  ;;  %v2410_v10 = vmul.f32 0.015625, %v3288_v52  ;;  %v7851_v30 = vld [vmem:[#allocation33_spill] sm:$0xff]  ;;  %v7855_v37 = vld [vmem:[#allocation78_spill] sm:$0xff] }
 0x2e0   :  { %v2411_v24 = vmul.f32 0.015625, %v3289_v33  ;;  %v1526_v62 = vmul.f32 %v7815_v0, %v1523_v48  ;;  %v2413_v17 = vmul.f32 0.015625, %v3291_v38  ;;  %v2414_v20 = vmul.f32 0.015625, %v3292_v47  ;;  %v7854_v33 = vld [vmem:[#allocation32_spill] sm:$0xff] }
 0x2e1   :  { %v6463_v9 = vpop.permute.xlu0 %1716  ;;  %v1527_v46 = vmul.f32 %v7850_v4, %v1522_v16  ;;  %v1107_v28 = vmul.f32 %v7851_v30, %v1096_v22  ;;  %v2415_v63 = vmul.f32 0.015625, %v3293_v36  ;;  %v2416_v13 = vmul.f32 0.015625, %v3294_v54  ;;  %v7858_v16 = vld [vmem:[#allocation93_spill] sm:$0xff]  ;;  %v7859_v54 = vld [vmem:[#allocation12_spill] sm:$0xff] }
 0x2e2   :  { %7833 = vst [vmem:[#allocation118_spill] sm:$0xff] %v6463_v9  ;;  %v6465_v41 = vpop.permute.xlu1 %1566  ;;  %v1620_v39 = vmul.f32 %v7852_v15, %v7837_v35  ;;  %v1559_v57 = vmul.f32 %v7853_v44, %v1551_v59  ;;  %v1560_v52 = vmul.f32 %v7853_v44, %v1552_v27  ;;  %v1607_v58 = vmul.f32 %v7854_v33, %v1599_v53  ;;  %v7860_v59 = vld [vmem:[#allocation114_spill] sm:$0xff] }
 0x2e3   :  { %v6565_v38 = vmul.f32 %v7855_v37, %v7837_v35  ;;  %v1608_v47 = vmul.f32 %v7854_v33, %v1600_v45  ;;  %v6568_v48 = vpack.c.bf16 %v2410_v10, %v2409_v34  ;;  %v6570_v36 = vpack.c.bf16 %v2412_v26, %v2411_v24  ;;  %v7864_v15 = vld [vmem:[#allocation86_spill] sm:$0xff] }
 0x2e4   :  { %v1535_v29 = vmul.f32 %v7858_v16, %v1526_v62  ;;  %v1120_v22 = vmul.f32 %v7859_v54, %v1104_v11  ;;  %v1572_v27 = vsel %vm610_vm2, %v6456_v32, %v7860_v59  ;;  %v6578_v4 = vpack.c.bf16 %v2414_v20, %v2413_v17  ;;  %v7863_v11 = vld [vmem:[#allocation115_spill] sm:$0xff] }
 0x2e5   :  { %v6500_v40 = vpop.permute.xlu0 %1256  ;;  %7856 = vst [vmem:[#allocation57_spill] sm:$0xff] %v6565_v38  ;;  %7857 = vst [vmem:[#allocation108_spill] sm:$0xff] %v6570_v36  ;;  %v1536_v35 = vmul.f32 %v7858_v16, %v1527_v46  ;;  %v1123_v45 = vmul.f32 %v7859_v54, %v1107_v28  ;;  %v1571_v24 = vsel %vm610_vm2, %v7860_v59, %v6465_v41  ;;  %v7869_v54 = vld [vmem:[#allocation61_spill] sm:$0xff]  ;;  %v7880_v16 = vld [vmem:[#allocation68_spill] sm:$0xff] }
 0x2e6   :  { %v6478_v21 = vpop.permute.xlu1 %1630  ;;  %7861 = vst [vmem:[#allocation106_spill] sm:$0xff] %v6578_v4  ;;  %v6586_v62 = vpack.c.bf16 %v2416_v13, %v2415_v63  ;;  %v6588_v34 = vadd.f32 %v1619_v31, %v1559_v57  ;;  %v6590_v10 = vadd.f32 %v1620_v39, %v1560_v52  ;;  %v1611_v26 = vadd.f32 %v1607_v58, %v1535_v29  ;;  %v7865_v31 = vld [vmem:[#allocation80_spill] sm:$0xff]  ;;  %v7866_v52 = vld [vmem:[#allocation82_spill] sm:$0xff]  ;;  %v7878_v4 = vld [vmem:[#allocation37_spill] sm:$0xff] }
 0x2e7   :  { %v1635_v17 = vsel %vm740_vm13, %v7863_v11, %v6478_v21  ;;  %v1612_v28 = vadd.f32 %v1608_v47, %v1536_v35  ;;  %v1575_v46 = vmul.f32 %v7758_v55, %v1572_v27  ;;  %v1634_v63 = vsel %vm740_vm13, %v6478_v21, %v7864_v15  ;;  %v7867_v21 = vld [vmem:[#allocation50_spill] sm:$0xff] }
 0x2e8   :  { %7862 = vst [vmem:[#allocation109_spill] sm:$0xff] %v6586_v62  ;;  %v1248_v13 = vadd.f32 %v6476_v12, %v1120_v22  ;;  %v1576_v57 = vmul.f32 %v7759_v42, %v1571_v24  ;;  %v1251_v37 = vadd.f32 %v6483_v6, %v1123_v45  ;;  %v1276_v47 = vsel %vm740_vm13, %v6500_v40, %v7867_v21  ;;  %v7870_v6 = vld [vmem:[#allocation66_spill] sm:$0xff]  ;;  %v7871_v45 = vld [vmem:[#allocation107_spill] sm:$0xff]  ;;  %v7874_v21 = vld [vmem:[#allocation89_spill] sm:$0xff] }
 0x2e9   :  { %v1369_v3 = vpop.permute.xlu0 %1368  ;;  %v1639_v12 = vmul.f32 %v7754_v25, %v1635_v17  ;;  %v1640_v22 = vmul.f32 %v7869_v54, %v1634_v63  ;;  %v1583_v24 = vmul.f32 %v7871_v45, %v1575_v46  ;;  %v7872_v17 = vld [vmem:[#allocation16_spill] sm:$0xff]  ;;  %v7875_v54 = vld [vmem:[#allocation58_spill] sm:$0xff]  ;;  %v7876_v62 = vld [vmem:[#allocation41_spill] sm:$0xff] }
 0x2ea   :  { %v6508_v1 = vpop.permute.xlu1 %1656  ;;  %v1388_v39 = vsel %vm854_vm12, %v1369_v3, %v7865_v31  ;;  %v1390_v58 = vsel %vm854_vm12, %v7866_v52, %v1369_v3  ;;  %v7868_v3 = vld [vmem:[#allocation77_spill] sm:$0xff]  ;;  %v1584_v63 = vmul.f32 %v7871_v45, %v1576_v57  ;;  %v7873_v52 = vld [vmem:[#allocation31_spill] sm:$0xff] }
 0x2eb   :  { %7841 = vst [vmem:[#allocation95_spill] sm:$0xff] %v6508_v1  ;;  %v1663_v55 = vsel %vm797_vm15, %v6508_v1, %v6424_v8  ;;  %v1278_v29 = vsel %vm740_vm13, %v7868_v3, %v6500_v40  ;;  %v1392_v59 = vmul.f32 %v7870_v6, %v1388_v39  ;;  %v1395_v31 = vmul.f32 %v7872_v17, %v1390_v58 }
 0x2ec   :  { %v1280_v58 = vmul.f32 %v7875_v54, %v1276_v47  ;;  %v7881_v47 = vld [vmem:[#allocation110_spill] sm:$0xff] }
 0x2ed   :  { %v1047_v53 = vpop.permute.xlu0 %1046 }
 0x2ee   :  { %v6551_v18 = vpop.permute.xlu1 %1660  ;;  %v1049_v39 = vsel %vm512_vm10, %v7873_v52, %v1047_v53  ;;  %v1055_v3 = vsel %vm512_vm10, %v1047_v53, %v7874_v21 }
 0x2ef   :  { %7848 = vst [vmem:[#allocation28_spill] sm:$0xff] %v6551_v18  ;;  %v1662_v42 = vsel %vm797_vm15, %v6424_v8, %v6551_v18  ;;  %v1667_v8 = vmul.f32 %v7756_v51, %v1663_v55  ;;  %v1283_v51 = vmul.f32 %v7876_v62, %v1278_v29  ;;  %v7877_v55 = vld [vmem:[#allocation100_spill] sm:$0xff]  ;;  %v7882_v29 = vld [vmem:[#allocation45_spill] sm:$0xff] }
 0x2f0   :  { %v1668_v46 = vmul.f32 %v7757_v60, %v1662_v42  ;;  %v1647_v38 = vmul.f32 %v7877_v55, %v1639_v12  ;;  %v1648_v57 = vmul.f32 %v7877_v55, %v1640_v22  ;;  %v1411_v60 = vmul.f32 %v7878_v4, %v1395_v31  ;;  %v7883_v12 = vld [vmem:[#allocation44_spill] sm:$0xff]  ;;  %v7884_v22 = vld [vmem:[#allocation91_spill] sm:$0xff] }
 0x2f1   :  { %v1191_v27 = vpop.permute.xlu0 %1190  ;;  %v1675_v42 = vmul.f32 %v7881_v47, %v1667_v8  ;;  %v1060_v33 = vmul.f32 %v7882_v29, %v1055_v3  ;;  %v1063_v15 = vmul.f32 %v7883_v12, %v1049_v39  ;;  %v7886_v8 = vld [vmem:[#allocation112_spill] sm:$0xff]  ;;  %v7887_v39 = vld [vmem:[#allocation71_spill] sm:$0xff] }
 0x2f2   :  { %v1687_v0 = vpop.permute.xlu1 %1686  ;;  %v7889_v55 = vld [vmem:[#allocation75_spill] sm:$0xff]  ;;  %v1652_v18 = vadd.f32 %v1648_v57, %v1584_v63 }
 0x2f3   :  { %v1690_v35 = vsel %vm854_vm12, %v1687_v0, %v6446_v50  ;;  %v1691_v40 = vsel %vm854_vm12, %v6442_v43, %v1687_v0  ;;  %v1408_v50 = vmul.f32 %v7878_v4, %v1392_v59  ;;  %v7879_v43 = vld [vmem:[#allocation3_spill] sm:$0xff]  ;;  %v1193_v59 = vsel %vm659_vm4, %v7884_v22, %v1191_v27  ;;  %v7885_v4 = vld [vmem:[#allocation53_spill] sm:$0xff] }
 0x2f4   :  { %v1696_v0 = vmul.f32 %v7678_v7, %v1690_v35  ;;  %v1199_v52 = vsel %vm659_vm4, %v1191_v27, %v7879_v43  ;;  %v1695_v53 = vmul.f32 %v7880_v16, %v1691_v40  ;;  %v1676_v7 = vmul.f32 %v7881_v47, %v1668_v46  ;;  %v7888_v46 = vld [vmem:[#allocation72_spill] sm:$0xff] }
 0x2f5   :  { %v1143_v35 = vpop.permute.xlu0 %1142  ;;  %v1204_v31 = vmul.f32 %v7885_v4, %v1199_v52  ;;  %v6677_v11 = vmul.f32 %v7889_v55, %v1280_v58  ;;  %v6680_v27 = vmul.f32 %v7889_v55, %v1283_v51  ;;  %v1651_v22 = vadd.f32 %v1647_v38, %v1583_v24  ;;  %v7893_v24 = vld [vmem:[#allocation59_spill] sm:$0xff] }
 0x2f6   :  { %v6596_v20 = vpop.permute.xlu1 %1044  ;;  %v1704_v40 = vmul.f32 %v7886_v8, %v1696_v0  ;;  %v6685_v52 = vadd.f32 %v1411_v60, %v1251_v37  ;;  %v7890_v0 = vld [vmem:[#allocation34_spill] sm:$0xff]  ;;  %v1680_v38 = vadd.f32 %v1676_v7, %v1612_v28 }
 0x2f7   :  { %v1220_v55 = vmul.f32 %v7893_v24, %v1204_v31  ;;  %v7901_v31 = vld [vmem:[#allocation40_spill] sm:$0xff] }
 0x2f8   :  { %v1708_v63 = vadd.f32 %v1704_v40, %v6590_v10  ;;  %v7897_v10 = vld [vmem:[#allocation99_spill] sm:$0xff] }
 0x2f9   :  { %v1315_v37 = vpop.permute.xlu0 %1314 }
 0x2fa   :  { %v1189_v25 = vpop.permute.xlu1 %1188 }
 0x2fe   :  { %v1715_v21 = vpop.permute.xlu1 %1714 }
 0x2ff   :  { %v1718_v43 = vsel %vm911_vm6, %v1715_v21, %v6463_v9  ;;  %v1719_v16 = vsel %vm911_vm6, %v6454_v56, %v1715_v21  ;;  %v1703_v9 = vmul.f32 %v7886_v8, %v1695_v53  ;;  %v6683_v21 = vadd.f32 %v1408_v50, %v1248_v13  ;;  %v7894_v13 = vld [vmem:[#allocation8_spill] sm:$0xff] }
 0x300   :  { %v1723_v3 = vmul.f32 %v7887_v39, %v1719_v16  ;;  %v1724_v47 = vmul.f32 %v7888_v46, %v1718_v43  ;;  %v1207_v56 = vmul.f32 %v7890_v0, %v1193_v59  ;;  %v1679_v16 = vadd.f32 %v1675_v42, %v1611_v26  ;;  %v7891_v39 = vld [vmem:[#allocation83_spill] sm:$0xff]  ;;  %v7896_v53 = vld [vmem:[#allocation48_spill] sm:$0xff]  ;;  %v7900_v59 = vld [vmem:[#allocation22_spill] sm:$0xff] }
 0x301   :  { %v1076_v43 = vmul.f32 %v7891_v39, %v1060_v33  ;;  %v7892_v46 = vld [vmem:[#allocation111_spill] sm:$0xff]  ;;  %v1079_v51 = vmul.f32 %v7891_v39, %v1063_v15  ;;  %v1707_v50 = vadd.f32 %v1703_v9, %v6588_v34  ;;  %v1054_v26 = vsel %vm512_vm10, %v6596_v20, %v7894_v13  ;;  %v7898_v34 = vld [vmem:[#allocation97_spill] sm:$0xff] }
 0x302   :  { %v1141_v36 = vpop.permute.xlu1 %1140  ;;  %v1731_v58 = vmul.f32 %v7892_v46, %v1723_v3  ;;  %v1732_v1 = vmul.f32 %v7892_v46, %v1724_v47  ;;  %v7895_v33 = vld [vmem:[#allocation67_spill] sm:$0xff]  ;;  %v1198_v28 = vsel %vm659_vm4, %v1189_v25, %v7896_v53  ;;  %v1223_v60 = vmul.f32 %v7893_v24, %v1207_v56 }
 0x303   :  { %v1192_v57 = vsel %vm659_vm4, %v7895_v33, %v1189_v25  ;;  %v1145_v9 = vsel %vm610_vm2, %v7897_v10, %v1143_v35  ;;  %v1151_v47 = vsel %vm610_vm2, %v1143_v35, %v7898_v34  ;;  %v7899_v42 = vld [vmem:[#allocation15_spill] sm:$0xff]  ;;  %v6722_v39 = vadd.f32 %v1220_v55, %v1076_v43  ;;  %v7902_v33 = vld [vmem:[#allocation102_spill] sm:$0xff] }
 0x304   :  { %v1048_v7 = vsel %vm512_vm10, %v7899_v42, %v6596_v20  ;;  %v1735_v40 = vadd.f32 %v1731_v58, %v1651_v22  ;;  %v1736_v3 = vadd.f32 %v1732_v1, %v1652_v18  ;;  %v1056_v24 = vmul.f32 %v7882_v29, %v1054_v26  ;;  %v7903_v22 = vld [vmem:[#allocation69_spill] sm:$0xff]  ;;  %v7904_v18 = vld [vmem:[#allocation4_spill] sm:$0xff]  ;;  %v7905_v58 = vld [vmem:[#allocation62_spill] sm:$0xff] }
 0x305   :  { %v1200_v35 = vmul.f32 %v7885_v4, %v1198_v28  ;;  %v1203_v13 = vmul.f32 %v7890_v0, %v1192_v57  ;;  %v1059_v20 = vmul.f32 %v7883_v12, %v1048_v7  ;;  %v1333_v53 = vsel %vm797_vm15, %v1315_v37, %v7902_v33  ;;  %v7906_v26 = vld [vmem:[#allocation21_spill] sm:$0xff]  ;;  %v7907_v28 = vld [vmem:[#allocation54_spill] sm:$0xff]  ;;  %v7908_v7 = vld [vmem:[#allocation39_spill] sm:$0xff] }
 0x306   :  { %v1313_v15 = vpop.permute.xlu1 %1312  ;;  %v1739_v34 = vadd.f32 %v1707_v50, %v1679_v16  ;;  %v1144_v1 = vsel %vm610_vm2, %v7903_v22, %v1141_v36  ;;  %v1150_v43 = vsel %vm610_vm2, %v1141_v36, %v7904_v18  ;;  %v1156_v42 = vmul.f32 %v7907_v28, %v1151_v47  ;;  %v7910_v22 = vld [vmem:[#allocation9_spill] sm:$0xff] }
 0x307   :  { %v1332_v25 = vsel %vm797_vm15, %v1313_v15, %v7900_v59  ;;  %v1334_v56 = vsel %vm797_vm15, %v7901_v31, %v1313_v15  ;;  %v1740_v15 = vadd.f32 %v1708_v63, %v1680_v38  ;;  %v1159_v59 = vmul.f32 %v7908_v7, %v1145_v9  ;;  %v1427_v31 = vpop.permute.xlu0 %1426  ;;  %v7909_v38 = vld [vmem:[#allocation104_spill] sm:$0xff] }
 0x308   :  { %v1336_v55 = vmul.f32 %v7905_v58, %v1332_v25  ;;  %v1339_v57 = vmul.f32 %v7906_v26, %v1334_v56  ;;  %v1743_v33 = vadd.f32 %v1739_v34, %v1735_v40  ;;  %v1335_v63 = vsel %vm797_vm15, %v7909_v38, %v1315_v37  ;;  %v7912_v37 = vld [vmem:[#allocation87_spill] sm:$0xff] }
 0x309   :  { %v1744_v16 = vadd.f32 %v1740_v15, %v1736_v3  ;;  %v1340_v50 = vmul.f32 %v7905_v58, %v1333_v53  ;;  %v1216_v46 = vmul.f32 %v7910_v22, %v1200_v35  ;;  %v1219_v36 = vmul.f32 %v7910_v22, %v1203_v13  ;;  %v7911_v3 = vld [vmem:[#allocation76_spill] sm:$0xff]  ;;  %v7917_v22 = vld [vmem:[#allocation79_spill] sm:$0xff] }
 0x30a   :  { %v6731_v10 = vpop.permute.xlu1 %1747  ;;  %v1152_v25 = vmul.f32 %v7907_v28, %v1150_v43  ;;  %v1155_v56 = vmul.f32 %v7908_v7, %v1144_v1  ;;  %v1072_v34 = vmul.f32 %v7911_v3, %v1056_v24  ;;  %v1075_v15 = vmul.f32 %v7911_v3, %v1059_v20  ;;  %v7920_v3 = vld [vmem:[#allocation70_spill] sm:$0xff] }
 0x30b   :  { %v1751_v47 = vadd.f32 %v6731_v10, %v1743_v33  ;;  %v1752_v9 = vadd.f32 %v6731_v10, %v1744_v16  ;;  %v1352_v18 = vmul.f32 %v7912_v37, %v1336_v55  ;;  %v1355_v53 = vmul.f32 %v7912_v37, %v1339_v57  ;;  %v7913_v33 = vld [vmem:[#allocation63_spill] sm:$0xff]  ;;  %v1545_v55 = vpop.permute.xlu0 %1544 }
 0x30c   :  { %v6757_v35 = vadd.f32 %v1223_v60, %v1079_v51  ;;  %v6760_v13 = vmul.f32 %v6098_v19, %v1156_v42  ;;  %v1343_v1 = vmul.f32 %v7906_v26, %v1335_v63  ;;  %v1175_v43 = vmul.f32 %v6098_v19, %v1159_v59  ;;  %v7914_v51 = vld [vmem:[#allocation2_spill] sm:$0xff]  ;;  %v7915_v42 = vld [vmem:[#allocation88_spill] sm:$0xff] }
 0x30d   :  { %3434 = vmatmul.mubr.f32.gmra.mrb[4].mxu1 %v1751_v47  ;;  %3516 = vmatmul.mubr.f32.gmra.mrb[4].mxu0 %v1752_v9  ;;  %v6765_v16 = vmul.f32 %v7913_v33, %v1340_v50  ;;  %v1224_v24 = vadd.f32 %v1216_v46, %v1072_v34  ;;  %v1227_v20 = vadd.f32 %v1219_v36, %v1075_v15  ;;  %v7916_v63 = vld [vmem:[#allocation56_spill] sm:$0xff]  ;;  %v7919_v9 = vld [vmem:[#allocation101_spill] sm:$0xff] }
 0x30e   :  { %v1095_v40 = vpop.permute.xlu1 %1094  ;;  %3468 = vmatprep.mubr.msk.f32.mxu1 %vm7832_vm0, %v7706_v61  ;;  %v1168_v60 = vmul.f32 %v7914_v51, %v1152_v25  ;;  %v1171_v57 = vmul.f32 %v7914_v51, %v1155_v56  ;;  %3550 = vmatprep.mubr.msk.f32.mxu0 %vm7832_vm0, %v7706_v61  ;;  %v7918_v25 = vld [vmem:[#allocation81_spill] sm:$0xff]  ;;  %v1359_v47 = vmul.f32 %v7913_v33, %v1343_v1 }
 0x30f   :  { %v1097_v38 = vsel %vm561_vm14, %v7915_v42, %v1095_v40  ;;  %v1103_v19 = vsel %vm561_vm14, %v1095_v40, %v7916_v63  ;;  %v1360_v46 = vadd.f32 %v1352_v18, %v1224_v24  ;;  %v1363_v50 = vadd.f32 %v1355_v53, %v1227_v20  ;;  %v7921_v15 = vld [vmem:[#allocation29_spill] sm:$0xff]  ;;  %v7922_v18 = vld [vmem:[#allocation103_spill] sm:$0xff]  ;;  %v7923_v42 = vld [vmem:[#allocation64_spill] sm:$0xff] }
 0x310   :  { %v1445_v40 = vsel %vm911_vm6, %v1427_v31, %v7919_v9  ;;  %v1447_v53 = vsel %vm911_vm6, %v7922_v18, %v1427_v31  ;;  %v1549_v24 = vsel %vm561_vm14, %v1545_v55, %v7843_v2  ;;  %v1108_v20 = vmul.f32 %v7849_v5, %v1103_v19  ;;  %v7925_v19 = vld [vmem:[#allocation94_spill] sm:$0xff]  ;;  %v7927_v18 = vld [vmem:[#allocation55_spill] sm:$0xff] }
 0x311   :  { %v1111_v1 = vmul.f32 %v7851_v30, %v1097_v38  ;;  %v1304_v33 = vadd.f32 %v6677_v11, %v1168_v60  ;;  %v1307_v51 = vadd.f32 %v6680_v27, %v1171_v57  ;;  %v1483_v31 = vadd.f32 %v6685_v52, %v1363_v50  ;;  %v1569_v11 = vpop.permute.xlu0 %1568  ;;  %v7926_v52 = vld [vmem:[#allocation46_spill] sm:$0xff] }
 0x312   :  { %v1425_v59 = vpop.permute.xlu1 %1424  ;;  %v1452_v9 = vmul.f32 %v7920_v3, %v1445_v40  ;;  %v7928_v40 = vld [vmem:[#allocation96_spill] sm:$0xff] }
 0x313   :  { %v1444_v36 = vsel %vm911_vm6, %v1425_v59, %v7917_v22  ;;  %v1446_v56 = vsel %vm911_vm6, %v7918_v25, %v1425_v59  ;;  %v7924_v25 = vld [vmem:[#allocation92_spill] sm:$0xff]  ;;  %v1127_v50 = vmul.f32 %v7926_v52, %v1111_v1  ;;  %v1573_v1 = vsel %vm610_vm2, %v1569_v11, %v6456_v32 }
 0x314   :  { %v1448_v34 = vmul.f32 %v7920_v3, %v1444_v36  ;;  %v1451_v37 = vmul.f32 %v7921_v15, %v1446_v56  ;;  %v1480_v36 = vadd.f32 %v6683_v21, %v1360_v46  ;;  %v1546_v21 = vsel %vm561_vm14, %v7842_v49, %v1545_v55  ;;  %v7929_v49 = vld [vmem:[#allocation98_spill] sm:$0xff] }
 0x315   :  { %v1124_v46 = vmul.f32 %v7926_v52, %v1108_v20  ;;  %v1553_v20 = vmul.f32 %v7851_v30, %v1546_v21  ;;  %v1364_v21 = vadd.f32 %v6765_v16, %v6722_v39  ;;  %v7933_v52 = vld [vmem:[#allocation90_spill] sm:$0xff]  ;;  %v1570_v39 = vsel %vm610_vm2, %v6465_v41, %v1569_v11  ;;  %v7934_v16 = vld [vmem:[#allocation113_spill] sm:$0xff] }
 0x316   :  { %v1464_v63 = vmul.f32 %v7923_v42, %v1448_v34  ;;  %v1467_v59 = vmul.f32 %v7923_v42, %v1451_v37  ;;  %v1259_v22 = vpop.permute.xlu1 %1258 }
 0x317   :  { %v1277_v2 = vsel %vm740_vm13, %v1259_v22, %v7924_v25  ;;  %v1279_v38 = vsel %vm740_vm13, %v7925_v19, %v1259_v22  ;;  %v7931_v25 = vld [vmem:[#allocation85_spill] sm:$0xff] }
 0x318   :  { %v1472_v60 = vadd.f32 %v1464_v63, %v1304_v33  ;;  %v1475_v27 = vadd.f32 %v1467_v59, %v1307_v51  ;;  %v1284_v57 = vmul.f32 %v7875_v54, %v1277_v2  ;;  %v1287_v56 = vmul.f32 %v7876_v62, %v1279_v38  ;;  %v1655_v38 = vpop.permute.xlu0 %1654 }
 0x319   :  { %v1455_v63 = vmul.f32 %v7921_v15, %v1447_v53  ;;  %v1550_v59 = vmul.f32 %v7849_v5, %v1549_v24  ;;  %v1252_v5 = vadd.f32 %v6490_v14, %v1124_v46  ;;  %v7930_v24 = vld [vmem:[#allocation84_spill] sm:$0xff]  ;;  %v1367_v14 = vadd.f32 %v1359_v47, %v6757_v35 }
 0x31a   :  { %v1488_v34 = vadd.f32 %v1480_v36, %v1472_v60  ;;  %v1491_v37 = vadd.f32 %v1483_v31, %v1475_v27  ;;  %v1300_v42 = vmul.f32 %v7927_v18, %v1284_v57  ;;  %v1303_v33 = vmul.f32 %v7927_v18, %v1287_v56  ;;  %v1371_v51 = vpop.permute.xlu1 %1370  ;;  %v7932_v27 = vld [vmem:[#allocation20_spill] sm:$0xff] }
 0x31b   :  { %v1389_v22 = vsel %vm854_vm12, %v1371_v51, %v7928_v40  ;;  %v1391_v55 = vsel %vm854_vm12, %v7929_v49, %v1371_v51  ;;  %v1255_v31 = vadd.f32 %v7930_v24, %v1127_v50  ;;  %v1468_v46 = vmul.f32 %v7933_v52, %v1452_v9  ;;  %v7935_v51 = vld [vmem:[#allocation74_spill] sm:$0xff] }
 0x31c   :  { %v1396_v36 = vmul.f32 %v7870_v6, %v1389_v22  ;;  %v1399_v53 = vmul.f32 %v7872_v17, %v1391_v55  ;;  %v1504_v2 = vadd.f32 %v7931_v25, %v1488_v34  ;;  %v1507_v19 = vadd.f32 %v7931_v25, %v1491_v37  ;;  %v1711_v22 = vpop.permute.xlu0 %1710 }
 0x31d   :  { %v1308_v60 = vadd.f32 %v1300_v42, %v6760_v13  ;;  %v1311_v30 = vadd.f32 %v1303_v33, %v1175_v43  ;;  %v1471_v50 = vmul.f32 %v7933_v52, %v1455_v63  ;;  %v6848_v34 = vmul.f32 %v7853_v44, %v1550_v59  ;;  %v7936_v63 = vld [vmem:[#allocation19_spill] sm:$0xff] }
 0x31e   :  { %v1412_v57 = vmul.f32 %v7932_v27, %v1396_v36  ;;  %v1415_v32 = vmul.f32 %v7932_v27, %v1399_v53  ;;  %v1520_v56 = vpop.permute.xlu1 %1519  ;;  %3469 = vmatmul.mubr.f32.vlgmr.msra.gmra.mrb[0].mxu1 %v1504_v2  ;;  %3551 = vmatmul.mubr.f32.vlgmr.msra.gmra.mrb[0].mxu0 %v1507_v19  ;;  %v1561_v37 = vmul.f32 %v7853_v44, %v1553_v20  ;;  %v7938_v59 = vld [vmem:[#allocation47_spill] sm:$0xff]  ;;  %v7941_v19 = vld [vmem:[#allocation116_spill] sm:$0xff]  ;;  %v7943_v27 = vld [vmem:[#allocation117_spill] sm:$0xff] }
 0x31f   :  { %3471 = vmatprep.mubr.msk.f32.mxu1 %vm7832_vm0, %v7706_v61  ;;  %v1574_v35 = vmul.f32 %v7907_v28, %v1573_v1  ;;  %3553 = vmatprep.mubr.msk.f32.mxu0 %vm7832_vm0, %v7706_v61  ;;  %v1476_v9 = vadd.f32 %v1468_v46, %v1308_v60  ;;  %v1479_v42 = vadd.f32 %v1471_v50, %v1311_v30  ;;  %v7937_v28 = vld [vmem:[#allocation52_spill] sm:$0xff] }
 0x320   :  { %v1420_v13 = vadd.f32 %v1412_v57, %v1252_v5  ;;  %v1423_v43 = vadd.f32 %v1415_v32, %v1255_v31  ;;  %3693 = vmatpush3.bf16.msra.mxu1 %v7934_v16  ;;  %v1521_v44 = vsel %vm512_vm10, %v7935_v51, %v1520_v56  ;;  %v1524_v41 = vsel %vm512_vm10, %v1520_v56, %v7936_v63  ;;  %v7939_v5 = vld [vmem:[#allocation95_spill] sm:$0xff]  ;;  %v7940_v31 = vld [vmem:[#allocation28_spill] sm:$0xff]  ;;  %v7944_v32 = vld [vmem:[#allocation118_spill] sm:$0xff] }
 0x321   :  { %3695 = vmatprep.subr.bf16.mxu1 %v6568_v48  ;;  %v1577_v36 = vmul.f32 %v7908_v7, %v1570_v39  ;;  %v1582_v53 = vmul.f32 %v7871_v45, %v1574_v35  ;;  %v1664_v24 = vsel %vm797_vm15, %v1655_v38, %v7939_v5  ;;  %v1665_v25 = vsel %vm797_vm15, %v7940_v31, %v1655_v38  ;;  %v7942_v30 = vld [vmem:[#allocation108_spill] sm:$0xff]  ;;  %v7948_v35 = vld [vmem:[#allocation93_spill] sm:$0xff] }
 0x322   :  { %v1593_v47 = vpop.permute.xlu1 %1592  ;;  %v1484_v18 = vadd.f32 %v1420_v13, %v1364_v21  ;;  %v1487_v33 = vadd.f32 %v1423_v43, %v1367_v14  ;;  %v1720_v57 = vsel %vm911_vm6, %v1711_v22, %v7943_v27  ;;  %v1721_v38 = vsel %vm911_vm6, %v7944_v32, %v1711_v22  ;;  %v7947_v21 = vld [vmem:[#allocation32_spill] sm:$0xff]  ;;  %v7955_v22 = vld [vmem:[#allocation110_spill] sm:$0xff]  ;;  %v7959_v32 = vld [vmem:[#allocation35_spill] sm:$0xff] }
 0x323   :  { %v1594_v11 = vsel %vm659_vm4, %v7937_v28, %v1593_v47  ;;  %v1597_v40 = vsel %vm659_vm4, %v1593_v47, %v7938_v59  ;;  %v1585_v13 = vmul.f32 %v7871_v45, %v1577_v36  ;;  %v1666_v43 = vmul.f32 %v7905_v58, %v1664_v24  ;;  %v7954_v59 = vld [vmem:[#allocation57_spill] sm:$0xff]  ;;  %v7958_v27 = vld [vmem:[#allocation36_spill] sm:$0xff] }
 0x324   :  { %v1598_v49 = vmul.f32 %v7885_v4, %v1597_v40  ;;  %v1601_v55 = vmul.f32 %v7890_v0, %v1594_v11  ;;  %v1492_v20 = vadd.f32 %v1484_v18, %v1476_v9  ;;  %v1495_v1 = vadd.f32 %v1487_v33, %v1479_v42  ;;  %3697 = vmatpush3.bf16.msra.mxu1 %v6568_v48  ;;  %v7945_v48 = vld [vmem:[#allocation115_spill] sm:$0xff]  ;;  %v7949_v9 = vld [vmem:[#allocation100_spill] sm:$0xff]  ;;  %v7952_v11 = vld [vmem:[#allocation106_spill] sm:$0xff] }
 0x325   :  { %v1525_v4 = vmul.f32 %v7882_v29, %v1524_v41  ;;  %v1528_v0 = vmul.f32 %v7883_v12, %v1521_v44  ;;  %3699 = vmatprep.subr.bf16.mxu1 %v7942_v30  ;;  %v7946_v12 = vld [vmem:[#allocation86_spill] sm:$0xff]  ;;  %v1669_v39 = vmul.f32 %v7906_v26, %v1665_v25  ;;  %v1722_v45 = vmul.f32 %v7920_v3, %v1720_v57  ;;  %v7951_v33 = vld [vmem:[#allocation51_spill] sm:$0xff]  ;;  %v7953_v3 = vld [vmem:[#allocation65_spill] sm:$0xff] }
 0x326   :  { %v1627_v2 = vpop.permute.xlu1 %1626  ;;  %v1508_v60 = vadd.f32 %v7941_v19, %v1492_v20  ;;  %v1511_v7 = vadd.f32 %v7941_v19, %v1495_v1  ;;  %v1606_v14 = vmul.f32 %v7947_v21, %v1598_v49  ;;  %v1609_v52 = vmul.f32 %v7947_v21, %v1601_v55  ;;  %v7950_v26 = vld [vmem:[#allocation42_spill] sm:$0xff]  ;;  %v7960_v21 = vld [vmem:[#allocation24_spill] sm:$0xff] }
 0x327   :  { %v1636_v29 = vsel %vm740_vm13, %v1627_v2, %v7945_v48  ;;  %v1637_v56 = vsel %vm740_vm13, %v7946_v12, %v1627_v2  ;;  %v1534_v16 = vmul.f32 %v7948_v35, %v1525_v4  ;;  %v1537_v47 = vmul.f32 %v7948_v35, %v1528_v0  ;;  %v7957_v4 = vld [vmem:[#allocation109_spill] sm:$0xff] }
 0x328   :  { %v1638_v46 = vmul.f32 %v7875_v54, %v1636_v29  ;;  %v1641_v50 = vmul.f32 %v7876_v62, %v1637_v56  ;;  %3472 = vmatmul.mubr.f32.gmra.mrb[2].mxu1 %v1508_v60  ;;  %3554 = vmatmul.mubr.f32.gmra.mrb[2].mxu0 %v1511_v7  ;;  %v1725_v58 = vmul.f32 %v7921_v15, %v1721_v38  ;;  %v2353_v57 = vshra.s32 %v7958_v27, 6 }
 0x329   :  { %3474 = vmatprep.mubr.msk.f32.mxu1 %vm7832_vm0, %v7706_v61  ;;  %3556 = vmatprep.mubr.msk.f32.mxu0 %vm7832_vm0, %v7706_v61  ;;  %v1610_v44 = vadd.f32 %v1606_v14, %v1534_v16  ;;  %v1613_v63 = vadd.f32 %v1609_v52, %v1537_v47  ;;  %v1622_v15 = vadd.f32 %v7953_v3, %v6848_v34  ;;  %v2354_v38 = vshra.s32 %v7959_v32, 6  ;;  %v7961_v52 = vld [vmem:[#allocation25_spill] sm:$0xff] }
 0x32a   :  { %v1646_v18 = vmul.f32 %v7949_v9, %v1638_v46  ;;  %v1649_v54 = vmul.f32 %v7949_v9, %v1641_v50  ;;  %v1683_v62 = vpop.permute.xlu1 %1682  ;;  %3701 = vmatpush3.bf16.msra.mxu1 %v7942_v30  ;;  %v1625_v40 = vadd.f32 %v7954_v59, %v1561_v37  ;;  %v1674_v49 = vmul.f32 %v7955_v22, %v1666_v43  ;;  %v7962_v46 = vld [vmem:[#allocation27_spill] sm:$0xff] }
 0x32b   :  { %v1692_v42 = vsel %vm854_vm12, %v1683_v62, %v7950_v26  ;;  %v1693_v51 = vsel %vm854_vm12, %v7951_v33, %v1683_v62  ;;  %3703 = vmatprep.subr.bf16.mxu1 %v7952_v11  ;;  %v1677_v55 = vmul.f32 %v7955_v22, %v1669_v39  ;;  %vm2369_vm10 = vcmp.eq.s32.totalorder %v2353_v57, %v4673_v23 }
 0x32c   :  { %v1694_v41 = vmul.f32 %v7870_v6, %v1692_v42  ;;  %v1697_v28 = vmul.f32 %v7872_v17, %v1693_v51  ;;  %v1650_v20 = vadd.f32 %v1646_v18, %v1582_v53  ;;  %v1653_v1 = vadd.f32 %v1649_v54, %v1585_v13  ;;  %v7956_v6 = vld [vmem:[#allocation111_spill] sm:$0xff]  ;;  %v7963_v13 = vld [vmem:[#allocation73_spill] sm:$0xff]  ;;  %v2498_v42 = vld [vmem:[%s7128_s1] sm:$0xf] }
 0x32d   :  { %v1730_v24 = vmul.f32 %v7956_v6, %v1722_v45  ;;  %v1733_v17 = vmul.f32 %v7956_v6, %v1725_v58  ;;  %v1678_v25 = vadd.f32 %v1674_v49, %v1610_v44  ;;  %v1681_v37 = vadd.f32 %v1677_v55, %v1613_v63 }
 0x32e   :  { %v1702_v36 = vmul.f32 %v7886_v8, %v1694_v41  ;;  %v1705_v5 = vmul.f32 %v7886_v8, %v1697_v28  ;;  %3705 = vmatpush3.bf16.msra.mxu1 %v7952_v11  ;;  %vm2370_vm14 = vcmp.eq.s32.totalorder %v2354_v38, %v4673_v23  ;;  %v3295_v48 = vsel %vm2369_vm10, 1.0, %v7706_v61 }
 0x32f   :  { %3707 = vmatprep.subr.bf16.mxu1 %v7957_v4  ;;  %v1734_v0 = vadd.f32 %v1730_v24, %v1650_v20  ;;  %v1737_v53 = vadd.f32 %v1733_v17, %v1653_v1  ;;  %v3296_v29 = vsel %vm2370_vm14, 1.0, %v7706_v61  ;;  %v2417_v12 = vmul.f32 0.015625, %v3295_v48  ;;  %v6966_v20 = vld [vmem:[%s7128_s1] sm:$0xff] }
 0x330   :  { %v1706_v31 = vadd.f32 %v1702_v36, %v1622_v15  ;;  %v1709_v34 = vadd.f32 %v1705_v5, %v1625_v40  ;;  %v2418_v56 = vmul.f32 0.015625, %v3296_v29  ;;  %v2355_v14 = vshra.s32 %v7960_v21, 6  ;;  %v3997_v5 = vld [vmem:[%s7128_s1 + $0x8] sm:$0xff]  ;;  %s4109_s1 = smov 7  }
 0x331   :  { %v2357_v50 = vshra.s32 %v7962_v46, 6  ;;  %v2358_v43 = vshra.s32 %v7963_v13, 6  ;;  %v4051_v33 = vmov 31   ;;  %v4052_v51 = vmov 32  }
 0x332   :  { %v1738_v2 = vadd.f32 %v1706_v31, %v1678_v25  ;;  %v1741_v19 = vadd.f32 %v1709_v34, %v1681_v37  ;;  %3709 = vmatpush3.bf16.msra.mxu1 %v7957_v4  ;;  %v3710_v39 = vpack.c.bf16 %v2418_v56, %v2417_v12  ;;  %vm2371_vm4 = vcmp.eq.s32.totalorder %v2355_v14, %v4673_v23 }
 0x333   :  { %v3297_v35 = vsel %vm2371_vm4, 1.0, %v7706_v61  ;;  %vm2373_vm13 = vcmp.eq.s32.totalorder %v2357_v50, %v4673_v23  ;;  %vm2374_vm15 = vcmp.eq.s32.totalorder %v2358_v43, %v4673_v23  ;;  %3922 = vset.pattern.permute.xlu1 %v4051_v33  ;;  %3923 = vset.pattern.permute.xlu0 %v4052_v51  ;;  %v4053_v44 = vmov 33  }
 0x334   :  { %v1742_v60 = vadd.f32 %v1738_v2, %v1734_v0  ;;  %v1745_v8 = vadd.f32 %v1741_v19, %v1737_v53  ;;  %3711 = vmatprep.subr.bf16.mxu1 %v3710_v39  ;;  %v2419_v47 = vmul.f32 0.015625, %v3297_v35  ;;  %v3299_v18 = vsel %vm2373_vm13, 1.0, %v7706_v61  ;;  %2501 = vperm.xlu1 %3922, %v2498_v42  }
 0x335   :  { %v3300_v54 = vsel %vm2374_vm15, 1.0, %v7706_v61  ;;  %v2421_v62 = vmul.f32 0.015625, %v3299_v18  ;;  %2510 = vperm.xlu0 %3923, %v2498_v42   ;;  %v4054_v63 = vmov 35   ;;  %v4055_v41 = vmov 34  }
 0x336   :  { %v1750_v7 = vadd.f32 %v6731_v10, %v1742_v60  ;;  %v1753_v30 = vadd.f32 %v6731_v10, %v1745_v8  ;;  %v2356_v10 = vshra.s32 %v7961_v52, 6  ;;  %3713 = vmatpush3.bf16.msra.mxu1 %v3710_v39  ;;  %v2422_v45 = vmul.f32 0.015625, %v3300_v54 }
 0x337   :  { %v4056_v28 = vmov 38   ;;  %v4057_v11 = vmov 36   ;;  %v4058_v3 = vmov 41   ;;  %v4059_v15 = vmov 37  }
 0x338   :  { %3475 = vmatmul.mubr.f32.gmra.mrb[4].mxu1 %v1750_v7  ;;  %3557 = vmatmul.mubr.f32.gmra.mrb[4].mxu0 %v1753_v30  ;;  %vm2372_vm2 = vcmp.eq.s32.totalorder %v2356_v10, %v4673_v23  ;;  %v3718_v26 = vpack.c.bf16 %v2422_v45, %v2421_v62  ;;  %v4060_v59 = vmov 44   ;;  %v4061_v40 = vmov 39  }
 0x339   :  { %v3298_v16 = vsel %vm2372_vm2, 1.0, %v7706_v61  ;;  %3924 = vset.pattern.permute.xlu1 %v4053_v44  ;;  %3926 = vset.pattern.permute.xlu0 %v4054_v63  ;;  %v4062_v22 = vmov 47   ;;  %v4063_v49 = vmov 40   ;;  %v4064_v55 = vmov 50  }
 0x33a   :  { %v2420_v9 = vmul.f32 0.015625, %v3298_v16  ;;  %2519 = vperm.xlu1 %3924, %v2498_v42   ;;  %2537 = vperm.xlu0 %3926, %v2498_v42   ;;  %v4065_v1 = vmov 42   ;;  %v4066_v36 = vmov 49   ;;  %v4067_v6 = vmov 43  }
 0x33b   :  { %v4068_v24 = vmov 52   ;;  %v4069_v17 = vmov 45   ;;  %v4070_v31 = vmov 46   ;;  %v4071_v34 = vmov 48  }
 0x33c   :  { %v3714_v58 = vpack.c.bf16 %v2420_v9, %v2419_v47  ;;  %v4072_v25 = vmov 51   ;;  %v4073_v37 = vmov 54   ;;  %v4074_v12 = vmov 55  }
 0x33d   :  { %v4075_v56 = vmov 53   ;;  %v4076_v21 = vmov 57   ;;  %v4077_v14 = vmov 58   ;;  %v4078_v52 = vmov 56  }
 0x33e   :  { %3715 = vmatprep.subr.bf16.mxu1 %v3714_v58  ;;  %3925 = vset.pattern.permute.xlu1 %v4055_v41  ;;  %v4079_v10 = vmov 60   ;;  %v4080_v46 = vmov 59   ;;  %v4081_v50 = vmov 61   ;;  %v4082_v13 = vmov 62  }
 0x33f   :  { %3717 = vmatpush3.bf16.msra.mxu1 %v3714_v58  ;;  %2528 = vperm.xlu1 %3925, %v2498_v42   ;;  %v4083_v43 = vmov 63   ;;  %v4084_v39 = vmov 65   ;;  %v4085_v35 = vmov 64   ;;  %v7964_v16 = vmov 0  }
 0x340   :  { %3719 = vmatprep.subr.bf16.mxu1 %v3718_v26  ;;  %3929 = vset.pattern.permute.xlu0 %v4056_v28 }
 0x341   :  { %2567 = vperm.xlu0 %3929, %v2498_v42  }
 0x343   :  { %3721 = vmatpush3.bf16.msra.mxu1 %v3718_v26  ;;  %3927 = vset.pattern.permute.xlu1 %v4057_v11 }
 0x344   :  { %2547 = vperm.xlu1 %3927, %v2498_v42  }
 0x345   :  { %3932 = vset.pattern.permute.xlu0 %v4058_v3 }
 0x346   :  { %2597 = vperm.xlu0 %3932, %v2498_v42  }
 0x348   :  { %3928 = vset.pattern.permute.xlu1 %v4059_v15 }
 0x349   :  { %2557 = vperm.xlu1 %3928, %v2498_v42  }
 0x34a   :  { %3935 = vset.pattern.permute.xlu0 %v4060_v59 }
 0x34b   :  { %2627 = vperm.xlu0 %3935, %v2498_v42  }
 0x34d   :  { %3930 = vset.pattern.permute.xlu1 %v4061_v40 }
 0x34e   :  { %2577 = vperm.xlu1 %3930, %v2498_v42  }
 0x34f   :  { %3938 = vset.pattern.permute.xlu0 %v4062_v22  ;;  %v7965_v22 = vld [vmem:[#allocation5_spill] sm:$0xff] }
 0x350   :  { %2660 = vperm.xlu0 %3938, %v2498_v42  }
 0x352   :  { %3931 = vset.pattern.permute.xlu1 %v4063_v49 }
 0x353   :  { %2587 = vperm.xlu1 %3931, %v2498_v42  }
 0x354   :  { %3941 = vset.pattern.permute.xlu0 %v4064_v55 }
 0x355   :  { %2694 = vperm.xlu0 %3941, %v6966_v20  }
 0x357   :  { %3933 = vset.pattern.permute.xlu1 %v4065_v1 }
 0x358   :  { %2607 = vperm.xlu1 %3933, %v2498_v42  }
 0x359   :  { %3944 = vset.pattern.permute.xlu0 %v4066_v36 }
 0x35a   :  { %2684 = vperm.xlu0 %3944, %v3997_v5  }
 0x35c   :  { %3934 = vset.pattern.permute.xlu1 %v4067_v6  ;;  %v7968_v6 = vld [vmem:[#allocation7_spill] sm:$0xff] }
 0x35d   :  { %2617 = vperm.xlu1 %3934, %v2498_v42  }
 0x35e   :  { %3947 = vset.pattern.permute.xlu0 %v4068_v24 }
 0x35f   :  { %2728 = vperm.xlu0 %3947, %v6966_v20  }
 0x361   :  { %3936 = vset.pattern.permute.xlu1 %v4069_v17 }
 0x362   :  { %2637 = vperm.xlu1 %3936, %v2498_v42  }
 0x363   :  { %3949 = vset.pattern.permute.xlu0 %v4075_v56 }
 0x364   :  { %2771 = vperm.xlu0 %3949, %v6966_v20  }
 0x366   :  { %3937 = vset.pattern.permute.xlu1 %v4070_v31 }
 0x367   :  { %2647 = vperm.xlu1 %3937, %v2498_v42  }
 0x368   :  { %3952 = vset.pattern.permute.xlu0 %v4078_v52 }
 0x369   :  { %2798 = vperm.xlu0 %3952, %v6966_v20  }
 0x36b   :  { %3939 = vset.pattern.permute.xlu1 %v4071_v34 }
 0x36c   :  { %2666 = vperm.xlu1 %3939, %v6966_v20  }
 0x36d   :  { %3955 = vset.pattern.permute.xlu0 %v4080_v46 }
 0x36e   :  { %2827 = vperm.xlu0 %3955, %v6966_v20  }
 0x370   :  { %3940 = vset.pattern.permute.xlu1 %v4066_v36  ;;  %v7967_v36 = vld [vmem:[#allocation6_spill] sm:$0xff] }
 0x371   :  { %2680 = vperm.xlu1 %3940, %v6966_v20  }
 0x372   :  { %3958 = vset.pattern.permute.xlu0 %v4082_v13 }
 0x373   :  { %2857 = vperm.xlu0 %3958, %v6966_v20  }
 0x375   :  { %3942 = vset.pattern.permute.xlu1 %v4072_v25 }
 0x376   :  { %2708 = vperm.xlu1 %3942, %v6966_v20  }
 0x377   :  { %3961 = vset.pattern.permute.xlu0 %v4084_v39 }
 0x378   :  { %2887 = vperm.xlu0 %3961, %v6966_v20  }
 0x37a   :  { %3943 = vset.pattern.permute.xlu1 %v4071_v34 }
 0x37b   :  { %2670 = vperm.xlu1 %3943, %v3997_v5  }
 0x37c   :  { %3963 = vset.pattern.permute.xlu0 %v7964_v16 }
 0x37f   :  { %3945 = vset.pattern.permute.xlu1 %v4064_v55  ;;  %v7966_v55 = vld [vmem:[#allocation17_spill] sm:$0xff] }
 0x380   :  { %2698 = vperm.xlu1 %3945, %v3997_v5  }
 0x384   :  { %3946 = vset.pattern.permute.xlu1 %v4072_v25 }
 0x385   :  { %2712 = vperm.xlu1 %3946, %v3997_v5  }
 0x389   :  { %3948 = vset.pattern.permute.xlu1 %v4068_v24 }
 0x38a   :  { %2732 = vperm.xlu1 %3948, %v3997_v5  }
 0x38e   :  { %3950 = vset.pattern.permute.xlu1 %v4073_v37 }
 0x38f   :  { %2780 = vperm.xlu1 %3950, %v6966_v20  }
 0x393   :  { %3951 = vset.pattern.permute.xlu1 %v4074_v12  ;;  %v7971_v12 = vld [vmem:[#allocation14_spill] sm:$0xff] }
 0x394   :  { %2789 = vperm.xlu1 %3951, %v6966_v20  }
 0x398   :  { %3953 = vset.pattern.permute.xlu1 %v4076_v21  ;;  %v7972_v21 = vld [vmem:[#allocation18_spill] sm:$0xff] }
 0x399   :  { %2807 = vperm.xlu1 %3953, %v6966_v20  }
 0x39d   :  { %3954 = vset.pattern.permute.xlu1 %v4077_v14 }
 0x39e   :  { %2817 = vperm.xlu1 %3954, %v6966_v20  }
 0x3a2   :  { %3956 = vset.pattern.permute.xlu1 %v4079_v10 }
 0x3a3   :  { %2837 = vperm.xlu1 %3956, %v6966_v20  }
 0x3a7   :  { %3957 = vset.pattern.permute.xlu1 %v4081_v50 }
 0x3a8   :  { %2847 = vperm.xlu1 %3957, %v6966_v20  }
 0x3ac   :  { %3959 = vset.pattern.permute.xlu1 %v4083_v43 }
 0x3ad   :  { %2867 = vperm.xlu1 %3959, %v6966_v20  }
 0x3b1   :  { %3960 = vset.pattern.permute.xlu1 %v4085_v35 }
 0x3b2   :  { %2877 = vperm.xlu1 %3960, %v6966_v20  }
 0x3b3   :  { %v2502_v47 = vpop.permute.xlu1 %2501 }
 0x3b4   :  { %v2511_v33 = vpop.permute.xlu0 %2510 }
 0x3b6   :  { %3962 = vset.pattern.permute.xlu1 %v7964_v16 }
 0x3b9   :  { %v2520_v9 = vpop.permute.xlu1 %2519  ;;  %v2538_v44 = vpop.permute.xlu0 %2537 }
 0x3be   :  { %v2529_v18 = vpop.permute.xlu1 %2528 }
 0x3c0   :  { %v2568_v41 = vpop.permute.xlu0 %2567 }
 0x3c3   :  { %v2548_v54 = vpop.permute.xlu1 %2547 }
 0x3c5   :  { %v2598_v11 = vpop.permute.xlu0 %2597 }
 0x3c8   :  { %v2558_v62 = vpop.permute.xlu1 %2557 }
 0x3ca   :  { %v2628_v59 = vpop.permute.xlu0 %2627 }
 0x3cd   :  { %v2578_v45 = vpop.permute.xlu1 %2577 }
 0x3d2   :  { %v2588_v58 = vpop.permute.xlu1 %2587 }
 0x3d7   :  { %v2608_v26 = vpop.permute.xlu1 %2607 }
 0x3dc   :  { %v2618_v42 = vpop.permute.xlu1 %2617 }
 0x3e1   :  { %v2638_v51 = vpop.permute.xlu1 %2637 }
 0x3e6   :  { %v2648_v63 = vpop.permute.xlu1 %2647 }
 0x3eb   :  { %v6999_v28 = vpop.permute.xlu1 %2666 }
 0x3f0   :  { %v7001_v3 = vpop.permute.xlu1 %2680 }
 0x3f1   :  { %v2035_v4 = vpop.f32.mrb[0].mxu1  ;;  %v2326_v0 = vpop.f32.mrb[0].mxu0 }
 0x3f2   :  { %v6977_v2 = vadd.f32 %v2326_v0, %v2035_v4  ;;  %v3470_v53 = vpop.f32.mrb[1].mxu1  ;;  %v3552_v19 = vpop.f32.mrb[1].mxu0  ;;  %v7969_v0 = vld [vmem:[#allocation11_spill] sm:$0xff] }
 0x3f3   :  { %v7970_v19 = vld [vmem:[#allocation10_spill] sm:$0xff] }
 0x3f4   :  { %3591 = vmatprep.mubr.f32.mxu1 %v6977_v2 }
 0x3fb   :  { %v2040_v60 = vpop.f32.mrb[2].mxu1  ;;  %v2331_v8 = vpop.f32.mrb[2].mxu0 }
 0x3fc   :  { %v3473_v7 = vpop.f32.mrb[3].mxu1  ;;  %v6980_v30 = vadd.f32 %v2331_v8, %v2040_v60  ;;  %v3555_v27 = vpop.f32.mrb[3].mxu0 }
 0x3fe   :  { %3592 = vmatmul.mubr.f32.vlgmr.msra.gmra.mrb[6].mxu1 %v6980_v30 }
 0x40b   :  { %v2045_v57 = vpop.f32.mrb[4].mxu1  ;;  %v2336_v32 = vpop.f32.mrb[4].mxu0 }
 0x40c   :  { %v6983_v38 = vadd.f32 %v2336_v32, %v2045_v57  ;;  %v3476_v48 = vpop.f32.mrb[5].mxu1  ;;  %v3558_v29 = vpop.f32.mrb[5].mxu0 }
 0x40d   :  { %v2709_v32 = vpop.permute.xlu1 %2708 }
 0x4d1   :  { %v3593_v15 = vpop.f32.mrb[6].mxu1 }
 0x4d2   :  { %v2489_v40 = vpop.f32.mrb[7].mxu1  ;;  %v2593_v49 = vrot.slane %v3593_v15, %v7965_v22  ;;  %v2633_v1 = vrot.slane %v3593_v15, %v7966_v55  ;;  %v2583_v5 = vrot.slane %v3593_v15, %v7967_v36  ;;  %v2603_v24 = vrot.slane %v3593_v15, %v7968_v6 }
 0x4d3   :  { %v2516_v17 = vrot.slane %v2489_v40, %v7965_v22  ;;  %v2553_v31 = vrot.slane %v2489_v40, %v7966_v55  ;;  %v2507_v34 = vrot.slane %v2489_v40, %v7967_v36  ;;  %v2525_v25 = vrot.slane %v2489_v40, %v7968_v6 }
 0x4d4   :  { %v2594_v37 = vmul.f32 %v2593_v49, %v2588_v58  ;;  %v2634_v4 = vmul.f32 %v2633_v1, %v2628_v59  ;;  %v2534_v53 = vrot.slane %v2489_v40, %v7969_v0  ;;  %v2543_v60 = vrot.slane %v2489_v40, %v7970_v19 }
 0x4d5   :  { %v2517_v8 = vmul.f32 %v2516_v17, %v2511_v33  ;;  %v2554_v7 = vmul.f32 %v2553_v31, %v2548_v54  ;;  %v2508_v27 = vmul.f32 %v2507_v34, %v2502_v47  ;;  %v2526_v57 = vmul.f32 %v2525_v25, %v2520_v9 }
 0x4d6   :  { %v2535_v48 = vmul.f32 %v2534_v53, %v2529_v18  ;;  %v2544_v29 = vmul.f32 %v2543_v60, %v2538_v44  ;;  %v2563_v56 = vrot.slane %v2489_v40, %v7971_v12  ;;  %v2573_v14 = vrot.slane %v2489_v40, %v7972_v21 }
 0x4d7   :  { %v2555_v52 = vadd.f32 %v2554_v7, %v2517_v8  ;;  %v2584_v10 = vmul.f32 %v2583_v5, %v2578_v45  ;;  %v2604_v46 = vmul.f32 %v2603_v24, %v2598_v11  ;;  %v2613_v50 = vrot.slane %v3593_v15, %v7969_v0  ;;  %v2661_v11 = vpop.permute.xlu0 %2660 }
 0x4d8   :  { %v2545_v13 = vadd.f32 %v2544_v29, %v2508_v27  ;;  %v2564_v43 = vmul.f32 %v2563_v56, %v2558_v62  ;;  %v2574_v39 = vmul.f32 %v2573_v14, %v2568_v41  ;;  %v2623_v35 = vrot.slane %v3593_v15, %v7970_v19  ;;  %v2671_v41 = vpop.permute.xlu1 %2670 }
 0x4d9   :  { %v2595_v16 = vadd.f32 %v2594_v37, %v2555_v52  ;;  %v2614_v47 = vmul.f32 %v2613_v50, %v2608_v26  ;;  %v2643_v9 = vrot.slane %v3593_v15, %v7971_v12  ;;  %v2653_v18 = vrot.slane %v3593_v15, %v7972_v21 }
 0x4da   :  { %v2565_v54 = vadd.f32 %v2564_v43, %v2526_v57  ;;  %v2575_v58 = vadd.f32 %v2574_v39, %v2535_v48  ;;  %v2585_v33 = vadd.f32 %v2584_v10, %v2545_v13  ;;  %v2624_v44 = vmul.f32 %v2623_v35, %v2618_v42 }
 0x4db   :  { %v2635_v59 = vadd.f32 %v2634_v4, %v2595_v16  ;;  %v2644_v45 = vmul.f32 %v2643_v9, %v2638_v51  ;;  %v2654_v62 = vmul.f32 %v2653_v18, %v2648_v63  ;;  %v2695_v34 = vpop.permute.xlu0 %2694 }
 0x4dc   :  { %v2605_v40 = vadd.f32 %v2604_v46, %v2565_v54  ;;  %v2615_v49 = vadd.f32 %v2614_v47, %v2575_v58  ;;  %v2625_v1 = vadd.f32 %v2624_v44, %v2585_v33  ;;  %v2699_v25 = vpop.permute.xlu1 %2698  ;;  %v7973_v44 = vmov 1  }
 0x4de   :  { %v2645_v5 = vadd.f32 %v2644_v45, %v2605_v40  ;;  %v2655_v24 = vadd.f32 %v2654_v62, %v2615_v49  ;;  %v2656_v17 = vadd.f32 %v2635_v59, %v2625_v1  ;;  %v4086_v59 = vmov 68  }
 0x4df   :  { %v2685_v4 = vpop.permute.xlu0 %2684  ;;  %v4087_v45 = vmov 70   ;;  %v4089_v40 = vmov 73   ;;  %v4090_v49 = vmov 67   ;;  %v4091_v1 = vmov 76  }
 0x4e0   :  { %v2657_v26 = vadd.f32 %v2655_v24, %v2645_v5  ;;  %v2713_v63 = vpop.permute.xlu1 %2712  ;;  %v4092_v62 = vmov 69   ;;  %v4094_v5 = vmov 71   ;;  %v4095_v24 = vmov 96  }
 0x4e2   :  { %v2658_v31 = vadd.f32 %v2657_v26, %v2656_v17  ;;  %v4096_v17 = vmov 72   ;;  %v4097_v26 = vmov 99  }
 0x4e3   :  { %v2729_v13 = vpop.permute.xlu0 %2728 }
 0x4e4   :  { %v2663_v15 = vadd.f32 %v2661_v11, %v2658_v31  ;;  %v2733_v43 = vpop.permute.xlu1 %2732  ;;  %v4088_v11 = vmov 66   ;;  %v4098_v31 = vmov 74  }
 0x4e6   :  { %v2664_v37 = vmax.f32 %v2663_v15, 0.0  ;;  %v4101_v15 = vmov 77  }
 0x4e8   :  { %v2676_v53 = vrot.slane %v2664_v37, %v7967_v36  ;;  %v2704_v42 = vrot.slane %v2664_v37, %v7968_v6  ;;  %v2718_v51 = vrot.slane %v2664_v37, %v7969_v0  ;;  %v2690_v60 = vrot.slane %v2664_v37, %v7965_v22 }
 0x4e9   :  { %v4102_v37 = vmov 78  }
 0x4ea   :  { %v2677_v8 = vmul.f32 %v2676_v53, %v6999_v28  ;;  %v2678_v7 = vmul.f32 %v2676_v53, %v2671_v41  ;;  %v2705_v27 = vmul.f32 %v2704_v42, %v2695_v34  ;;  %v2719_v57 = vmul.f32 %v2718_v51, %v2709_v32 }
 0x4eb   :  { %v2706_v48 = vmul.f32 %v2704_v42, %v2699_v25  ;;  %v2691_v29 = vmul.f32 %v2690_v60, %v7001_v3  ;;  %v2692_v56 = vmul.f32 %v2690_v60, %v2685_v4  ;;  %v2720_v14 = vmul.f32 %v2718_v51, %v2713_v63  ;;  %v2781_v63 = vpop.permute.xlu1 %2780 }
 0x4ec   :  { %v2723_v52 = vadd.f32 %v2719_v57, %v2705_v27  ;;  %v4093_v41 = vmov 93   ;;  %v4099_v34 = vmov 79   ;;  %v4100_v25 = vmov 75  }
 0x4ed   :  { %v2722_v10 = vadd.f32 %v2692_v56, %v2678_v7  ;;  %v2724_v46 = vadd.f32 %v2720_v14, %v2706_v48  ;;  %v2721_v50 = vadd.f32 %v2691_v29, %v2677_v8  ;;  %v4103_v53 = vmov 92   ;;  %v2772_v29 = vpop.permute.xlu0 %2771 }
 0x4ee   :  { %v4104_v42 = vmov 94   ;;  %v4105_v51 = vmov 95   ;;  %v4106_v4 = vmov 97   ;;  %v4107_v60 = vmov 98  }
 0x4ef   :  { %v2725_v39 = vadd.f32 %v2723_v52, %v2721_v50  ;;  %v2726_v35 = vadd.f32 %v2724_v46, %v2722_v10  ;;  %v4108_v8 = vmov 80   ;;  %v2790_v7 = vpop.permute.xlu1 %2789 }
 0x4f1   :  { %v2735_v16 = vadd.f32 %v2729_v13, %v2725_v39  ;;  %v2736_v47 = vadd.f32 %v2733_v43, %v2726_v35  ;;  %v2799_v14 = vpop.permute.xlu0 %2798  ;;  %v7974_v39 = vshra.s32 %v4673_v23, 6 }
 0x4f3   :  { %v2737_v9 = vadd.f32 3.0, %v2735_v16  ;;  %v2738_v28 = vadd.f32 3.0, %v2736_v47  ;;  %v2808_v27 = vpop.permute.xlu1 %2807  ;;  %vm2745_vm12 = vcmp.eq.s32.totalorder %v7974_v39, 0 }
 0x4f5   :  { %v2739_v18 = vmax.f32 %v2737_v9, 0.0  ;;  %v2740_v54 = vmax.f32 %v2738_v28, 0.0  ;;  %v2828_v10 = vpop.permute.xlu0 %2827 }
 0x4f7   :  { %v2741_v32 = vmin.f32 %v2739_v18, 6.0  ;;  %v2742_v58 = vmin.f32 %v2740_v54, 6.0  ;;  %v2818_v57 = vpop.permute.xlu1 %2817 }
 0x4f9   :  { %v2743_v33 = vmul.f32 0.16666667, %v2741_v32  ;;  %v2744_v3 = vmul.f32 0.16666667, %v2742_v58  ;;  %v2858_v50 = vpop.permute.xlu0 %2857 }
 0x4fb   :  { %2750 = vperm.xlu1 %3962, %v2743_v33   ;;  %2755 = vperm.xlu0 %3963, %v2744_v3   ;;  %v2838_v48 = vpop.permute.xlu1 %2837 }
 0x4fd   :  { %v2888_v43 = vpop.permute.xlu0 %2887 }
 0x4ff   :  { %3964 = vset.pattern.permute.xlu1 %v7973_v44  ;;  %3967 = vset.pattern.permute.xlu0 %v4086_v59  ;;  %v2848_v56 = vpop.permute.xlu1 %2847 }
 0x500   :  { %2759 = vperm.xlu1 %3964, %v2743_v33   ;;  %2917 = vperm.xlu0 %3967, %v6966_v20  }
 0x503   :  { %v2868_v52 = vpop.permute.xlu1 %2867 }
 0x504   :  { %2763 = vperm.xlu1 %3964, %v2744_v3   ;;  %3969 = vset.pattern.permute.xlu0 %v4087_v45 }
 0x505   :  { %2938 = vperm.xlu0 %3969, %v6966_v20  }
 0x507   :  { %v2878_v46 = vpop.permute.xlu1 %2877 }
 0x508   :  { %3965 = vset.pattern.permute.xlu1 %v4088_v11 }
 0x509   :  { %2897 = vperm.xlu1 %3965, %v6966_v20   ;;  %3972 = vset.pattern.permute.xlu0 %v4089_v40 }
 0x50a   :  { %2962 = vperm.xlu0 %3972, %v6966_v20  }
 0x50d   :  { %3966 = vset.pattern.permute.xlu1 %v4090_v49 }
 0x50e   :  { %2907 = vperm.xlu1 %3966, %v6966_v20   ;;  %3975 = vset.pattern.permute.xlu0 %v4091_v1 }
 0x50f   :  { %2986 = vperm.xlu0 %3975, %v6966_v20  }
 0x512   :  { %3968 = vset.pattern.permute.xlu1 %v4092_v62 }
 0x513   :  { %2930 = vperm.xlu1 %3968, %v6966_v20   ;;  %3979 = vset.pattern.permute.xlu0 %v4093_v41 }
 0x514   :  { %3037 = vperm.xlu0 %3979, %v6966_v20  }
 0x517   :  { %3970 = vset.pattern.permute.xlu1 %v4094_v5 }
 0x518   :  { %2946 = vperm.xlu1 %3970, %v6966_v20   ;;  %3982 = vset.pattern.permute.xlu0 %v4095_v24 }
 0x519   :  { %3064 = vperm.xlu0 %3982, %v6966_v20  }
 0x51c   :  { %3971 = vset.pattern.permute.xlu1 %v4096_v17 }
 0x51d   :  { %2954 = vperm.xlu1 %3971, %v6966_v20   ;;  %3985 = vset.pattern.permute.xlu0 %v4097_v26 }
 0x51e   :  { %3094 = vperm.xlu0 %3985, %v6966_v20  }
 0x521   :  { %3973 = vset.pattern.permute.xlu1 %v4098_v31 }
 0x522   :  { %2968 = vperm.xlu1 %3973, %v6966_v20   ;;  %3986 = vset.pattern.permute.xlu0 %v4099_v34 }
 0x526   :  { %3974 = vset.pattern.permute.xlu1 %v4100_v25 }
 0x527   :  { %2977 = vperm.xlu1 %3974, %v6966_v20  }
 0x52b   :  { %3976 = vset.pattern.permute.xlu1 %v4101_v15 }
 0x52c   :  { %2995 = vperm.xlu1 %3976, %v6966_v20  }
 0x530   :  { %3977 = vset.pattern.permute.xlu1 %v4102_v37 }
 0x531   :  { %3004 = vperm.xlu1 %3977, %v6966_v20  }
 0x535   :  { %3978 = vset.pattern.permute.xlu1 %v4103_v53 }
 0x536   :  { %3028 = vperm.xlu1 %3978, %v6966_v20  }
 0x53a   :  { %3980 = vset.pattern.permute.xlu1 %v4104_v42 }
 0x53b   :  { %3046 = vperm.xlu1 %3980, %v6966_v20  }
 0x53f   :  { %3981 = vset.pattern.permute.xlu1 %v4105_v51 }
 0x540   :  { %3055 = vperm.xlu1 %3981, %v6966_v20  }
 0x544   :  { %3983 = vset.pattern.permute.xlu1 %v4106_v4 }
 0x545   :  { %3074 = vperm.xlu1 %3983, %v6966_v20  }
 0x549   :  { %3984 = vset.pattern.permute.xlu1 %v4107_v60 }
 0x54a   :  { %3084 = vperm.xlu1 %3984, %v6966_v20  }
 0x54e   :  { %3987 = vset.pattern.permute.xlu1 %v4108_v8 }
 0x57a   :  { %v2751_v13 = vpop.permute.xlu1 %2750  ;;  %v2756_v9 = vpop.permute.xlu0 %2755 }
 0x57f   :  { %v2760_v35 = vpop.permute.xlu1 %2759 }
 0x580   :  { %v2766_v16 = vsel %vm2745_vm12, %v2751_v13, %v2760_v35 }
 0x581   :  { %v2768_v47 = vmul.f32 %v6977_v2, %v2766_v16 }
 0x583   :  { %v2764_v28 = vpop.permute.xlu1 %2763  ;;  %v2786_v18 = vrot.slane %v2768_v47, %v7965_v22  ;;  %v2823_v54 = vrot.slane %v2768_v47, %v7966_v55  ;;  %v2795_v32 = vrot.slane %v2768_v47, %v7968_v6  ;;  %v2833_v58 = vrot.slane %v2768_v47, %v7971_v12 }
 0x584   :  { %v2767_v33 = vsel %vm2745_vm12, %v2756_v9, %v2764_v28  ;;  %v2777_v3 = vrot.slane %v2768_v47, %v7967_v36  ;;  %v2804_v23 = vrot.slane %v2768_v47, %v7969_v0  ;;  %v2813_v44 = vrot.slane %v2768_v47, %v7970_v19 }
 0x585   :  { %v2769_v59 = vmul.f32 %v6980_v30, %v2767_v33  ;;  %v2787_v2 = vmul.f32 %v2786_v18, %v2781_v63  ;;  %v2824_v45 = vmul.f32 %v2823_v54, %v2818_v57  ;;  %v2796_v11 = vmul.f32 %v2795_v32, %v2790_v7 }
 0x586   :  { %v2834_v40 = vmul.f32 %v2833_v58, %v2828_v10  ;;  %v2778_v62 = vmul.f32 %v2777_v3, %v2772_v29  ;;  %v2814_v41 = vmul.f32 %v2813_v44, %v2808_v27  ;;  %v2805_v17 = vmul.f32 %v2804_v23, %v2799_v14  ;;  %v2918_v29 = vpop.permute.xlu0 %2917 }
 0x587   :  { %v2863_v49 = vrot.slane %v2769_v59, %v7965_v22  ;;  %v2873_v1 = vrot.slane %v2769_v59, %v7968_v6  ;;  %v2903_v5 = vrot.slane %v2769_v59, %v7966_v55  ;;  %v2843_v26 = vrot.slane %v2768_v47, %v7972_v21 }
 0x588   :  { %v2898_v24 = vpop.permute.xlu1 %2897  ;;  %v2825_v31 = vadd.f32 %v2824_v45, %v2787_v2  ;;  %v2853_v30 = vrot.slane %v2769_v59, %v7967_v36  ;;  %v2883_v37 = vrot.slane %v2769_v59, %v7969_v0  ;;  %v2893_v53 = vrot.slane %v2769_v59, %v7970_v19 }
 0x589   :  { %v2864_v34 = vmul.f32 %v2863_v49, %v2858_v50  ;;  %v2874_v25 = vmul.f32 %v2873_v1, %v2868_v52  ;;  %v2844_v15 = vmul.f32 %v2843_v26, %v2838_v48  ;;  %v2923_v42 = vrot.slane %v2769_v59, %v7972_v21 }
 0x58a   :  { %v2835_v4 = vadd.f32 %v2834_v40, %v2796_v11  ;;  %v2815_v60 = vadd.f32 %v2814_v41, %v2778_v62  ;;  %v2854_v63 = vmul.f32 %v2853_v30, %v2848_v56  ;;  %v2904_v8 = vmul.f32 %v2903_v5, %v2898_v24  ;;  %v2939_v2 = vpop.permute.xlu0 %2938 }
 0x58b   :  { %v2865_v51 = vadd.f32 %v2864_v34, %v2825_v31  ;;  %v2913_v7 = vrot.slane %v2769_v59, %v7971_v12  ;;  %v2845_v27 = vadd.f32 %v2844_v15, %v2805_v17  ;;  %v2884_v57 = vmul.f32 %v2883_v37, %v2878_v46  ;;  %v7975_v34 = vld [vmem:[#allocation30_spill] sm:$0xff] }
 0x58c   :  { %v2875_v14 = vadd.f32 %v2874_v25, %v2835_v4  ;;  %v2855_v10 = vadd.f32 %v2854_v63, %v2815_v60  ;;  %v2894_v48 = vmul.f32 %v2893_v53, %v2888_v43  ;;  %v2924_v35 = vmul.f32 %v2923_v42, %v2918_v29  ;;  %v7976_v25 = vld [vmem:[#allocation23_spill] sm:$0xff] }
 0x58d   :  { %v2908_v52 = vpop.permute.xlu1 %2907  ;;  %v2905_v50 = vadd.f32 %v2904_v8, %v2865_v51  ;;  %v2885_v39 = vadd.f32 %v2884_v57, %v2845_v27  ;;  %v4114_v46 = vmov 100   ;;  %v4116_v43 = vmov 81  }
 0x58e   :  { %v2914_v13 = vmul.f32 %v2913_v7, %v2908_v52  ;;  %v2895_v16 = vadd.f32 %v2894_v48, %v2855_v10  ;;  %v2963_v11 = vpop.permute.xlu0 %2962  ;;  %vm128_vm6 = vcmp.ge.s32.totalorder %v7975_v34, 1  ;;  %vm130_vm0 = vcmp.ge.s32.totalorder %v7976_v25, 1 }
 0x58f   :  { %v2925_v9 = vadd.f32 %v2924_v35, %v2885_v39  ;;  %vm131_vm5 = vcmp.le.s32.totalorder %v7976_v25, 6  ;;  %vm132_vm7 = vmand %vm128_vm6, %vm130_vm0  ;;  %vm129_vm8 = vcmp.le.s32.totalorder %v7975_v34, 6  ;;  %v3152_v37 = vsel %vm130_vm0, 1.0, %v7706_v61 }
 0x590   :  { %v2915_v47 = vadd.f32 %v2914_v13, %v2875_v14  ;;  %v2926_v28 = vadd.f32 %v2905_v50, %v2895_v16  ;;  %vm144_vm1 = vmand %vm129_vm8, %vm130_vm0  ;;  %v3149_v42 = vsel %vm132_vm7, 1.0, %v7706_v61  ;;  %v3150_v51 = vsel %vm128_vm6, 1.0, %v7706_v61 }
 0x591   :  { %vm137_vm11 = vmand %vm128_vm6, %vm131_vm5  ;;  %v3153_v4 = vsel %vm131_vm5, 1.0, %v7706_v61  ;;  %v3154_v60 = vsel %vm144_vm1, 1.0, %v7706_v61  ;;  %v3155_v7 = vsel %vm129_vm8, 1.0, %v7706_v61 }
 0x592   :  { %v2927_v18 = vadd.f32 %v2925_v9, %v2915_v47  ;;  %v2931_v56 = vpop.permute.xlu1 %2930  ;;  %v2987_v49 = vpop.permute.xlu0 %2986  ;;  %vm149_vm3 = vmand %vm129_vm8, %vm131_vm5  ;;  %v3151_v8 = vsel %vm137_vm11, 1.0, %v7706_v61 }
 0x593   :  { %v3156_v57 = vsel %vm149_vm3, 1.0, %v7706_v61  ;;  %v3090_v61 = vrot.slane %v6983_v38, %v7971_v12 }
 0x594   :  { %v2928_v54 = vadd.f32 %v2927_v18, %v2926_v28 }
 0x596   :  { %v7067_v32 = vadd.f32 %v2931_v56, %v2928_v54  ;;  %v7087_v62 = vpop.permute.xlu0 %3037 }
 0x597   :  { %v2947_v58 = vpop.permute.xlu1 %2946 }
 0x598   :  { %2950 = vrot.lane.b32.xlu0 %v7067_v32, %s4109_s1  ;;  %2934 = vrot.lane.b32.xlu1 %v7067_v32, %s4110_s18 }
 0x59a   :  { %v7089_v5 = vpop.permute.xlu0 %3064 }
 0x59c   :  { %2958 = vrot.lane.b32.xlu0 %v7067_v32, %s4020_s23  ;;  %2942 = vrot.lane.b32.xlu1 %v7067_v32, %s4111_s19  ;;  %v2955_v33 = vpop.permute.xlu1 %2954 }
 0x59e   :  { %v3095_v24 = vpop.permute.xlu0 %3094 }
 0x5a0   :  { %2991 = vrot.lane.b32.xlu0 %v7067_v32, %s4112_s20  ;;  %2973 = vrot.lane.b32.xlu1 %v7067_v32, %s4022_s25 }
 0x5a1   :  { %v2969_v3 = vpop.permute.xlu1 %2968 }
 0x5a2   :  { %v2971_v18 = vmul.f32 %v2969_v3, %v7067_v32 }
 0x5a4   :  { %3012 = vperm.xlu0 %3986, %v6966_v20   ;;  %2982 = vrot.lane.b32.xlu1 %v7067_v32, %s4113_s21 }
 0x5a6   :  { %v2978_v23 = vpop.permute.xlu1 %2977 }
 0x5a8   :  { %3989 = vset.pattern.permute.xlu0 %v4114_v46  ;;  %3000 = vrot.lane.b32.xlu1 %v7067_v32, %s4115_s22 }
 0x5a9   :  { %3107 = vperm.xlu0 %3989, %v6966_v20  }
 0x5ab   :  { %v2996_v44 = vpop.permute.xlu1 %2995 }
 0x5ac   :  { %3017 = vperm.xlu1 %3987, %v6966_v20  }
 0x5b0   :  { %3988 = vset.pattern.permute.xlu1 %v4116_v43  ;;  %v3005_v59 = vpop.permute.xlu1 %3004 }
 0x5b1   :  { %3023 = vperm.xlu1 %3988, %v6966_v20  }
 0x5b5   :  { %v7083_v45 = vpop.permute.xlu1 %3028 }
 0x5ba   :  { %v7085_v40 = vpop.permute.xlu1 %3046 }
 0x5bf   :  { %v3056_v1 = vpop.permute.xlu1 %3055 }
 0x5c4   :  { %v3075_v41 = vpop.permute.xlu1 %3074 }
 0x5c9   :  { %v3085_v20 = vpop.permute.xlu1 %3084 }
 0x5ca   :  { %v3091_v3 = vmul.f32 %v3090_v61, %v3085_v20 }
 0x60a   :  { %v2935_v17 = vpop.permute.xlu1 %2934  ;;  %v2951_v26 = vpop.permute.xlu0 %2950 }
 0x60b   :  { %v2936_v29 = vmul.f32 %v3149_v42, %v2935_v17  ;;  %v2952_v50 = vmul.f32 %v3151_v8, %v2951_v26 }
 0x60d   :  { %v2941_v16 = vmul.f32 %v2939_v2, %v2936_v29  ;;  %v2957_v56 = vmul.f32 %v2955_v33, %v2952_v50  ;;  %v3043_v33 = vrot.slane %v6983_v38, %v7965_v22  ;;  %v3034_v2 = vrot.slane %v6983_v38, %v7967_v36 }
 0x60e   :  { %v2943_v31 = vpop.permute.xlu1 %2942  ;;  %v2959_v15 = vpop.permute.xlu0 %2958 }
 0x60f   :  { %v2960_v63 = vmul.f32 %v3152_v37, %v2959_v15  ;;  %v2944_v14 = vmul.f32 %v3150_v51, %v2943_v31  ;;  %v3044_v20 = vmul.f32 %v3043_v33, %v7087_v62  ;;  %v3035_v22 = vmul.f32 %v3034_v2, %v7083_v45 }
 0x611   :  { %v2965_v13 = vmul.f32 %v2963_v11, %v2960_v63  ;;  %v2949_v47 = vmul.f32 %v2947_v58, %v2944_v14  ;;  %v3052_v11 = vrot.slane %v6983_v38, %v7968_v6  ;;  %v3061_v58 = vrot.slane %v6983_v38, %v7969_v0 }
 0x612   :  { %v2974_v30 = vpop.permute.xlu1 %2973  ;;  %v2992_v27 = vpop.permute.xlu0 %2991  ;;  %v3070_v0 = vrot.slane %v6983_v38, %v7970_v19 }
 0x613   :  { %v2975_v52 = vmul.f32 %v3153_v4, %v2974_v30  ;;  %v2993_v39 = vmul.f32 %v3155_v7, %v2992_v27  ;;  %v2966_v54 = vadd.f32 %v2965_v13, %v2941_v16  ;;  %v2972_v17 = vadd.f32 %v2971_v18, %v2949_v47 }
 0x614   :  { %v3053_v6 = vmul.f32 %v3052_v11, %v7085_v40  ;;  %v3071_v37 = vmul.f32 %v3070_v0, %v7089_v5 }
 0x615   :  { %v2980_v9 = vmul.f32 %v2978_v23, %v2975_v52  ;;  %v2998_v46 = vmul.f32 %v2996_v44, %v2993_v39  ;;  %v3080_v23 = vrot.slane %v6983_v38, %v7966_v55  ;;  %v3100_v44 = vrot.slane %v6983_v38, %v7972_v21 }
 0x616   :  { %v2983_v53 = vpop.permute.xlu1 %2982  ;;  %v3092_v30 = vadd.f32 %v3091_v3, %v3053_v6  ;;  %v3072_v42 = vadd.f32 %v3071_v37, %v3035_v22 }
 0x617   :  { %v2984_v10 = vmul.f32 %v3154_v60, %v2983_v53  ;;  %v2981_v31 = vadd.f32 %v2980_v9, %v2957_v56  ;;  %v2999_v12 = vadd.f32 %v2998_v46, %v2972_v17  ;;  %v3081_v26 = vmul.f32 %v3080_v23, %v3075_v41 }
 0x618   :  { %v3101_v25 = vmul.f32 %v3100_v44, %v3095_v24 }
 0x619   :  { %v2989_v28 = vmul.f32 %v2987_v49, %v2984_v10  ;;  %v3062_v49 = vmul.f32 %v3061_v58, %v3056_v1  ;;  %v3082_v36 = vadd.f32 %v3081_v26, %v3044_v20 }
 0x61a   :  { %v3001_v48 = vpop.permute.xlu1 %3000 }
 0x61b   :  { %v3002_v35 = vmul.f32 %v3156_v57, %v3001_v48  ;;  %v2990_v34 = vadd.f32 %v2989_v28, %v2966_v54  ;;  %v3102_v53 = vadd.f32 %v3101_v25, %v3062_v49  ;;  %v3103_v38 = vadd.f32 %v3082_v36, %v3072_v42 }
 0x61d   :  { %v3007_v43 = vmul.f32 %v3005_v59, %v3002_v35  ;;  %v3009_v55 = vadd.f32 %v2999_v12, %v2990_v34  ;;  %v3104_v40 = vadd.f32 %v3102_v53, %v3092_v30 }
 0x61f   :  { %v3008_v59 = vadd.f32 %v3007_v43, %v2981_v31  ;;  %v3105_v62 = vadd.f32 %v3104_v40, %v3103_v38 }
 0x621   :  { %v3010_v15 = vadd.f32 %v3009_v55, %v3008_v59 }
 0x623   :  { %v3013_v21 = vpop.permute.xlu0 %3012 }
 0x624   :  { %v3015_v41 = vadd.f32 %v3013_v21, %v3010_v15 }
 0x628   :  { %v3108_v19 = vpop.permute.xlu0 %3107 }
 0x629   :  { %v3110_v60 = vadd.f32 %v3108_v19, %v3105_v62 }
 0x62b   :  { %v3018_v1 = vpop.permute.xlu1 %3017 }
 0x62c   :  { %v3020_v51 = vmul.f32 %v3018_v1, %v7067_v32 }
 0x62e   :  { %v3021_v4 = vadd.f32 %v3020_v51, %v3015_v41 }
 0x630   :  { %v3024_v24 = vpop.permute.xlu1 %3023 }
 0x631   :  { %v3026_v45 = vadd.f32 %v3024_v24, %v3021_v4 }
 0x633   :  { %v3111_v63 = vadd.f32 %v3110_v60, %v3026_v45 }
 0x635   :  { %3112 = vst [vmem:[%s7130_s2] sm:$0xff] %v3111_v63 }

</bundles_post_ra>
